<compile_context>
chip_gen: v6e
topology: v6e:2x2x1
jax: 0.10.0
libtpu: 0.0.40
codegen_flags: <defaults>
</compile_context>

<pallas_src>
import functools

import numpy as np
import jax
import jax.numpy as jnp
from jax import lax
from jax.experimental import pallas as pl
from jax.experimental.pallas import tpu as pltpu


def mha_decoder_cross_kernel(q_ref, k_ref, v_ref, wqkv_ref, wo_ref,
                             bqkv_ref, bvec_ref, o_ref,
                             *, bb, nq, nk, h, d_k, d_v, threshold, eps):
    f32 = jnp.float32
    hdk = h * d_k
    hdv = h * d_v
    d_model = q_ref.shape[-1]
    G = bb * h

    q_in = q_ref[...]                     # (bb*nq, d_model)
    k_in = k_ref[...]                     # (bb*nk, d_model)
    v_in = v_ref[...]                     # (bb*nk, d_model)

    mm = functools.partial(lax.dot_general,
                           dimension_numbers=(((1,), (0,)), ((), ())),
                           preferred_element_type=f32)
    bmm = functools.partial(lax.dot_general, preferred_element_type=f32)

    # ---- lane-dense 2-D QKV projections (weights sliced at ref level) ------
    q_p = mm(q_in, wqkv_ref[:, 0:hdk]) + bqkv_ref[:, 0:hdk]            # (bb*nq, hdk)
    k_p = mm(k_in, wqkv_ref[:, hdk:2 * hdk]) + bqkv_ref[:, hdk:2 * hdk]
    v_p = mm(v_in, wqkv_ref[:, 2 * hdk:2 * hdk + hdv]) + bqkv_ref[:, 2 * hdk:2 * hdk + hdv]

    # ---- split heads (small XLU relayout) for batched score/context bmms ---
    q_h = q_p.reshape(bb, nq, h, d_k).transpose(0, 2, 1, 3).reshape(G, nq, d_k)
    k_h = k_p.reshape(bb, nk, h, d_k).transpose(0, 2, 1, 3).reshape(G, nk, d_k)
    v_h = v_p.reshape(bb, nk, h, d_v).transpose(0, 2, 1, 3).reshape(G, nk, d_v)

    scale = f32(1.0 / np.sqrt(d_k))
    att = bmm(q_h, k_h, (((2,), (2,)), ((0,), (0,)))) * scale          # (G, nq, nk)

    # ---- fused double-softmax + top-5 focus mask (single exp pass) ---------
    m_full = jnp.max(att, axis=-1, keepdims=True)                      # (G, nq, 1)
    e = jnp.exp(att - m_full)
    den_full = jnp.sum(e, axis=-1, keepdims=True)

    start = max(nk - 49, 0)               # columns [0, start) may be masked out
    if start == 0:
        # Window covers every key: masked softmax == full softmax; no mask work.
        att_sm = e * pl.reciprocal(den_full, approx=True)
    else:
        col = lax.broadcasted_iota(jnp.int32, (1, 1, nk), 2)           # one row
        in_window = col >= start
        e_win = jnp.where(in_window, e, f32(0.0))
        den_win = jnp.sum(e_win, axis=-1, keepdims=True)
        # NOTE: assumes window logits are within ~87 of the row max so e_win
        # does not fully underflow (always true at these scales).

        # top-5 of the window softmax on un-normalized exponentials:
        #   sum(top5(softmax_win)) > thr   <=>   sum(top5(e_win)) > thr * den_win
        # All bit-equal ties are removed per round (torch.topk removes one per
        # round): behavior differs only on exactly-equal exponentials.
        x = e_win
        top5 = jnp.zeros((G, nq, 1), f32)
        for _ in range(5):
            m = jnp.max(x, axis=-1, keepdims=True)
            top5 = top5 + m
            x = jnp.where(x == m, f32(-1.0), x)
        row_mask = top5 > f32(threshold) * den_win                      # (G, nq, 1)

        # masked softmax == window softmax where row_mask, full softmax elsewhere
        numer = jnp.where(row_mask, e_win, e)
        denom = jnp.where(row_mask, den_win, den_full)
        denom = jnp.maximum(denom, f32(1e-30))      # guard approx-recip vs underflow
        att_sm = numer * pl.reciprocal(denom, approx=True)   # dropout = identity

    # ---- attention output + single lane-dense output projection ------------
    ctx = bmm(att_sm, v_h, (((2,), (1,)), ((0,), (0,))))               # (G, nq, d_v)
    ctx2 = ctx.reshape(bb, h, nq, d_v).transpose(0, 2, 1, 3).reshape(bb * nq, hdv)
    out = mm(ctx2, wo_ref[...]) + bvec_ref[0:1, :]                     # (bb*nq, d_model)

    # ---- residual + LayerNorm (outer dropout = identity in eval) -----------
    y = q_in + out
    mu = jnp.mean(y, axis=-1, keepdims=True)
    var = jnp.mean(jnp.square(y - mu), axis=-1, keepdims=True)
    normed = (y - mu) * lax.rsqrt(var + f32(eps))
    o_ref[...] = (normed * bvec_ref[1:2, :] + bvec_ref[2:3, :]).astype(o_ref.dtype)


def _single_tensorcore_chip():
    """True for v5e/v6e-class chips (1 TC); False for v7x-class (2 TCs)."""
    try:
        kind = jax.devices()[0].device_kind.lower()
    except Exception:
        return True
    return "v7" not in kind and "7x" not in kind


def mha_decoder_cross(queries, keys, values, params, *, h, d_k, d_v,
                      threshold=0.1, eps=1e-5, fold_batch=None):
    B, nq, d_model = queries.shape
    nk = keys.shape[1]
    assert min(nk, 49) >= 5, "top-5 focus mask needs >=5 keys in the window"
    wq, bq, wk, bk, wv, bv, wo, bo, gamma, beta = params
    hdk, hdv = h * d_k, h * d_v
    qkv_w = 2 * hdk + hdv

    # Fold B into one grid step on single-TC chips; keep a parallel axis on v7x.
    if fold_batch is None:
        fold_batch = _single_tensorcore_chip()
    bb = B if fold_batch else 1
    grid = (B // bb,)

    # ---- lane-dense parameter packing (contiguous last-axis concatenation) --
    w_qkv = jnp.concatenate([wq, wk, wv], axis=1).astype(jnp.float32)   # (dm, qkv_w)
    w_o = wo.astype(jnp.float32)                                        # (hdv, dm)
    b_qkv = jnp.concatenate([bq.reshape(1, hdk), bk.reshape(1, hdk),
                             bv.reshape(1, hdv)], axis=1).astype(jnp.float32)
    b_vec = jnp.concatenate([bo.reshape(1, d_model), gamma.reshape(1, d_model),
                             beta.reshape(1, d_model)], axis=0).astype(jnp.float32)

    q2 = queries.reshape(B * nq, d_model)
    k2 = keys.reshape(B * nk, d_model)
    v2 = values.reshape(B * nk, d_model)

    kernel = functools.partial(mha_decoder_cross_kernel, bb=bb, nq=nq, nk=nk,
                               h=h, d_k=d_k, d_v=d_v,
                               threshold=threshold, eps=eps)

    out2 = pl.pallas_call(
        kernel,
        out_shape=jax.ShapeDtypeStruct((B * nq, d_model), jnp.float32),
        grid=grid,
        in_specs=[
            pl.BlockSpec((bb * nq, d_model), lambda i: (i, 0)),
            pl.BlockSpec((bb * nk, d_model), lambda i: (i, 0)),
            pl.BlockSpec((bb * nk, d_model), lambda i: (i, 0)),
            pl.BlockSpec((d_model, qkv_w), lambda i: (0, 0)),
            pl.BlockSpec((hdv, d_model), lambda i: (0, 0)),
            pl.BlockSpec((1, qkv_w), lambda i: (0, 0)),
            pl.BlockSpec((3, d_model), lambda i: (0, 0)),
        ],
        out_specs=pl.BlockSpec((bb * nq, d_model), lambda i: (i, 0)),
        compiler_params=pltpu.CompilerParams(
            dimension_semantics=("parallel",)),
    )(q2, k2, v2, w_qkv, w_o, b_qkv, b_vec)
    return out2.reshape(B, nq, d_model)


def reference(queries, keys, values, params, *, h, d_k, d_v, threshold=0.1, eps=1e-5):
    """Pure-JAX mirror of the PyTorch forward (eval mode) for checking."""
    wq, bq, wk, bk, wv, bv, wo, bo, gamma, beta = params
    B, nq, d_model = queries.shape
    nk = keys.shape[1]
    mm = functools.partial(jnp.matmul, precision=lax.Precision.HIGHEST)

    q = (mm(queries, wq) + bq).reshape(B, nq, h, d_k).transpose(0, 2, 1, 3)
    k = (mm(keys, wk) + bk).reshape(B, nk, h, d_k).transpose(0, 2, 3, 1)
    v = (mm(values, wv) + bv).reshape(B, nk, h, d_v).transpose(0, 2, 1, 3)
    att = mm(q, k) / np.sqrt(d_k)                       # (B, h, nq, nk)

    start = max(nk - 49, 0)
    win_sm = jax.nn.softmax(att[..., start:], axis=-1)
    top5 = lax.top_k(win_sm, 5)[0].sum(-1)              # (B, h, nq)
    mask = top5 > threshold
    lead = jnp.arange(nk) < start
    att = jnp.where(mask[..., None] & lead, -jnp.inf, att)
    att = jax.nn.softmax(att, axis=-1)

    out = mm(att, v).transpose(0, 2, 1, 3).reshape(B, nq, h * d_v)
    out = mm(out, wo) + bo
    y = queries + out
    mu = y.mean(-1, keepdims=True)
    var = ((y - mu) ** 2).mean(-1, keepdims=True)
    return (y - mu) / jnp.sqrt(var + eps) * gamma + beta


if __name__ == "__main__":
    B, nq, nk, d_model, h, d_k, d_v = 2, 8, 64, 32, 4, 8, 8

    key = jax.random.PRNGKey(0)
    ks = jax.random.split(key, 16)
    f32 = jnp.float32
    queries = jax.random.normal(ks[0], (B, nq, d_model), f32)
    keys_ = jax.random.normal(ks[1], (B, nk, d_model), f32)
    values = jax.random.normal(ks[2], (B, nk, d_model), f32)

    s = 0.3  # deterministic synthetic parameter scale
    wq = jax.random.normal(ks[3], (d_model, h * d_k), f32) * s
    bq = jax.random.normal(ks[4], (1, h * d_k), f32) * s
    wk = jax.random.normal(ks[5], (d_model, h * d_k), f32) * s
    bk = jax.random.normal(ks[6], (1, h * d_k), f32) * s
    wv = jax.random.normal(ks[7], (d_model, h * d_v), f32) * s
    bv = jax.random.normal(ks[8], (1, h * d_v), f32) * s
    wo = jax.random.normal(ks[9], (h * d_v, d_model), f32) * s
    bo = jax.random.normal(ks[10], (1, d_model), f32) * s
    gamma = 1.0 + 0.1 * jax.random.normal(ks[11], (1, d_model), f32)
    beta = 0.1 * jax.random.normal(ks[12], (1, d_model), f32)
    params = (wq, bq, wk, bk, wv, bv, wo, bo, gamma, beta)

    out = jax.block_until_ready(
        mha_decoder_cross(queries, keys_, values, params, h=h, d_k=d_k, d_v=d_v))
    ref = reference(queries, keys_, values, params, h=h, d_k=d_k, d_v=d_v)

    assert out.shape == (B, nq, d_model)
    assert np.isfinite(np.asarray(out)).all()
    assert np.allclose(np.asarray(out), np.asarray(ref), atol=2e-2, rtol=2e-2)
    print("KERNEL_OK")
</pallas_src>

<mosaic_0001>
module attributes {stable_mosaic.version = 11 : i64} {
  func.func @mha_decoder_cross_kernel(%arg0: i32, %arg1: memref<16x32xf32, #tpu.memory_space<vmem>>, %arg2: memref<128x32xf32, #tpu.memory_space<vmem>>, %arg3: memref<128x32xf32, #tpu.memory_space<vmem>>, %arg4: memref<32x96xf32, #tpu.memory_space<vmem>>, %arg5: memref<32x32xf32, #tpu.memory_space<vmem>>, %arg6: memref<1x96xf32, #tpu.memory_space<vmem>>, %arg7: memref<3x32xf32, #tpu.memory_space<vmem>>, %arg8: memref<16x32xf32, #tpu.memory_space<vmem>>) attributes {dimension_semantics = [#tpu.dimension_semantics<parallel>], iteration_bounds = array<i64: 1>, scalar_prefetch = 0 : i64, scratch_operands = 0 : i64, tpu.core_type = #tpu.core_type<tc>, window_params = [{transform_indices = @transform_0, window_bounds = array<i64: 16, 32>}, {transform_indices = @transform_1, window_bounds = array<i64: 128, 32>}, {transform_indices = @transform_2, window_bounds = array<i64: 128, 32>}, {pipeline_mode = #tpu.pipeline_mode<synchronous>, transform_indices = @transform_3, window_bounds = array<i64: 32, 96>}, {pipeline_mode = #tpu.pipeline_mode<synchronous>, transform_indices = @transform_4, window_bounds = array<i64: 32, 32>}, {pipeline_mode = #tpu.pipeline_mode<synchronous>, transform_indices = @transform_5, window_bounds = array<i64: 1, 96>}, {pipeline_mode = #tpu.pipeline_mode<synchronous>, transform_indices = @transform_6, window_bounds = array<i64: 3, 32>}, {transform_indices = @transform_7, window_bounds = array<i64: 16, 32>}]} {
    %c0 = arith.constant 0 : index
    %c0_0 = arith.constant 0 : index
    %0 = vector.load %arg1[%c0, %c0_0] : memref<16x32xf32, #tpu.memory_space<vmem>>, vector<16x32xf32>
    %c0_1 = arith.constant 0 : index
    %c0_2 = arith.constant 0 : index
    %1 = vector.load %arg2[%c0_1, %c0_2] : memref<128x32xf32, #tpu.memory_space<vmem>>, vector<128x32xf32>
    %c0_3 = arith.constant 0 : index
    %c0_4 = arith.constant 0 : index
    %2 = vector.load %arg3[%c0_3, %c0_4] : memref<128x32xf32, #tpu.memory_space<vmem>>, vector<128x32xf32>
    %c0_5 = arith.constant 0 : index
    %c0_6 = arith.constant 0 : index
    %3 = vector.load %arg4[%c0_5, %c0_6] : memref<32x96xf32, #tpu.memory_space<vmem>>, vector<32x32xf32>
    %cst = arith.constant dense<0.000000e+00> : vector<16x32xf32>
    %4 = tpu.matmul %0, %3, %cst {dimension_numbers = #tpu.dot_dimension_numbers<[1], [0], [0], [1], [0, 0, 1, 1], [], []>} : vector<16x32xf32>, vector<32x32xf32>, vector<16x32xf32> -> vector<16x32xf32>
    %c0_7 = arith.constant 0 : index
    %c0_8 = arith.constant 0 : index
    %5 = vector.load %arg6[%c0_7, %c0_8] : memref<1x96xf32, #tpu.memory_space<vmem>>, vector<1x32xf32>
    %6 = vector.broadcast %5 : vector<1x32xf32> to vector<16x32xf32>
    %7 = arith.addf %4, %6 : vector<16x32xf32>
    %c0_9 = arith.constant 0 : index
    %c32 = arith.constant 32 : index
    %8 = vector.load %arg4[%c0_9, %c32] : memref<32x96xf32, #tpu.memory_space<vmem>>, vector<32x32xf32>
    %cst_10 = arith.constant dense<0.000000e+00> : vector<128x32xf32>
    %9 = tpu.matmul %1, %8, %cst_10 {dimension_numbers = #tpu.dot_dimension_numbers<[1], [0], [0], [1], [0, 0, 1, 1], [], []>} : vector<128x32xf32>, vector<32x32xf32>, vector<128x32xf32> -> vector<128x32xf32>
    %c0_11 = arith.constant 0 : index
    %c32_12 = arith.constant 32 : index
    %10 = vector.load %arg6[%c0_11, %c32_12] : memref<1x96xf32, #tpu.memory_space<vmem>>, vector<1x32xf32>
    %11 = vector.broadcast %10 : vector<1x32xf32> to vector<128x32xf32>
    %12 = arith.addf %9, %11 : vector<128x32xf32>
    %c0_13 = arith.constant 0 : index
    %c64 = arith.constant 64 : index
    %13 = vector.load %arg4[%c0_13, %c64] : memref<32x96xf32, #tpu.memory_space<vmem>>, vector<32x32xf32>
    %cst_14 = arith.constant dense<0.000000e+00> : vector<128x32xf32>
    %14 = tpu.matmul %2, %13, %cst_14 {dimension_numbers = #tpu.dot_dimension_numbers<[1], [0], [0], [1], [0, 0, 1, 1], [], []>} : vector<128x32xf32>, vector<32x32xf32>, vector<128x32xf32> -> vector<128x32xf32>
    %c0_15 = arith.constant 0 : index
    %c64_16 = arith.constant 64 : index
    %15 = vector.load %arg6[%c0_15, %c64_16] : memref<1x96xf32, #tpu.memory_space<vmem>>, vector<1x32xf32>
    %16 = vector.broadcast %15 : vector<1x32xf32> to vector<128x32xf32>
    %17 = arith.addf %14, %16 : vector<128x32xf32>
    %18 = vector.shape_cast %7 : vector<16x32xf32> to vector<2x8x4x8xf32>
    %19 = tpu.transpose %18, [0, 2, 1, 3] : vector<2x8x4x8xf32> -> vector<2x4x8x8xf32>
    %20 = vector.shape_cast %19 : vector<2x4x8x8xf32> to vector<8x8x8xf32>
    %21 = vector.shape_cast %12 : vector<128x32xf32> to vector<2x64x4x8xf32>
    %22 = tpu.transpose %21, [0, 2, 1, 3] : vector<2x64x4x8xf32> -> vector<2x4x64x8xf32>
    %23 = vector.shape_cast %22 : vector<2x4x64x8xf32> to vector<8x64x8xf32>
    %24 = vector.shape_cast %17 : vector<128x32xf32> to vector<2x64x4x8xf32>
    %25 = tpu.transpose %24, [0, 2, 1, 3] : vector<2x64x4x8xf32> -> vector<2x4x64x8xf32>
    %26 = vector.shape_cast %25 : vector<2x4x64x8xf32> to vector<8x64x8xf32>
    %cst_17 = arith.constant dense<0.000000e+00> : vector<8x8x64xf32>
    %27 = tpu.matmul %20, %23, %cst_17 {dimension_numbers = #tpu.dot_dimension_numbers<[2], [2], [1], [1], [0, 0, 0, 1, 1, 1], [0], [0]>} : vector<8x8x8xf32>, vector<8x64x8xf32>, vector<8x8x64xf32> -> vector<8x8x64xf32>
    %cst_18 = arith.constant 0.353553385 : f32
    %28 = vector.broadcast %cst_18 : f32 to vector<8x8x64xf32>
    %29 = arith.mulf %27, %28 : vector<8x8x64xf32>
    %cst_19 = arith.constant dense<0xFF800000> : vector<8x8xf32>
    %30 = vector.multi_reduction <maximumf>, %29, %cst_19 [2] : vector<8x8x64xf32> to vector<8x8xf32>
    %31 = vector.shape_cast %30 : vector<8x8xf32> to vector<8x8x1xf32>
    %32 = vector.broadcast %31 : vector<8x8x1xf32> to vector<8x8x64xf32>
    %33 = arith.subf %29, %32 : vector<8x8x64xf32>
    %34 = math.exp %33 : vector<8x8x64xf32>
    %cst_20 = arith.constant dense<0.000000e+00> : vector<8x8xf32>
    %35 = vector.multi_reduction <add>, %34, %cst_20 [2] : vector<8x8x64xf32> to vector<8x8xf32>
    %36 = vector.shape_cast %35 : vector<8x8xf32> to vector<8x8x1xf32>
    %37 = tpu.iota {dimensions = array<i32: 2>} : vector<1x1x64xi32>
    %c15_i32 = arith.constant 15 : i32
    %38 = vector.broadcast %c15_i32 : i32 to vector<1x1x64xi32>
    %39 = arith.cmpi sge, %37, %38 : vector<1x1x64xi32>
    %cst_21 = arith.constant 0.000000e+00 : f32
    %40 = vector.shape_cast %39 : vector<1x1x64xi1> to vector<1x1x64xi1>
    %41 = vector.broadcast %40 : vector<1x1x64xi1> to vector<8x8x64xi1>
    %42 = vector.broadcast %cst_21 : f32 to vector<8x8x64xf32>
    %43 = arith.select %41, %34, %42 : vector<8x8x64xi1>, vector<8x8x64xf32>
    %cst_22 = arith.constant dense<0.000000e+00> : vector<8x8xf32>
    %44 = vector.multi_reduction <add>, %43, %cst_22 [2] : vector<8x8x64xf32> to vector<8x8xf32>
    %45 = vector.shape_cast %44 : vector<8x8xf32> to vector<8x8x1xf32>
    %cst_23 = arith.constant 0.000000e+00 : f32
    %46 = vector.broadcast %cst_23 : f32 to vector<8x8x1xf32>
    %cst_24 = arith.constant dense<0xFF800000> : vector<8x8xf32>
    %47 = vector.multi_reduction <maximumf>, %43, %cst_24 [2] : vector<8x8x64xf32> to vector<8x8xf32>
    %48 = vector.shape_cast %47 : vector<8x8xf32> to vector<8x8x1xf32>
    %49 = arith.addf %46, %48 : vector<8x8x1xf32>
    %50 = vector.broadcast %48 : vector<8x8x1xf32> to vector<8x8x64xf32>
    %51 = arith.cmpf oeq, %43, %50 : vector<8x8x64xf32>
    %cst_25 = arith.constant -1.000000e+00 : f32
    %52 = vector.broadcast %cst_25 : f32 to vector<8x8x64xf32>
    %53 = arith.select %51, %52, %43 : vector<8x8x64xi1>, vector<8x8x64xf32>
    %cst_26 = arith.constant dense<0xFF800000> : vector<8x8xf32>
    %54 = vector.multi_reduction <maximumf>, %53, %cst_26 [2] : vector<8x8x64xf32> to vector<8x8xf32>
    %55 = vector.shape_cast %54 : vector<8x8xf32> to vector<8x8x1xf32>
    %56 = arith.addf %49, %55 : vector<8x8x1xf32>
    %57 = vector.broadcast %55 : vector<8x8x1xf32> to vector<8x8x64xf32>
    %58 = arith.cmpf oeq, %53, %57 : vector<8x8x64xf32>
    %cst_27 = arith.constant -1.000000e+00 : f32
    %59 = vector.broadcast %cst_27 : f32 to vector<8x8x64xf32>
    %60 = arith.select %58, %59, %53 : vector<8x8x64xi1>, vector<8x8x64xf32>
    %cst_28 = arith.constant dense<0xFF800000> : vector<8x8xf32>
    %61 = vector.multi_reduction <maximumf>, %60, %cst_28 [2] : vector<8x8x64xf32> to vector<8x8xf32>
    %62 = vector.shape_cast %61 : vector<8x8xf32> to vector<8x8x1xf32>
    %63 = arith.addf %56, %62 : vector<8x8x1xf32>
    %64 = vector.broadcast %62 : vector<8x8x1xf32> to vector<8x8x64xf32>
    %65 = arith.cmpf oeq, %60, %64 : vector<8x8x64xf32>
    %cst_29 = arith.constant -1.000000e+00 : f32
    %66 = vector.broadcast %cst_29 : f32 to vector<8x8x64xf32>
    %67 = arith.select %65, %66, %60 : vector<8x8x64xi1>, vector<8x8x64xf32>
    %cst_30 = arith.constant dense<0xFF800000> : vector<8x8xf32>
    %68 = vector.multi_reduction <maximumf>, %67, %cst_30 [2] : vector<8x8x64xf32> to vector<8x8xf32>
    %69 = vector.shape_cast %68 : vector<8x8xf32> to vector<8x8x1xf32>
    %70 = arith.addf %63, %69 : vector<8x8x1xf32>
    %71 = vector.broadcast %69 : vector<8x8x1xf32> to vector<8x8x64xf32>
    %72 = arith.cmpf oeq, %67, %71 : vector<8x8x64xf32>
    %cst_31 = arith.constant -1.000000e+00 : f32
    %73 = vector.broadcast %cst_31 : f32 to vector<8x8x64xf32>
    %74 = arith.select %72, %73, %67 : vector<8x8x64xi1>, vector<8x8x64xf32>
    %cst_32 = arith.constant dense<0xFF800000> : vector<8x8xf32>
    %75 = vector.multi_reduction <maximumf>, %74, %cst_32 [2] : vector<8x8x64xf32> to vector<8x8xf32>
    %76 = vector.shape_cast %75 : vector<8x8xf32> to vector<8x8x1xf32>
    %77 = arith.addf %70, %76 : vector<8x8x1xf32>
    %cst_33 = arith.constant 1.000000e-01 : f32
    %78 = vector.broadcast %cst_33 : f32 to vector<8x8x1xf32>
    %79 = arith.mulf %78, %45 : vector<8x8x1xf32>
    %80 = arith.cmpf ogt, %77, %79 : vector<8x8x1xf32>
    %81 = vector.shape_cast %80 : vector<8x8x1xi1> to vector<8x8x1xi1>
    %82 = vector.broadcast %81 : vector<8x8x1xi1> to vector<8x8x64xi1>
    %83 = arith.select %82, %43, %34 : vector<8x8x64xi1>, vector<8x8x64xf32>
    %84 = arith.select %80, %45, %36 : vector<8x8x1xi1>, vector<8x8x1xf32>
    %cst_34 = arith.constant 1.000000e-30 : f32
    %85 = vector.broadcast %cst_34 : f32 to vector<8x8x1xf32>
    %86 = arith.maximumf %84, %85 : vector<8x8x1xf32>
    %87 = tpu.reciprocal %86 {approx = true} : vector<8x8x1xf32> -> vector<8x8x1xf32>
    %88 = vector.broadcast %87 : vector<8x8x1xf32> to vector<8x8x64xf32>
    %89 = arith.mulf %83, %88 : vector<8x8x64xf32>
    %cst_35 = arith.constant dense<0.000000e+00> : vector<8x8x8xf32>
    %90 = tpu.matmul %89, %26, %cst_35 {dimension_numbers = #tpu.dot_dimension_numbers<[2], [1], [1], [2], [0, 0, 0, 1, 1, 2], [0], [0]>} : vector<8x8x64xf32>, vector<8x64x8xf32>, vector<8x8x8xf32> -> vector<8x8x8xf32>
    %91 = vector.shape_cast %90 : vector<8x8x8xf32> to vector<2x4x8x8xf32>
    %92 = tpu.transpose %91, [0, 2, 1, 3] : vector<2x4x8x8xf32> -> vector<2x8x4x8xf32>
    %93 = vector.shape_cast %92 : vector<2x8x4x8xf32> to vector<16x32xf32>
    %c0_36 = arith.constant 0 : index
    %c0_37 = arith.constant 0 : index
    %94 = vector.load %arg5[%c0_36, %c0_37] : memref<32x32xf32, #tpu.memory_space<vmem>>, vector<32x32xf32>
    %cst_38 = arith.constant dense<0.000000e+00> : vector<16x32xf32>
    %95 = tpu.matmul %93, %94, %cst_38 {dimension_numbers = #tpu.dot_dimension_numbers<[1], [0], [0], [1], [0, 0, 1, 1], [], []>} : vector<16x32xf32>, vector<32x32xf32>, vector<16x32xf32> -> vector<16x32xf32>
    %c0_39 = arith.constant 0 : index
    %c0_40 = arith.constant 0 : index
    %96 = vector.load %arg7[%c0_39, %c0_40] : memref<3x32xf32, #tpu.memory_space<vmem>>, vector<1x32xf32>
    %97 = vector.broadcast %96 : vector<1x32xf32> to vector<16x32xf32>
    %98 = arith.addf %95, %97 : vector<16x32xf32>
    %99 = arith.addf %0, %98 : vector<16x32xf32>
    %cst_41 = arith.constant dense<0.000000e+00> : vector<16xf32>
    %100 = vector.multi_reduction <add>, %99, %cst_41 [1] : vector<16x32xf32> to vector<16xf32>
    %101 = vector.shape_cast %100 : vector<16xf32> to vector<16x1xf32>
    %cst_42 = arith.constant 3.200000e+01 : f32
    %102 = vector.broadcast %cst_42 : f32 to vector<16x1xf32>
    %103 = arith.divf %101, %102 : vector<16x1xf32>
    %104 = vector.broadcast %103 : vector<16x1xf32> to vector<16x32xf32>
    %105 = arith.subf %99, %104 : vector<16x32xf32>
    %106 = arith.mulf %105, %105 : vector<16x32xf32>
    %cst_43 = arith.constant dense<0.000000e+00> : vector<16xf32>
    %107 = vector.multi_reduction <add>, %106, %cst_43 [1] : vector<16x32xf32> to vector<16xf32>
    %108 = vector.shape_cast %107 : vector<16xf32> to vector<16x1xf32>
    %cst_44 = arith.constant 3.200000e+01 : f32
    %109 = vector.broadcast %cst_44 : f32 to vector<16x1xf32>
    %110 = arith.divf %108, %109 : vector<16x1xf32>
    %111 = vector.broadcast %103 : vector<16x1xf32> to vector<16x32xf32>
    %112 = arith.subf %99, %111 : vector<16x32xf32>
    %cst_45 = arith.constant 9.99999974E-6 : f32
    %113 = vector.broadcast %cst_45 : f32 to vector<16x1xf32>
    %114 = arith.addf %110, %113 : vector<16x1xf32>
    %115 = math.rsqrt %114 : vector<16x1xf32>
    %116 = vector.broadcast %115 : vector<16x1xf32> to vector<16x32xf32>
    %117 = arith.mulf %112, %116 : vector<16x32xf32>
    %c1 = arith.constant 1 : index
    %c0_46 = arith.constant 0 : index
    %118 = vector.load %arg7[%c1, %c0_46] : memref<3x32xf32, #tpu.memory_space<vmem>>, vector<1x32xf32>
    %119 = vector.broadcast %118 : vector<1x32xf32> to vector<16x32xf32>
    %120 = arith.mulf %117, %119 : vector<16x32xf32>
    %c2 = arith.constant 2 : index
    %c0_47 = arith.constant 0 : index
    %121 = vector.load %arg7[%c2, %c0_47] : memref<3x32xf32, #tpu.memory_space<vmem>>, vector<1x32xf32>
    %122 = vector.broadcast %121 : vector<1x32xf32> to vector<16x32xf32>
    %123 = arith.addf %120, %122 : vector<16x32xf32>
    %c0_48 = arith.constant 0 : index
    %c0_49 = arith.constant 0 : index
    %124 = vector.load %arg8[%c0_48, %c0_49] : memref<16x32xf32, #tpu.memory_space<vmem>>, vector<16x32xf32>
    tpu.vector_store %arg8[%c0_48, %c0_49], %123 {strides = array<i32>} : memref<16x32xf32, #tpu.memory_space<vmem>>, vector<16x32xf32>,
    return
  }
  func.func @transform_0(%arg0: i32) -> (i32, i32) {
    %c0_i32 = arith.constant 0 : i32
    %c0_i32_0 = arith.constant 0 : i32
    return %arg0, %c0_i32 : i32, i32
  }
  func.func @transform_1(%arg0: i32) -> (i32, i32) {
    %c0_i32 = arith.constant 0 : i32
    %c0_i32_0 = arith.constant 0 : i32
    return %arg0, %c0_i32 : i32, i32
  }
  func.func @transform_2(%arg0: i32) -> (i32, i32) {
    %c0_i32 = arith.constant 0 : i32
    %c0_i32_0 = arith.constant 0 : i32
    return %arg0, %c0_i32 : i32, i32
  }
  func.func @transform_3(%arg0: i32) -> (i32, i32) {
    %c0_i32 = arith.constant 0 : i32
    %c0_i32_0 = arith.constant 0 : i32
    %c0_i32_1 = arith.constant 0 : i32
    return %c0_i32, %c0_i32_0 : i32, i32
  }
  func.func @transform_4(%arg0: i32) -> (i32, i32) {
    %c0_i32 = arith.constant 0 : i32
    %c0_i32_0 = arith.constant 0 : i32
    %c0_i32_1 = arith.constant 0 : i32
    return %c0_i32, %c0_i32_0 : i32, i32
  }
  func.func @transform_5(%arg0: i32) -> (i32, i32) {
    %c0_i32 = arith.constant 0 : i32
    %c0_i32_0 = arith.constant 0 : i32
    %c0_i32_1 = arith.constant 0 : i32
    return %c0_i32, %c0_i32_0 : i32, i32
  }
  func.func @transform_6(%arg0: i32) -> (i32, i32) {
    %c0_i32 = arith.constant 0 : i32
    %c0_i32_0 = arith.constant 0 : i32
    %c0_i32_1 = arith.constant 0 : i32
    return %c0_i32, %c0_i32_0 : i32, i32
  }
  func.func @transform_7(%arg0: i32) -> (i32, i32) {
    %c0_i32 = arith.constant 0 : i32
    %c0_i32_0 = arith.constant 0 : i32
    return %arg0, %c0_i32 : i32, i32
  }
}

</mosaic_0001>

<bundles_post_ra>
// kernel: tpu_custom_call.1
= control target key start
LH: loop header
LB: loop body
LE: loop exit
PB: predicated region body
PF: predicated region fallthrough
CT: control target
= control target key end

     0   :  { %vm72_vm0 = vcmask 261120   ;;  %s8620_s28 = smov 96   ;;  %s11638_s0 = inlined_call_operand.vmem [shape: f32[16,32], index: 0, kind: input, shape index: {}]   ;;  %s11639_s1 = inlined_call_operand.vmem [shape: f32[128,32], index: 1, kind: input, shape index: {}]   ;;  %s11640_s2 = inlined_call_operand.vmem [shape: f32[128,32], index: 2, kind: input, shape index: {}]   ;;  %s11641_s3 = inlined_call_operand.vmem [shape: f32[32,96], index: 3, kind: input, shape index: {}]   ;;  %s11642_s4 = inlined_call_operand.vmem [shape: f32[32,32], index: 4, kind: input, shape index: {}]   ;;  %s11643_s5 = inlined_call_operand.vmem [shape: f32[1,96], index: 5, kind: input, shape index: {}]   ;;  %s11644_s6 = inlined_call_operand.vmem [shape: f32[3,32], index: 6, kind: input, shape index: {}]   ;;  %s11645_s7 = inlined_call_operand.hbm [shape: f32[16,32], index: 7, kind: output, shape index: {}]  }
   0x1   :  { %v64_v0 = vld [vmem:[%s11641_s3 + $0x18] sm:$0xff]  ;;  %v62_v1 = vld [vmem:[%s11641_s3 + $0x8] sm:$0xff]  ;;  %v29_v2 = vld [vmem:[%s11639_s1] sm:$0xff] }
   0x2   :  { %164 = vrot.lane.b32.xlu0 %v64_v0, %s8620_s28  ;;  %160 = vrot.lane.b32.xlu1 %v62_v1, %s8620_s28  ;;  %v63_v3 = vld [vmem:[%s11641_s3 + $0x10] sm:$0xff]  ;;  %v61_v4 = vld [vmem:[%s11641_s3] sm:$0xff] }
   0x3   :  { %8175 = vmatprep.mubr.msk.f32.mxu1 %vm72_vm0, %v29_v2  ;;  %8156 = vmatprep.subr.mxu0 %v64_v0 }
   0x4   :  { %8157 = vmatpush3.msra.mxu0 %v64_v0 }
   0x5   :  { %12 = vsyncpa [#allocation3], 0  ;;  %8158 = vmatprep.subr.mxu0 %v63_v3  ;;  %v27_v5 = vld [vmem:[%s11638_s0] sm:$0xff]  ;;  %v28_v6 = vld [vmem:[%s11638_s0 + $0x8] sm:$0xff]  ;;  %s8621_s17 = smov 64   ;;  %s8622_s29 = smov 120  }
   0x6   :  { %162 = vrot.lane.b32.xlu0 %v63_v3, %s8620_s28  ;;  %158 = vrot.lane.b32.xlu1 %v61_v4, %s8620_s28  ;;  %v8699_v7 = vld [vmem:[%s11643_s5] ss:$0 sm:$0xff]  ;;  %v30_v12 = vld [vmem:[%s11639_s1 + $0x8] sm:$0xff]  ;;  %s8624_s30 = smov 104   ;;  %v11651_v62 = vmov 0.0   ;;  %vm8626_vm1 = vmmov 0  }
   0x7   :  { %8159 = vmatpush3.msra.mxu0 %v63_v3  ;;  %8164 = vmatprep.mubr.msk.f32.mxu0 %vm72_vm0, %v27_v5  ;;  %v31_v13 = vld [vmem:[%s11639_s1 + $0x10] sm:$0xff]  ;;  %v32_v14 = vld [vmem:[%s11639_s1 + $0x18] sm:$0xff]  ;;  %v33_v15 = vld [vmem:[%s11639_s1 + $0x20] sm:$0xff]  ;;  %vm5538_vm2 = vcmask 64512   ;;  %vm6323_vm3 = vcmask 523264   ;;  %s8629_s9 = smov 8  }
   0x8   :  { %8160 = vmatprep.subr.mxu0 %v62_v1  ;;  %v34_v16 = vld [vmem:[%s11639_s1 + $0x28] sm:$0xff]  ;;  %v35_v17 = vld [vmem:[%s11639_s1 + $0x30] sm:$0xff]  ;;  %v36_v18 = vld [vmem:[%s11639_s1 + $0x38] sm:$0xff]  ;;  %s8630_s10 = smov 16  }
   0x9   :  { %8161 = vmatpush3.msra.mxu0 %v62_v1  ;;  %v37_v19 = vld [vmem:[%s11639_s1 + $0x40] sm:$0xff]  ;;  %v38_v20 = vld [vmem:[%s11639_s1 + $0x48] sm:$0xff]  ;;  %v39_v21 = vld [vmem:[%s11639_s1 + $0x50] sm:$0xff] }
   0xa   :  { %8162 = vmatprep.subr.mxu0 %v61_v4  ;;  %170 = vrot.lane.b32.xlu0 %v8699_v7, %s8620_s28  ;;  %v40_v22 = vld [vmem:[%s11639_s1 + $0x58] sm:$0xff]  ;;  %v41_v23 = vld [vmem:[%s11639_s1 + $0x60] sm:$0xff]  ;;  %v42_v24 = vld [vmem:[%s11639_s1 + $0x68] sm:$0xff] }
   0xb   :  { %8163 = vmatpush3.msra.mxu0 %v61_v4  ;;  %370 = vrot.lane.b32.xlu1 %v63_v3, %s8621_s17  ;;  %v43_v25 = vld [vmem:[%s11639_s1 + $0x70] sm:$0xff]  ;;  %v44_v26 = vld [vmem:[%s11639_s1 + $0x78] sm:$0xff]  ;;  %v45_v32 = vld [vmem:[%s11640_s2] sm:$0xff]  ;;  %s8632_s1 = smov [#allocation2]  }
   0xc   :  { %8165 = vmatmul.mubr.msk.f32.vlgmr.msra.gmra.mxu0 %vm72_vm0, %v28_v6  ;;  %v46_v33 = vld [vmem:[%s11640_s2 + $0x8] sm:$0xff]  ;;  %v47_v34 = vld [vmem:[%s11640_s2 + $0x10] sm:$0xff]  ;;  %v48_v35 = vld [vmem:[%s11640_s2 + $0x18] sm:$0xff]  ;;  %s7757_s25 = sshll.u32 %s8632_s1, 4  ;;  %s7758_s25 = int_to_ptr.vmem [resolvable:$true] %s7757_s25 }
   0xd   :  { %8207 = vmatprep.mubr.msk.f32.mxu0 %vm72_vm0, %v45_v32  ;;  %v49_v36 = vld [vmem:[%s11640_s2 + $0x20] sm:$0xff]  ;;  %v50_v37 = vld [vmem:[%s11640_s2 + $0x28] sm:$0xff]  ;;  %v51_v38 = vld [vmem:[%s11640_s2 + $0x30] sm:$0xff]  ;;  %s8598_s26 = scalar_lea.vmem %s7758_s25, 256  ;;  %p8603_p1 = scmp.lt.s32.totalorder %s7758_s25, %s7758_s25 }
   0xe   :  { %372 = vrot.lane.b32.xlu0 %v64_v0, %s8621_s17  ;;  %v52_v39 = vld [vmem:[%s11640_s2 + $0x38] sm:$0xff]  ;;  %v53_v40 = vld [vmem:[%s11640_s2 + $0x40] sm:$0xff]  ;;  %v54_v41 = vld [vmem:[%s11640_s2 + $0x48] sm:$0xff]  ;;  %p8599_p0 = scmp.ne.s32.totalorder %s7758_s25, %s8598_s26  ;;  %p8604_p2 = scmp.lt.s32.totalorder %s8598_s26, %s8598_s26 }
   0xf   :  { %368 = vrot.lane.b32.xlu1 %v62_v1, %s8621_s17  ;;  %v55_v42 = vld [vmem:[%s11640_s2 + $0x50] sm:$0xff]  ;;  %v56_v43 = vld [vmem:[%s11640_s2 + $0x58] sm:$0xff]  ;;  %v57_v44 = vld [vmem:[%s11640_s2 + $0x60] sm:$0xff] }
  0x10   :  { %v58_v45 = vld [vmem:[%s11640_s2 + $0x68] sm:$0xff]  ;;  %v59_v46 = vld [vmem:[%s11640_s2 + $0x70] sm:$0xff]  ;;  %v60_v47 = vld [vmem:[%s11640_s2 + $0x78] sm:$0xff]  ;;  %s8623_s2 = smov 112   ;;  %p8605_p3 = por %p8604_p2, %p8603_p1 }
  0x12   :  { %366 = vrot.lane.b32.xlu0 %v61_v4, %s8621_s17  ;;  %p8606_p4 = pnand %p8605_p3, %p8599_p0 }
  0x74   :  { %v165_v8 = vpop.permute.xlu0 %164  ;;  %v161_v9 = vpop.permute.xlu1 %160 }
  0x75   :  { %8167 = vmatprep.subr.mxu1 %v165_v8 }
  0x76   :  { %8168 = vmatpush3.msra.mxu1 %v165_v8 }
  0x78   :  { %v163_v10 = vpop.permute.xlu0 %162  ;;  %v159_v11 = vpop.permute.xlu1 %158 }
  0x79   :  { %8169 = vmatprep.subr.mxu1 %v163_v10 }
  0x7a   :  { %8170 = vmatpush3.msra.mxu1 %v163_v10 }
  0x7b   :  { %8171 = vmatprep.subr.mxu1 %v161_v9 }
  0x7c   :  { %8172 = vmatpush3.msra.mxu1 %v161_v9  ;;  %v8768_v27 = vpop.permute.xlu0 %170 }
  0x7d   :  { %8173 = vmatprep.subr.mxu1 %v159_v11  ;;  %v371_v29 = vpop.permute.xlu1 %370 }
  0x7e   :  { %8174 = vmatpush3.msra.mxu1 %v159_v11 }
  0x7f   :  { %8176 = vmatmul.mubr.msk.f32.vlgmr.msra.gmra.mxu1 %vm72_vm0, %v30_v12  ;;  %8231 = vmatprep.subr.mxu1 %v11651_v62 }
  0x80   :  { %8178 = vmatprep.mubr.msk.f32.mxu1 %vm72_vm0, %v31_v13  ;;  %v373_v28 = vpop.permute.xlu0 %372 }
  0x81   :  { %8199 = vmatprep.subr.mxu0 %v373_v28  ;;  %v369_v30 = vpop.permute.xlu1 %368 }
  0x82   :  { %8200 = vmatpush3.msra.mxu0 %v373_v28 }
  0x83   :  { %8179 = vmatmul.mubr.msk.f32.gmra.mxu1 %vm72_vm0, %v32_v14  ;;  %8201 = vmatprep.subr.mxu0 %v371_v29 }
  0x84   :  { %8181 = vmatprep.mubr.msk.f32.mxu1 %vm72_vm0, %v33_v15  ;;  %8202 = vmatpush3.msra.mxu0 %v371_v29  ;;  %v367_v31 = vpop.permute.xlu0 %366 }
  0x85   :  { %8203 = vmatprep.subr.mxu0 %v369_v30 }
  0x86   :  { %8204 = vmatpush3.msra.mxu0 %v369_v30  ;;  %v8628_v30 = vmov 1934713408  }
  0x87   :  { %8182 = vmatmul.mubr.msk.f32.gmra.mxu1 %vm72_vm0, %v34_v16  ;;  %8205 = vmatprep.subr.mxu0 %v367_v31 }
  0x88   :  { %8184 = vmatprep.mubr.msk.f32.mxu1 %vm72_vm0, %v35_v17  ;;  %8206 = vmatpush3.msra.mxu0 %v367_v31  ;;  %v629_v31 = vunpack.c.l.s4 %v8628_v30 }
  0x89   :  { %8208 = vmatmul.mubr.msk.f32.vlgmr.msra.gmra.mxu0 %vm72_vm0, %v46_v33  ;;  %8250 = vmatprep.subr.mxu0 %v11651_v62 }
  0x8a   :  { %8210 = vmatprep.mubr.msk.f32.mxu0 %vm72_vm0, %v47_v34 }
  0x8b   :  { %8185 = vmatmul.mubr.msk.f32.gmra.mxu1 %vm72_vm0, %v36_v18 }
  0x8c   :  { %8187 = vmatprep.mubr.msk.f32.mxu1 %vm72_vm0, %v37_v19 }
  0x8d   :  { %8211 = vmatmul.mubr.msk.f32.gmra.mxu0 %vm72_vm0, %v48_v35 }
  0x8e   :  { %8213 = vmatprep.mubr.msk.f32.mxu0 %vm72_vm0, %v49_v36  ;;  %v630_v36 = vunpack.c.0.s8 %v629_v31 }
  0x8f   :  { %8188 = vmatmul.mubr.msk.f32.gmra.mxu1 %vm72_vm0, %v38_v20 }
  0x90   :  { %8190 = vmatprep.mubr.msk.f32.mxu1 %vm72_vm0, %v39_v21 }
  0x91   :  { %8214 = vmatmul.mubr.msk.f32.gmra.mxu0 %vm72_vm0, %v50_v37 }
  0x92   :  { %8216 = vmatprep.mubr.msk.f32.mxu0 %vm72_vm0, %v51_v38 }
  0x93   :  { %8191 = vmatmul.mubr.msk.f32.gmra.mxu1 %vm72_vm0, %v40_v22 }
  0x94   :  { %8193 = vmatprep.mubr.msk.f32.mxu1 %vm72_vm0, %v41_v23  ;;  %v8627_v23 = vmov 1983009808  }
  0x95   :  { %8217 = vmatmul.mubr.msk.f32.gmra.mxu0 %vm72_vm0, %v52_v39 }
  0x96   :  { %8219 = vmatprep.mubr.msk.f32.mxu0 %vm72_vm0, %v53_v40 }
  0x97   :  { %8194 = vmatmul.mubr.msk.f32.gmra.mxu1 %vm72_vm0, %v42_v24  ;;  %v597_v24 = vunpack.c.l.s4 %v8627_v23 }
  0x98   :  { %8196 = vmatprep.mubr.msk.f32.mxu1 %vm72_vm0, %v43_v25  ;;  %v11646_v25 = vlaneseq }
  0x99   :  { %8220 = vmatmul.mubr.msk.f32.gmra.mxu0 %vm72_vm0, %v54_v41 }
  0x9a   :  { %8222 = vmatprep.mubr.msk.f32.mxu0 %vm72_vm0, %v55_v42 }
  0x9b   :  { %8197 = vmatmul.mubr.msk.f32.gmra.mxu1 %vm72_vm0, %v44_v26  ;;  %v598_v26 = vunpack.c.0.s8 %v597_v24 }
  0x9c   :  { %8247 = vmatprep.mubr.msk.f32.mxu1 %vm8626_vm1, %v11651_v62 }
  0x9d   :  { %8223 = vmatmul.mubr.msk.f32.gmra.mxu0 %vm72_vm0, %v56_v43 }
  0x9e   :  { %8225 = vmatprep.mubr.msk.f32.mxu0 %vm72_vm0, %v57_v44 }
  0xa1   :  { %8226 = vmatmul.mubr.msk.f32.gmra.mxu0 %vm72_vm0, %v58_v45 }
  0xa2   :  { %8228 = vmatprep.mubr.msk.f32.mxu0 %vm72_vm0, %v59_v46 }
  0xa5   :  { %8229 = vmatmul.mubr.msk.f32.gmra.mxu0 %vm72_vm0, %v60_v47 }
  0xa6   :  { %8266 = vmatprep.mubr.msk.f32.mxu0 %vm8626_vm1, %v11651_v62 }
  0xcc   :  { %v8166_v2 = vpop.f32.mrf.mxu0 }
  0xcd   :  { %v8994_v21 = vadd.f32 %v8166_v2, %v8699_v7 }
  0xce   :  { %v145_v5 = vpop.f32.mrf.mxu0 }
  0xcf   :  { %v8907_v6 = vadd.f32 %v8699_v7, %v145_v5  ;;  %11732 = vst [vmem:[#allocation7_spill] sm:$0xff] %v8994_v21 }
 0x13f   :  { %v8177_v48 = vpop.f32.mrf.mxu1 }
 0x140   :  { %v8889_v63 = vadd.f32 %v8177_v48, %v8768_v27 }
 0x141   :  { %v287_v49 = vpop.f32.mrf.mxu1 }
 0x142   :  { %v8900_v3 = vadd.f32 %v287_v49, %v8768_v27 }
 0x143   :  { %v8180_v50 = vpop.f32.mrf.mxu1 }
 0x144   :  { %v8835_v51 = vadd.f32 %v8180_v50, %v8768_v27 }
 0x145   :  { %v297_v52 = vpop.f32.mrf.mxu1 }
 0x146   :  { %888 = vrot.lane.b32.xlu1 %v8835_v51, %s8622_s29  ;;  %v8880_v61 = vadd.f32 %v297_v52, %v8768_v27 }
 0x147   :  { %v8183_v53 = vpop.f32.mrf.mxu1 }
 0x148   :  { %v8840_v54 = vadd.f32 %v8183_v53, %v8768_v27 }
 0x149   :  { %v307_v55 = vpop.f32.mrf.mxu1 }
 0x14a   :  { %940 = vrot.lane.b32.xlu0 %v8840_v54, %s8623_s2  ;;  %892 = vrot.lane.b32.xlu1 %v8840_v54, %s8622_s29  ;;  %v8847_v56 = vadd.f32 %v307_v55, %v8768_v27 }
 0x14b   :  { %v8186_v57 = vpop.f32.mrf.mxu1 }
 0x14c   :  { %v8858_v58 = vadd.f32 %v8186_v57, %v8768_v27 }
 0x14d   :  { %v317_v59 = vpop.f32.mrf.mxu1 }
 0x14e   :  { %988 = vrot.lane.b32.xlu1 %v8840_v54, %s8624_s30  ;;  %890 = vrot.lane.b32.xlu0 %v8847_v56, %s8622_s29  ;;  %v8865_v60 = vadd.f32 %v317_v59, %v8768_v27 }
 0x14f   :  { %v8189_v0 = vpop.f32.mrf.mxu1 }
 0x150   :  { %v8976_v19 = vadd.f32 %v8189_v0, %v8768_v27 }
 0x151   :  { %v327_v1 = vpop.f32.mrf.mxu1 }
 0x152   :  { %938 = vrot.lane.b32.xlu1 %v8847_v56, %s8623_s2  ;;  %986 = vrot.lane.b32.xlu0 %v8847_v56, %s8624_s30  ;;  %11730 = vst [vmem:[#allocation5_spill] sm:$0xff] %v8976_v19  ;;  %v8983_v20 = vadd.f32 %v327_v1, %v8768_v27 }
 0x153   :  { %v8192_v4 = vpop.f32.mrf.mxu1 }
 0x154   :  { %v8918_v10 = vadd.f32 %v8192_v4, %v8768_v27  ;;  %11731 = vst [vmem:[#allocation6_spill] sm:$0xff] %v8983_v20 }
 0x155   :  { %v337_v8 = vpop.f32.mrf.mxu1 }
 0x156   :  { %896 = vrot.lane.b32.xlu1 %v8858_v58, %s8622_s29  ;;  %944 = vrot.lane.b32.xlu0 %v8858_v58, %s8623_s2  ;;  %v8961_v18 = vadd.f32 %v337_v8, %v8768_v27 }
 0x157   :  { %v8195_v9 = vpop.f32.mrf.mxu1 }
 0x158   :  { %v8921_v11 = vadd.f32 %v8195_v9, %v8768_v27 }
 0x159   :  { %v347_v12 = vpop.f32.mrf.mxu1 }
 0x15a   :  { %992 = vrot.lane.b32.xlu1 %v8858_v58, %s8624_s30  ;;  %894 = vrot.lane.b32.xlu0 %v8865_v60, %s8622_s29  ;;  %v8928_v13 = vadd.f32 %v347_v12, %v8768_v27 }
 0x15b   :  { %v8198_v14 = vpop.f32.mrf.mxu1 }
 0x15c   :  { %v8939_v15 = vadd.f32 %v8198_v14, %v8768_v27 }
 0x15d   :  { %v357_v16 = vpop.f32.mrf.mxu1 }
 0x15e   :  { %942 = vrot.lane.b32.xlu1 %v8865_v60, %s8623_s2  ;;  %990 = vrot.lane.b32.xlu0 %v8865_v60, %s8624_s30  ;;  %v8946_v17 = vadd.f32 %v357_v16, %v8768_v27  ;;  %v600_v27 = vshrl.u32 %v11646_v25, 7 }
 0x160   :  { %v9007_v32 = vsub.s32 %v598_v26, %v600_v27  ;;  %v9015_v45 = vsub.s32 %v630_v36, %v600_v27 }
 0x162   :  { %984 = vrot.lane.b32.xlu1 %v8835_v51, %s8624_s30  ;;  %936 = vrot.lane.b32.xlu0 %v8835_v51, %s8623_s2 }
 0x166   :  { %934 = vrot.lane.b32.xlu1 %v8880_v61, %s8623_s2  ;;  %886 = vrot.lane.b32.xlu0 %v8880_v61, %s8622_s29 }
 0x16a   :  { %884 = vrot.lane.b32.xlu1 %v8889_v63, %s8622_s29  ;;  %982 = vrot.lane.b32.xlu0 %v8880_v61, %s8624_s30 }
 0x16e   :  { %980 = vrot.lane.b32.xlu1 %v8889_v63, %s8624_s30  ;;  %932 = vrot.lane.b32.xlu0 %v8889_v63, %s8623_s2 }
 0x172   :  { %930 = vrot.lane.b32.xlu1 %v8900_v3, %s8623_s2  ;;  %882 = vrot.lane.b32.xlu0 %v8900_v3, %s8622_s29 }
 0x176   :  { %978 = vrot.lane.b32.xlu0 %v8900_v3, %s8624_s30  ;;  %576 = vrot.lane.b32.xlu1 %v8907_v6, %s8622_s29 }
 0x17a   :  { %582 = vrot.lane.b32.xlu0 %v8907_v6, %s8623_s2  ;;  %588 = vrot.lane.b32.xlu1 %v8907_v6, %s8624_s30 }
 0x17e   :  { %904 = vrot.lane.b32.xlu0 %v8918_v10, %s8622_s29  ;;  %956 = vrot.lane.b32.xlu1 %v8921_v11, %s8623_s2 }
 0x182   :  { %908 = vrot.lane.b32.xlu0 %v8921_v11, %s8622_s29  ;;  %906 = vrot.lane.b32.xlu1 %v8928_v13, %s8622_s29 }
 0x186   :  { %1004 = vrot.lane.b32.xlu0 %v8921_v11, %s8624_s30  ;;  %1002 = vrot.lane.b32.xlu1 %v8928_v13, %s8624_s30 }
 0x18a   :  { %954 = vrot.lane.b32.xlu0 %v8928_v13, %s8623_s2  ;;  %960 = vrot.lane.b32.xlu1 %v8939_v15, %s8623_s2 }
 0x18e   :  { %912 = vrot.lane.b32.xlu0 %v8939_v15, %s8622_s29  ;;  %910 = vrot.lane.b32.xlu1 %v8946_v17, %s8622_s29 }
 0x192   :  { %1008 = vrot.lane.b32.xlu0 %v8939_v15, %s8624_s30  ;;  %1006 = vrot.lane.b32.xlu1 %v8946_v17, %s8624_s30 }
 0x196   :  { %958 = vrot.lane.b32.xlu0 %v8946_v17, %s8623_s2  ;;  %952 = vrot.lane.b32.xlu1 %v8918_v10, %s8623_s2 }
 0x19a   :  { %1000 = vrot.lane.b32.xlu0 %v8918_v10, %s8624_s30  ;;  %902 = vrot.lane.b32.xlu1 %v8961_v18, %s8622_s29 }
 0x19e   :  { %950 = vrot.lane.b32.xlu0 %v8961_v18, %s8623_s2  ;;  %998 = vrot.lane.b32.xlu1 %v8961_v18, %s8624_s30 }
 0x1a2   :  { %900 = vrot.lane.b32.xlu0 %v8976_v19, %s8622_s29  ;;  %948 = vrot.lane.b32.xlu1 %v8976_v19, %s8623_s2 }
 0x1a6   :  { %996 = vrot.lane.b32.xlu0 %v8976_v19, %s8624_s30  ;;  %898 = vrot.lane.b32.xlu1 %v8983_v20, %s8622_s29 }
 0x1aa   :  { %946 = vrot.lane.b32.xlu0 %v8983_v20, %s8623_s2  ;;  %994 = vrot.lane.b32.xlu1 %v8983_v20, %s8624_s30 }
 0x1ae   :  { %578 = vrot.lane.b32.xlu0 %v8994_v21, %s8622_s29  ;;  %584 = vrot.lane.b32.xlu1 %v8994_v21, %s8623_s2 }
 0x1b2   :  { %590 = vrot.lane.b32.xlu0 %v8994_v21, %s8624_s30 }
 0x1b6   :  { %378 = vrot.lane.b32.xlu0 %v8699_v7, %s8621_s17 }
 0x1b8   :  { %v9004_v22 = vpop.permute.xlu1 %888 }
 0x1bc   :  { %v941_v28 = vpop.permute.xlu0 %940  ;;  %v893_v29 = vpop.permute.xlu1 %892 }
 0x1bd   :  { %v1366_v33 = vcombine.low %v8840_v54, %v941_v28  ;;  %v1367_v7 = vcombine.high %v8840_v54, %v941_v28 }
 0x1bf   :  { %v1374_v40 = vrot.slane %v1366_v33, %v9007_v32  ;;  %v1381_v44 = vrot.slane %v1367_v7, %v9007_v32 }
 0x1c0   :  { %v989_v34 = vpop.permute.xlu1 %988  ;;  %v891_v35 = vpop.permute.xlu0 %890 }
 0x1c1   :  { %v1382_v37 = vcombine.low %v893_v29, %v989_v34  ;;  %v1383_v38 = vcombine.high %v893_v29, %v989_v34 }
 0x1c3   :  { %v1390_v39 = vrot.slane %v1382_v37, %v9007_v32  ;;  %v1397_v41 = vrot.slane %v1383_v38, %v9007_v32 }
 0x1c4   :  { %v939_v42 = vpop.permute.xlu1 %938  ;;  %v987_v43 = vpop.permute.xlu0 %986 }
 0x1c5   :  { %v1398_v46 = vcombine.low %v1374_v40, %v1390_v39  ;;  %v1399_v47 = vcombine.high %v1374_v40, %v1390_v39  ;;  %v1298_v48 = vcombine.low %v8847_v56, %v939_v42  ;;  %v1314_v49 = vcombine.low %v891_v35, %v987_v43 }
 0x1c6   :  { %v1414_v50 = vcombine.low %v1381_v44, %v1397_v41  ;;  %v1415_v52 = vcombine.high %v1381_v44, %v1397_v41  ;;  %v1299_v53 = vcombine.high %v8847_v56, %v939_v42  ;;  %v1315_v54 = vcombine.high %v891_v35, %v987_v43 }
 0x1c7   :  { %v1406_v59 = vrot.slane %v1398_v46, %v9015_v45  ;;  %v1413_v0 = vrot.slane %v1399_v47, %v9015_v45  ;;  %v1306_v1 = vrot.slane %v1298_v48, %v9007_v32  ;;  %v1322_v2 = vrot.slane %v1314_v49, %v9007_v32 }
 0x1c8   :  { %v897_v55 = vpop.permute.xlu1 %896  ;;  %v945_v57 = vpop.permute.xlu0 %944  ;;  %v1422_v4 = vrot.slane %v1414_v50, %v9015_v45  ;;  %v1429_v5 = vrot.slane %v1415_v52, %v9015_v45  ;;  %v1313_v8 = vrot.slane %v1299_v53, %v9007_v32  ;;  %v1329_v9 = vrot.slane %v1315_v54, %v9007_v32 }
 0x1c9   :  { %v2454_v14 = vcombine.low %v1406_v59, %v1413_v0  ;;  %v7817_v16 = vcombine.high %v1406_v59, %v1413_v0  ;;  %v1330_v23 = vcombine.low %v1306_v1, %v1322_v2  ;;  %v1331_v24 = vcombine.high %v1306_v1, %v1322_v2 }
 0x1ca   :  { %v1502_v26 = vcombine.low %v8858_v58, %v945_v57  ;;  %v1503_v27 = vcombine.high %v8858_v58, %v945_v57  ;;  %v2470_v30 = vcombine.low %v1422_v4, %v1429_v5  ;;  %v1346_v31 = vcombine.low %v1313_v8, %v1329_v9 }
 0x1cb   :  { %v1347_v35 = vcombine.high %v1313_v8, %v1329_v9  ;;  %v9033_v38 = vrot.slane %v2454_v14, %v9007_v32  ;;  %v9036_v39 = vrot.slane %v7817_v16, %v9007_v32  ;;  %v7818_v58 = vcombine.high %v1422_v4, %v1429_v5 }
 0x1cc   :  { %v993_v56 = vpop.permute.xlu1 %992  ;;  %v895_v12 = vpop.permute.xlu0 %894  ;;  %v1510_v7 = vrot.slane %v1502_v26, %v9007_v32  ;;  %v1338_v40 = vrot.slane %v1330_v23, %v9015_v45  ;;  %v1345_v41 = vrot.slane %v1331_v24, %v9015_v45  ;;  %v1517_v42 = vrot.slane %v1503_v27, %v9007_v32 }
 0x1cd   :  { %v1518_v28 = vcombine.low %v897_v55, %v993_v56  ;;  %v1519_v29 = vcombine.high %v897_v55, %v993_v56  ;;  %v9044_v52 = vrot.slane %v1346_v31, %v9015_v45  ;;  %v9047_v53 = vrot.slane %v1347_v35, %v9015_v45 }
 0x1ce   :  { %v2386_v2 = vcombine.low %v1338_v40, %v1345_v41  ;;  %v7815_v4 = vcombine.high %v1338_v40, %v1345_v41  ;;  %v9056_v16 = vrot.slane %v2470_v30, %v9007_v32  ;;  %v9059_v23 = vrot.slane %v7818_v58, %v9007_v32 }
 0x1cf   :  { %v1526_v36 = vrot.slane %v1518_v28, %v9007_v32  ;;  %v1533_v37 = vrot.slane %v1519_v29, %v9007_v32  ;;  %v2486_v26 = vcombine.low %v9033_v38, %v9036_v39  ;;  %v2402_v27 = vcombine.low %v9044_v52, %v9047_v53 }
 0x1d0   :  { %v943_v33 = vpop.permute.xlu1 %942  ;;  %v991_v34 = vpop.permute.xlu0 %990  ;;  %v9068_v31 = vrot.slane %v2386_v2, %v9007_v32  ;;  %v9071_v30 = vrot.slane %v7815_v4, %v9007_v32 }
 0x1d1   :  { %v1534_v43 = vcombine.low %v1510_v7, %v1526_v36  ;;  %v1535_v44 = vcombine.high %v1510_v7, %v1526_v36  ;;  %v1434_v46 = vcombine.low %v8865_v60, %v943_v33  ;;  %v1435_v47 = vcombine.high %v8865_v60, %v943_v33 }
 0x1d2   :  { %v1450_v48 = vcombine.low %v895_v12, %v991_v34  ;;  %v1451_v49 = vcombine.high %v895_v12, %v991_v34  ;;  %v1550_v54 = vcombine.low %v1517_v42, %v1533_v37  ;;  %v1551_v55 = vcombine.high %v1517_v42, %v1533_v37 }
 0x1d3   :  { %v1442_v59 = vrot.slane %v1434_v46, %v9007_v32  ;;  %v1449_v0 = vrot.slane %v1435_v47, %v9007_v32  ;;  %v1542_v5 = vrot.slane %v1534_v43, %v9015_v45  ;;  %v1549_v8 = vrot.slane %v1535_v44, %v9015_v45 }
 0x1d4   :  { %v937_v50 = vpop.permute.xlu0 %936  ;;  %v985_v57 = vpop.permute.xlu1 %984  ;;  %v1458_v1 = vrot.slane %v1450_v48, %v9007_v32  ;;  %v1465_v60 = vrot.slane %v1451_v49, %v9007_v32  ;;  %v1558_v28 = vrot.slane %v1550_v54, %v9015_v45  ;;  %v1565_v29 = vrot.slane %v1551_v55, %v9015_v45 }
 0x1d5   :  { %v7816_v33 = vcombine.high %v9044_v52, %v9047_v53  ;;  %v2590_v34 = vcombine.low %v1542_v5, %v1549_v8  ;;  %v1246_v40 = vcombine.low %v9004_v22, %v985_v57  ;;  %v1247_v41 = vcombine.high %v9004_v22, %v985_v57 }
 0x1d6   :  { %v1466_v9 = vcombine.low %v1442_v59, %v1458_v1  ;;  %v1467_v56 = vcombine.high %v1442_v59, %v1458_v1  ;;  %v1482_v12 = vcombine.low %v1449_v0, %v1465_v60  ;;  %v1483_v14 = vcombine.high %v1449_v0, %v1465_v60 }
 0x1d7   :  { %v1230_v42 = vcombine.low %v8835_v51, %v937_v50  ;;  %v1231_v43 = vcombine.high %v8835_v51, %v937_v50  ;;  %v9084_v44 = vrot.slane %v2402_v27, %v9007_v32  ;;  %v7821_v46 = vcombine.high %v1542_v5, %v1549_v8 }
 0x1d8   :  { %v887_v24 = vpop.permute.xlu0 %886  ;;  %v935_v35 = vpop.permute.xlu1 %934  ;;  %v1474_v7 = vrot.slane %v1466_v9, %v9015_v45  ;;  %v1481_v36 = vrot.slane %v1467_v56, %v9015_v45  ;;  %v1490_v37 = vrot.slane %v1482_v12, %v9015_v45  ;;  %v1497_v58 = vrot.slane %v1483_v14, %v9015_v45 }
 0x1d9   :  { %v2606_v47 = vcombine.low %v1558_v28, %v1565_v29  ;;  %v7822_v48 = vcombine.high %v1558_v28, %v1565_v29  ;;  %v1254_v49 = vrot.slane %v1246_v40, %v9007_v32  ;;  %v1261_v52 = vrot.slane %v1247_v41, %v9007_v32 }
 0x1da   :  { %v1238_v53 = vrot.slane %v1230_v42, %v9007_v32  ;;  %v1245_v54 = vrot.slane %v1231_v43, %v9007_v32  ;;  %v9091_v22 = vrot.slane %v2590_v34, %v9007_v32  ;;  %v2522_v57 = vcombine.low %v1474_v7, %v1481_v36 }
 0x1db   :  { %v7819_v51 = vcombine.high %v1474_v7, %v1481_v36  ;;  %v2538_v50 = vcombine.low %v1490_v37, %v1497_v58  ;;  %v7820_v4 = vcombine.high %v1490_v37, %v1497_v58  ;;  %v1162_v5 = vcombine.low %v8880_v61, %v935_v35 }
 0x1dc   :  { %v983_v55 = vpop.permute.xlu0 %982  ;;  %v1262_v59 = vcombine.low %v1238_v53, %v1254_v49  ;;  %v1263_v0 = vcombine.high %v1238_v53, %v1254_v49  ;;  %v1278_v1 = vcombine.low %v1245_v54, %v1261_v52  ;;  %v1279_v60 = vcombine.high %v1245_v54, %v1261_v52  ;;  %v885_v2 = vpop.permute.xlu1 %884 }
 0x1dd   :  { %v1178_v8 = vcombine.low %v887_v24, %v983_v55  ;;  %v1179_v9 = vcombine.high %v887_v24, %v983_v55  ;;  %v9095_v56 = vrot.slane %v7821_v46, %v9007_v32  ;;  %v9098_v12 = vrot.slane %v2606_v47, %v9007_v32 }
 0x1de   :  { %v9101_v14 = vrot.slane %v7822_v48, %v9007_v32  ;;  %v1163_v27 = vcombine.high %v8880_v61, %v935_v35  ;;  %v9105_v28 = vrot.slane %v7816_v33, %v9007_v32  ;;  %v1270_v29 = vrot.slane %v1262_v59, %v9015_v45 }
 0x1df   :  { %v1277_v34 = vrot.slane %v1263_v0, %v9015_v45  ;;  %v1186_v24 = vrot.slane %v1178_v8, %v9007_v32  ;;  %v9111_v7 = vrot.slane %v2522_v57, %v9007_v32  ;;  %v9114_v36 = vrot.slane %v7819_v51, %v9007_v32 }
 0x1e0   :  { %v1286_v37 = vrot.slane %v1278_v1, %v9015_v45  ;;  %v1293_v61 = vrot.slane %v1279_v60, %v9015_v45  ;;  %v933_v35 = vpop.permute.xlu0 %932  ;;  %v9119_v33 = vrot.slane %v2538_v50, %v9007_v32  ;;  %v9122_v58 = vrot.slane %v7820_v4, %v9007_v32  ;;  %v981_v48 = vpop.permute.xlu1 %980 }
 0x1e1   :  { %v1170_v40 = vrot.slane %v1162_v5, %v9007_v32  ;;  %v1193_v41 = vrot.slane %v1179_v9, %v9007_v32  ;;  %v2502_v42 = vcombine.low %v9056_v16, %v9059_v23  ;;  %v2622_v43 = vcombine.low %v9091_v22, %v9095_v56 }
 0x1e2   :  { %v2638_v46 = vcombine.low %v9098_v12, %v9101_v14  ;;  %v1177_v47 = vrot.slane %v1163_v27, %v9007_v32  ;;  %v2318_v49 = vcombine.low %v1270_v29, %v1277_v34  ;;  %v7813_v52 = vcombine.high %v1270_v29, %v1277_v34 }
 0x1e3   :  { %v1194_v53 = vcombine.low %v1170_v40, %v1186_v24  ;;  %v1195_v54 = vcombine.high %v1170_v40, %v1186_v24  ;;  %v2418_v55 = vcombine.low %v9068_v31, %v9071_v30  ;;  %v2334_v51 = vcombine.low %v1286_v37, %v1293_v61 }
 0x1e4   :  { %v7814_v50 = vcombine.high %v1286_v37, %v1293_v61  ;;  %v2554_v59 = vcombine.low %v9111_v7, %v9114_v36  ;;  %v2570_v0 = vcombine.low %v9119_v33, %v9122_v58  ;;  %v1210_v1 = vcombine.low %v1177_v47, %v1193_v41  ;;  %v883_v27 = vpop.permute.xlu0 %882 }
 0x1e5   :  { %v1211_v60 = vcombine.high %v1177_v47, %v1193_v41  ;;  %v2630_v4 = vrot.slane %v2622_v43, %v9015_v45  ;;  %v2646_v5 = vrot.slane %v2638_v46, %v9015_v45  ;;  %v1110_v8 = vcombine.low %v885_v2, %v981_v48 }
 0x1e6   :  { %v1111_v9 = vcombine.high %v885_v2, %v981_v48  ;;  %v9144_v29 = vrot.slane %v2318_v49, %v9007_v32  ;;  %v9147_v34 = vrot.slane %v7813_v52, %v9007_v32  ;;  %v1202_v24 = vrot.slane %v1194_v53, %v9015_v45  ;;  %v931_v2 = vpop.permute.xlu1 %930 }
 0x1e7   :  { %v1209_v37 = vrot.slane %v1195_v54, %v9015_v45  ;;  %v9152_v61 = vrot.slane %v2334_v51, %v9007_v32  ;;  %v9155_v40 = vrot.slane %v7814_v50, %v9007_v32  ;;  %v2654_v41 = vcombine.low %v2630_v4, %v2646_v5 }
 0x1e8   :  { %v2655_v43 = vcombine.high %v2630_v4, %v2646_v5  ;;  %v9158_v46 = vrot.slane %v1210_v1, %v9015_v45  ;;  %v9161_v47 = vrot.slane %v1211_v60, %v9015_v45  ;;  %v1118_v48 = vrot.slane %v1110_v8, %v9007_v32 }
 0x1e9   :  { %v1125_v49 = vrot.slane %v1111_v9, %v9007_v32  ;;  %8232 = vmatpush3.xpose.msk.msra.mxu1 %vm5538_vm2, %v2654_v41  ;;  %v1094_v52 = vcombine.low %v8889_v63, %v933_v35  ;;  %v1095_v53 = vcombine.high %v8889_v63, %v933_v35  ;;  %v2562_v54 = vrot.slane %v2554_v59, %v9015_v45  ;;  %v979_v59 = vpop.permute.xlu0 %978 }
 0x1ea   :  { %8251 = vmatpush3.xpose.msk.msra.mxu0 %vm5538_vm2, %v2655_v43  ;;  %v2250_v51 = vcombine.low %v1202_v24, %v1209_v37  ;;  %8233 = vmatprep.subr.mxu1 %v11651_v62  ;;  %v2578_v50 = vrot.slane %v2570_v0, %v9015_v45  ;;  %v1026_v1 = vcombine.low %v8900_v3, %v931_v2 }
 0x1eb   :  { %8252 = vmatprep.subr.mxu0 %v11651_v62  ;;  %v1102_v60 = vrot.slane %v1094_v52, %v9007_v32  ;;  %v1109_v4 = vrot.slane %v1095_v53, %v9007_v32  ;;  %v2494_v63 = vrot.slane %v2486_v26, %v9015_v45  ;;  %v2510_v35 = vrot.slane %v2502_v42, %v9015_v45 }
 0x1ec   :  { %v7811_v5 = vcombine.high %v1202_v24, %v1209_v37  ;;  %v2586_v8 = vcombine.low %v2562_v54, %v2578_v50  ;;  %v2587_v9 = vcombine.high %v2562_v54, %v2578_v50  ;;  %v1027_v41 = vcombine.high %v8900_v3, %v931_v2 }
 0x1ed   :  { %v1126_v0 = vcombine.low %v1102_v60, %v1118_v48  ;;  %v1127_v43 = vcombine.high %v1102_v60, %v1118_v48  ;;  %v1142_v25 = vcombine.low %v1109_v4, %v1125_v49  ;;  %v1143_v57 = vcombine.high %v1109_v4, %v1125_v49  ;;  %v577_v49 = vpop.permute.xlu1 %576  ;;  %v583_v60 = vpop.permute.xlu0 %582 }
 0x1ee   :  { %v2266_v52 = vcombine.low %v9158_v46, %v9161_v47  ;;  %v7812_v53 = vcombine.high %v9158_v46, %v9161_v47  ;;  %8234 = vmatpush3.xpose.msk.msra.mxu1 %vm5538_vm2, %v2586_v8  ;;  %8253 = vmatpush3.xpose.msk.msra.mxu0 %vm5538_vm2, %v2587_v9  ;;  %v1042_v26 = vcombine.low %v883_v27, %v979_v59 }
 0x1ef   :  { %v9189_v42 = vrot.slane %v2250_v51, %v9007_v32  ;;  %v1034_v3 = vrot.slane %v1026_v1, %v9007_v32  ;;  %8235 = vmatprep.subr.mxu1 %v11651_v62  ;;  %v2518_v24 = vcombine.low %v2494_v63, %v2510_v35  ;;  %v2519_v37 = vcombine.high %v2494_v63, %v2510_v35 }
 0x1f0   :  { %v1134_v2 = vrot.slane %v1126_v0, %v9015_v45  ;;  %v1141_v48 = vrot.slane %v1127_v43, %v9015_v45  ;;  %8254 = vmatprep.subr.mxu0 %v11651_v62  ;;  %v1043_v46 = vcombine.high %v883_v27, %v979_v59  ;;  %v1050_v47 = vrot.slane %v1042_v26, %v9007_v32 }
 0x1f1   :  { %v9198_v54 = vrot.slane %v7811_v5, %v9007_v32  ;;  %v1150_v51 = vrot.slane %v1142_v25, %v9015_v45  ;;  %v1157_v50 = vrot.slane %v1143_v57, %v9015_v45  ;;  %v1041_v1 = vrot.slane %v1027_v41, %v9007_v32 }
 0x1f2   :  { %8236 = vmatpush3.xpose.msk.msra.mxu1 %vm5538_vm2, %v2518_v24  ;;  %8255 = vmatpush3.xpose.msk.msra.mxu0 %vm5538_vm2, %v2519_v37  ;;  %v1057_v4 = vrot.slane %v1043_v46, %v9007_v32  ;;  %v1058_v27 = vcombine.low %v1034_v3, %v1050_v47  ;;  %v1059_v63 = vcombine.high %v1034_v3, %v1050_v47 }
 0x1f3   :  { %v2350_v35 = vcombine.low %v9144_v29, %v9147_v34  ;;  %8237 = vmatprep.subr.mxu1 %v11651_v62  ;;  %v2426_v25 = vrot.slane %v2418_v55, %v9015_v45  ;;  %v11733_v57 = vcombine.low %v9084_v44, %v9105_v28  ;;  %v2182_v5 = vcombine.low %v1134_v2, %v1141_v48 }
 0x1f4   :  { %v7809_v8 = vcombine.high %v1134_v2, %v1141_v48  ;;  %v1074_v9 = vcombine.low %v1041_v1, %v1057_v4  ;;  %v1075_v41 = vcombine.high %v1041_v1, %v1057_v4  ;;  %8256 = vmatprep.subr.mxu0 %v11651_v62  ;;  %v2366_v0 = vcombine.low %v9152_v61, %v9155_v40  ;;  %v589_v48 = vpop.permute.xlu1 %588  ;;  %v9232_v4 = vpop.permute.xlu0 %904 }
 0x1f5   :  { %v2442_v59 = vrot.slane %v11733_v57, %v9015_v45  ;;  %v9221_v43 = vrot.slane %v2266_v52, %v9007_v32  ;;  %v9224_v26 = vrot.slane %v7812_v53, %v9007_v32  ;;  %v2282_v55 = vcombine.low %v9189_v42, %v9198_v54 }
 0x1f6   :  { %v2198_v3 = vcombine.low %v1150_v51, %v1157_v50  ;;  %v7810_v24 = vcombine.high %v1150_v51, %v1157_v50  ;;  %v1066_v37 = vrot.slane %v1058_v27, %v9015_v45  ;;  %v1073_v2 = vrot.slane %v1059_v63, %v9015_v45 }
 0x1f7   :  { %v2450_v46 = vcombine.low %v2426_v25, %v2442_v59  ;;  %v2451_v47 = vcombine.high %v2426_v25, %v2442_v59  ;;  %v594_v1 = vcombine.low %v8907_v6, %v583_v60  ;;  %v595_v52 = vcombine.high %v8907_v6, %v583_v60 }
 0x1f8   :  { %v9235_v53 = vrot.slane %v2182_v5, %v9007_v32  ;;  %v9238_v57 = vrot.slane %v7809_v8, %v9007_v32  ;;  %v1082_v51 = vrot.slane %v1074_v9, %v9015_v45  ;;  %v1089_v50 = vrot.slane %v1075_v41, %v9015_v45  ;;  %v9261_v21 = vpop.permute.xlu1 %956 }
 0x1f9   :  { %v2298_v27 = vcombine.low %v9221_v43, %v9224_v26  ;;  %8238 = vmatpush3.xpose.msk.msra.mxu1 %vm5538_vm2, %v2450_v46  ;;  %8257 = vmatpush3.xpose.msk.msra.mxu0 %vm5538_vm2, %v2451_v47  ;;  %v602_v6 = vrot.slane %v594_v1, %v9007_v32  ;;  %v610_v60 = vcombine.low %v577_v49, %v589_v48 }
 0x1fa   :  { %v9248_v63 = vrot.slane %v2198_v3, %v9007_v32  ;;  %v9251_v25 = vrot.slane %v7810_v24, %v9007_v32  ;;  %v2114_v59 = vcombine.low %v1066_v37, %v1073_v2  ;;  %v609_v5 = vrot.slane %v595_v52, %v9007_v32  ;;  %8239 = vmatprep.subr.mxu1 %v11651_v62 }
 0x1fb   :  { %v611_v8 = vcombine.high %v577_v49, %v589_v48  ;;  %v618_v9 = vrot.slane %v610_v60, %v9007_v32  ;;  %8258 = vmatprep.subr.mxu0 %v11651_v62  ;;  %v2358_v41 = vrot.slane %v2350_v35, %v9015_v45  ;;  %v2374_v46 = vrot.slane %v2366_v0, %v9015_v45  ;;  %v9264_v60 = vpop.permute.xlu0 %908 }
 0x1fc   :  { %v2214_v3 = vcombine.low %v9235_v53, %v9238_v57  ;;  %v7807_v47 = vcombine.high %v1066_v37, %v1073_v2  ;;  %v2130_v24 = vcombine.low %v1082_v51, %v1089_v50  ;;  %v7808_v1 = vcombine.high %v1082_v51, %v1089_v50 }
 0x1fd   :  { %v625_v52 = vrot.slane %v611_v8, %v9007_v32  ;;  %v626_v20 = vcombine.low %v602_v6, %v618_v9  ;;  %v627_v49 = vcombine.high %v602_v6, %v618_v9  ;;  %v2382_v48 = vcombine.low %v2358_v41, %v2374_v46 }
 0x1fe   :  { %v2230_v35 = vcombine.low %v9248_v63, %v9251_v25  ;;  %v9269_v0 = vrot.slane %v2114_v59, %v9007_v32  ;;  %v2383_v62 = vcombine.high %v2358_v41, %v2374_v46  ;;  %v2290_v37 = vrot.slane %v2282_v55, %v9015_v45 }
 0x1ff   :  { %v634_v2 = vrot.slane %v626_v20, %v9015_v45  ;;  %v641_v51 = vrot.slane %v627_v49, %v9015_v45  ;;  %v642_v50 = vcombine.low %v609_v5, %v625_v52  ;;  %v643_v8 = vcombine.high %v609_v5, %v625_v52  ;;  %8240 = vmatpush3.xpose.msk.msra.mxu1 %vm5538_vm2, %v2382_v48  ;;  %v9291_v49 = vpop.permute.xlu1 %906 }
 0x200   :  { %v9276_v6 = vrot.slane %v7807_v47, %v9007_v32  ;;  %v9279_v9 = vrot.slane %v2130_v24, %v9007_v32  ;;  %8259 = vmatpush3.xpose.msk.msra.mxu0 %vm5538_vm2, %v2383_v62  ;;  %v11735_v59 = vmov 0.0   ;;  %v2306_v55 = vrot.slane %v2298_v27, %v9015_v45 }
 0x201   :  { %8241 = vmatprep.subr.mxu1 %v11735_v59  ;;  %v9285_v20 = vrot.slane %v7808_v1, %v9007_v32  ;;  %v650_v41 = vrot.slane %v642_v50, %v9015_v45  ;;  %v657_v5 = vrot.slane %v643_v8, %v9015_v45  ;;  %8260 = vmatprep.subr.mxu0 %v11735_v59  ;;  %v1005_v1 = vpop.permute.xlu0 %1004 }
 0x202   :  { %11734 = vst [vmem:[#allocation8_spill] sm:$0xff] %v9276_v6  ;;  %v2222_v46 = vrot.slane %v2214_v3, %v9015_v45  ;;  %v730_v47 = vcombine.low %v634_v2, %v641_v51  ;;  %v2314_v24 = vcombine.low %v2290_v37, %v2306_v55  ;;  %v2315_v52 = vcombine.high %v2290_v37, %v2306_v55 }
 0x203   :  { %v2238_v62 = vrot.slane %v2230_v35, %v9015_v45  ;;  %v7803_v48 = vcombine.high %v634_v2, %v641_v51  ;;  %v746_v27 = vcombine.low %v650_v41, %v657_v5  ;;  %v7804_v19 = vcombine.high %v650_v41, %v657_v5 }
 0x204   :  { %v2146_v50 = vcombine.low %v9269_v0, %v9276_v6  ;;  %8242 = vmatpush3.xpose.msk.msra.mxu1 %vm5538_vm2, %v2314_v24  ;;  %8261 = vmatpush3.xpose.msk.msra.mxu0 %vm5538_vm2, %v2315_v52  ;;  %v2162_v3 = vcombine.low %v9279_v9, %v9285_v20  ;;  %v9302_v37 = vrot.slane %v730_v47, %v9007_v32 }
 0x205   :  { %8243 = vmatprep.subr.mxu1 %v11735_v59  ;;  %8262 = vmatprep.subr.mxu0 %v11735_v59  ;;  %v2246_v35 = vcombine.low %v2222_v46, %v2238_v62  ;;  %v2247_v2 = vcombine.high %v2222_v46, %v2238_v62  ;;  %v9306_v51 = vrot.slane %v7803_v48, %v9007_v32  ;;  %v1003_v46 = vpop.permute.xlu1 %1002  ;;  %v955_v48 = vpop.permute.xlu0 %954 }
 0x206   :  { %v9309_v8 = vrot.slane %v746_v27, %v9007_v32  ;;  %v9312_v55 = vrot.slane %v7804_v19, %v9007_v32  ;;  %v1926_v41 = vcombine.low %v9264_v60, %v1005_v1  ;;  %v2154_v24 = vrot.slane %v2146_v50, %v9015_v45 }
 0x207   :  { %v1910_v19 = vcombine.low %v8921_v11, %v9261_v21  ;;  %v1927_v62 = vcombine.high %v9264_v60, %v1005_v1  ;;  %v1911_v50 = vcombine.high %v8921_v11, %v9261_v21  ;;  %v2639_v52 = vcombine.high %v9098_v12, %v9101_v14 }
 0x208   :  { %8244 = vmatpush3.xpose.msk.msra.mxu1 %vm5538_vm2, %v2246_v35  ;;  %8263 = vmatpush3.xpose.msk.msra.mxu0 %vm5538_vm2, %v2247_v2  ;;  %v2623_v35 = vcombine.high %v9091_v22, %v9095_v56  ;;  %v2170_v2 = vrot.slane %v2162_v3, %v9015_v45  ;;  %v762_v60 = vcombine.low %v9302_v37, %v9306_v51 }
 0x209   :  { %8245 = vmatprep.subr.mxu1 %v11735_v59  ;;  %8264 = vmatprep.subr.mxu0 %v11735_v59  ;;  %v778_v1 = vcombine.low %v9309_v8, %v9312_v55  ;;  %v1934_v47 = vrot.slane %v1926_v41, %v9007_v32  ;;  %v2555_v27 = vcombine.high %v9111_v7, %v9114_v36  ;;  %v9358_v36 = vpop.permute.xlu1 %960 }
 0x20a   :  { %v2571_v22 = vcombine.high %v9119_v33, %v9122_v58  ;;  %v2178_v11 = vcombine.low %v2154_v24, %v2170_v2  ;;  %v2179_v21 = vcombine.high %v2154_v24, %v2170_v2  ;;  %v1918_v12 = vrot.slane %v1910_v19, %v9007_v32 }
 0x20b   :  { %v1941_v14 = vrot.slane %v1927_v62, %v9007_v32  ;;  %v1842_v3 = vcombine.low %v8928_v13, %v955_v48  ;;  %v1925_v5 = vrot.slane %v1911_v50, %v9007_v32  ;;  %v1858_v7 = vcombine.low %v9291_v49, %v1003_v46  ;;  %v9363_v62 = vpop.permute.xlu0 %912 }
 0x20c   :  { %8246 = vmatpush3.xpose.msk.msra.mxu1 %vm5538_vm2, %v2178_v11  ;;  %8265 = vmatpush3.xpose.msk.msra.mxu0 %vm5538_vm2, %v2179_v21  ;;  %v770_v33 = vrot.slane %v762_v60, %v9015_v45  ;;  %v786_v58 = vrot.slane %v778_v1, %v9015_v45  ;;  %v1942_v24 = vcombine.low %v1918_v12, %v1934_v47 }
 0x20d   :  { %v1943_v19 = vcombine.high %v1918_v12, %v1934_v47  ;;  %8269 = vmatprep.subr.mxu1 %v11735_v59  ;;  %v1859_v11 = vcombine.high %v9291_v49, %v1003_v46  ;;  %v1843_v21 = vcombine.high %v8928_v13, %v955_v48  ;;  %8288 = vmatprep.subr.mxu0 %v11735_v59  ;;  %v9388_v6 = vpop.permute.xlu1 %910 }
 0x20e   :  { %v1958_v1 = vcombine.low %v1925_v5, %v1941_v14  ;;  %v1850_v12 = vrot.slane %v1842_v3, %v9007_v32  ;;  %v2163_v2 = vcombine.high %v9279_v9, %v9285_v20  ;;  %v1959_v49 = vcombine.high %v1925_v5, %v1941_v14 }
 0x20f   :  { %v1866_v13 = vrot.slane %v1858_v7, %v9007_v32  ;;  %v1950_v46 = vrot.slane %v1942_v24, %v9015_v45  ;;  %v1957_v48 = vrot.slane %v1943_v19, %v9015_v45  ;;  %v794_v60 = vcombine.low %v770_v33, %v786_v58  ;;  %v1009_v24 = vpop.permute.xlu0 %1008 }
 0x210   :  { %v795_v41 = vcombine.high %v770_v33, %v786_v58  ;;  %v1873_v47 = vrot.slane %v1859_v11, %v9007_v32  ;;  %v1857_v56 = vrot.slane %v1843_v21, %v9007_v32  ;;  %v2637_v3 = vrot.slane %v2623_v35, %v9015_v45 }
 0x211   :  { %v2653_v50 = vrot.slane %v2639_v52, %v9015_v45  ;;  %v1966_v5 = vrot.slane %v1958_v1, %v9015_v45  ;;  %v1874_v14 = vcombine.low %v1850_v12, %v1866_v13  ;;  %v1875_v7 = vcombine.high %v1850_v12, %v1866_v13  ;;  %8248 = vmatmul.mubr.msk.f32.vlgmr.msra.gmra.mxu1 %vm5538_vm2, %v794_v60 }
 0x212   :  { %8267 = vmatmul.mubr.msk.f32.vlgmr.msra.gmra.mxu0 %vm5538_vm2, %v795_v41  ;;  %v1973_v33 = vrot.slane %v1959_v49, %v9015_v45  ;;  %v2569_v11 = vrot.slane %v2555_v27, %v9015_v45  ;;  %8285 = vmatprep.mubr.msk.f32.mxu1 %vm8626_vm1, %v11735_v59  ;;  %v2998_v35 = vcombine.low %v1950_v46, %v1957_v48 }
 0x213   :  { %v2656_v58 = vcombine.low %v2637_v3, %v2653_v50  ;;  %v2657_v19 = vcombine.high %v2637_v3, %v2653_v50  ;;  %v2046_v21 = vcombine.low %v8939_v15, %v9358_v36  ;;  %v2585_v60 = vrot.slane %v2571_v22, %v9015_v45  ;;  %8304 = vmatprep.mubr.msk.f32.mxu0 %vm8626_vm1, %v11735_v59  ;;  %v959_v52 = vpop.permute.xlu0 %958 }
 0x214   :  { %v7833_v41 = vcombine.high %v1950_v46, %v1957_v48  ;;  %v1890_v1 = vcombine.low %v1857_v56, %v1873_v47  ;;  %v2062_v27 = vcombine.low %v9363_v62, %v1009_v24  ;;  %v1882_v50 = vrot.slane %v1874_v14, %v9015_v45  ;;  %v1007_v46 = vpop.permute.xlu1 %1006 }
 0x215   :  { %8270 = vmatpush3.xpose.msk.msra.mxu1 %vm5538_vm2, %v2656_v58  ;;  %8289 = vmatpush3.xpose.msk.msra.mxu0 %vm5538_vm2, %v2657_v19  ;;  %v1889_v12 = vrot.slane %v1875_v7, %v9015_v45  ;;  %v1891_v49 = vcombine.high %v1857_v56, %v1873_v47  ;;  %v3014_v22 = vcombine.low %v1966_v5, %v1973_v33 }
 0x216   :  { %8271 = vmatprep.subr.mxu1 %v11735_v59  ;;  %8290 = vmatprep.subr.mxu0 %v11735_v59  ;;  %v2588_v13 = vcombine.low %v2569_v11, %v2585_v60  ;;  %v2589_v3 = vcombine.high %v2569_v11, %v2585_v60  ;;  %v11736_v48 = vcombine.high %v9033_v38, %v9036_v39 }
 0x217   :  { %v9416_v19 = vrot.slane %v2998_v35, %v9007_v32  ;;  %v7834_v14 = vcombine.high %v1966_v5, %v1973_v33  ;;  %v2063_v7 = vcombine.high %v9363_v62, %v1009_v24  ;;  %v11737_v56 = vcombine.high %v9056_v16, %v9059_v23 }
 0x218   :  { %v2501_v58 = vrot.slane %v11736_v48, %v9015_v45  ;;  %v1898_v11 = vrot.slane %v1890_v1, %v9015_v45  ;;  %v2047_v60 = vcombine.high %v8939_v15, %v9358_v36  ;;  %v2070_v38 = vrot.slane %v2062_v27, %v9007_v32 }
 0x219   :  { %v2517_v47 = vrot.slane %v11737_v56, %v9015_v45  ;;  %8272 = vmatpush3.xpose.msk.msra.mxu1 %vm5538_vm2, %v2588_v13  ;;  %8291 = vmatpush3.xpose.msk.msra.mxu0 %vm5538_vm2, %v2589_v3  ;;  %v1905_v39 = vrot.slane %v1891_v49, %v9015_v45  ;;  %v2930_v62 = vcombine.low %v1882_v50, %v1889_v12 }
 0x21a   :  { %v2054_v5 = vrot.slane %v2046_v21, %v9007_v32  ;;  %8273 = vmatprep.subr.mxu1 %v11735_v59  ;;  %8292 = vmatprep.subr.mxu0 %v11735_v59  ;;  %v7831_v16 = vcombine.high %v1882_v50, %v1889_v12  ;;  %v1978_v15 = vcombine.low %v8946_v17, %v959_v52  ;;  %v9445_v50 = vpop.permute.xlu1 %952 }
 0x21b   :  { %v2520_v23 = vcombine.low %v2501_v58, %v2517_v47  ;;  %v2521_v24 = vcombine.high %v2501_v58, %v2517_v47  ;;  %v9435_v36 = vrot.slane %v7833_v41, %v9007_v32  ;;  %v9438_v33 = vrot.slane %v3014_v22, %v9007_v32  ;;  %v1001_v58 = vpop.permute.xlu0 %1000 }
 0x21c   :  { %v2077_v35 = vrot.slane %v2063_v7, %v9007_v32  ;;  %v1979_v1 = vcombine.high %v8946_v17, %v959_v52  ;;  %v2078_v21 = vcombine.low %v2054_v5, %v2070_v38  ;;  %v2079_v27 = vcombine.high %v2054_v5, %v2070_v38 }
 0x21d   :  { %v1994_v49 = vcombine.low %v9388_v6, %v1007_v46  ;;  %8274 = vmatpush3.xpose.msk.msra.mxu1 %vm5538_vm2, %v2520_v23  ;;  %8293 = vmatpush3.xpose.msk.msra.mxu0 %vm5538_vm2, %v2521_v24  ;;  %v9448_v41 = vrot.slane %v7834_v14, %v9007_v32  ;;  %v2946_v12 = vcombine.low %v1898_v11, %v1905_v39 }
 0x21e   :  { %v2061_v22 = vrot.slane %v2047_v60, %v9007_v32  ;;  %v1995_v13 = vcombine.high %v9388_v6, %v1007_v46  ;;  %8275 = vmatprep.subr.mxu1 %v11735_v59  ;;  %v9454_v17 = vrot.slane %v2930_v62, %v9007_v32  ;;  %v9457_v52 = vrot.slane %v7831_v16, %v9007_v32 }
 0x21f   :  { %v7832_v3 = vcombine.high %v1898_v11, %v1905_v39  ;;  %v1986_v48 = vrot.slane %v1978_v15, %v9007_v32  ;;  %8294 = vmatprep.subr.mxu0 %v11735_v59  ;;  %v779_v14 = vcombine.high %v9309_v8, %v9312_v55  ;;  %v1993_v7 = vrot.slane %v1979_v1, %v9007_v32 }
 0x220   :  { %v2094_v46 = vcombine.low %v2061_v22, %v2077_v35  ;;  %v2086_v56 = vrot.slane %v2078_v21, %v9015_v45  ;;  %v2093_v47 = vrot.slane %v2079_v27, %v9015_v45  ;;  %v2095_v60 = vcombine.high %v2061_v22, %v2077_v35  ;;  %v9488_v21 = vpop.permute.xlu1 %902 }
 0x221   :  { %v2002_v11 = vrot.slane %v1994_v49, %v9007_v32  ;;  %v9472_v39 = vrot.slane %v2946_v12, %v9007_v32  ;;  %v2009_v62 = vrot.slane %v1995_v13, %v9007_v32  ;;  %v11738_v5 = vcombine.high %v9068_v31, %v9071_v30 }
 0x222   :  { %v9480_v23 = vrot.slane %v7832_v3, %v9007_v32  ;;  %v11739_v35 = vcombine.high %v9084_v44, %v9105_v28  ;;  %v2102_v27 = vrot.slane %v2094_v46, %v9015_v45  ;;  %v2109_v30 = vrot.slane %v2095_v60, %v9015_v45 }
 0x223   :  { %v2433_v16 = vrot.slane %v11738_v5, %v9015_v45  ;;  %v2010_v15 = vcombine.low %v1986_v48, %v2002_v11  ;;  %v2011_v49 = vcombine.high %v1986_v48, %v2002_v11  ;;  %v2026_v12 = vcombine.low %v1993_v7, %v2009_v62  ;;  %v9494_v5 = vpop.permute.xlu0 %950 }
 0x224   :  { %v2449_v1 = vrot.slane %v11739_v35, %v9015_v45  ;;  %v2027_v31 = vcombine.high %v1993_v7, %v2009_v62  ;;  %v3134_v22 = vcombine.low %v2086_v56, %v2093_v47  ;;  %v1790_v13 = vcombine.low %v9232_v4, %v1001_v58 }
 0x225   :  { %v1791_v3 = vcombine.high %v9232_v4, %v1001_v58  ;;  %v11740_v44 = vcombine.high %v9144_v29, %v9147_v34  ;;  %v11741_v48 = vcombine.high %v9152_v61, %v9155_v40  ;;  %v7837_v7 = vcombine.high %v2086_v56, %v2093_v47 }
 0x226   :  { %v2452_v24 = vcombine.low %v2433_v16, %v2449_v1  ;;  %v2453_v38 = vcombine.high %v2433_v16, %v2449_v1  ;;  %v2018_v60 = vrot.slane %v2010_v15, %v9015_v45  ;;  %v1774_v4 = vcombine.low %v8918_v10, %v9445_v50 }
 0x227   :  { %v2365_v28 = vrot.slane %v11740_v44, %v9015_v45  ;;  %v2381_v46 = vrot.slane %v11741_v48, %v9015_v45  ;;  %v1775_v58 = vcombine.high %v8918_v10, %v9445_v50  ;;  %v2025_v11 = vrot.slane %v2011_v49, %v9015_v45  ;;  %v999_v10 = vpop.permute.xlu1 %998  ;;  %v9528_v1 = vpop.permute.xlu0 %900 }
 0x228   :  { %v2034_v62 = vrot.slane %v2026_v12, %v9015_v45  ;;  %v2041_v29 = vrot.slane %v2027_v31, %v9015_v45  ;;  %8276 = vmatpush3.xpose.msk.msra.mxu1 %vm5538_vm2, %v2452_v24  ;;  %8295 = vmatpush3.xpose.msk.msra.mxu0 %vm5538_vm2, %v2453_v38  ;;  %v3150_v61 = vcombine.low %v2102_v27, %v2109_v30 }
 0x229   :  { %v1798_v40 = vrot.slane %v1790_v13, %v9007_v32  ;;  %8277 = vmatprep.subr.mxu1 %v11735_v59  ;;  %8296 = vmatprep.subr.mxu0 %v11735_v59  ;;  %v9520_v50 = vrot.slane %v3134_v22, %v9007_v32  ;;  %v7838_v56 = vcombine.high %v2102_v27, %v2109_v30 }
 0x22a   :  { %v1805_v47 = vrot.slane %v1791_v3, %v9007_v32  ;;  %v2384_v16 = vcombine.low %v2365_v28, %v2381_v46  ;;  %v9524_v38 = vrot.slane %v7837_v7, %v9007_v32  ;;  %v1782_v24 = vrot.slane %v1774_v4, %v9007_v32 }
 0x22b   :  { %v1789_v15 = vrot.slane %v1775_v58, %v9007_v32  ;;  %v2385_v35 = vcombine.high %v2365_v28, %v2381_v46  ;;  %v3066_v49 = vcombine.low %v2018_v60, %v2025_v11  ;;  %v7835_v12 = vcombine.high %v2018_v60, %v2025_v11 }
 0x22c   :  { %v3082_v31 = vcombine.low %v2034_v62, %v2041_v29  ;;  %v7836_v13 = vcombine.high %v2034_v62, %v2041_v29  ;;  %8278 = vmatpush3.xpose.msk.msra.mxu1 %vm5538_vm2, %v2384_v16  ;;  %v1806_v27 = vcombine.low %v1782_v24, %v1798_v40  ;;  %v1807_v30 = vcombine.high %v1782_v24, %v1798_v40  ;;  %v949_v29 = vpop.permute.xlu1 %948  ;;  %v997_v40 = vpop.permute.xlu0 %996 }
 0x22d   :  { %8297 = vmatpush3.xpose.msk.msra.mxu0 %vm5538_vm2, %v2385_v35  ;;  %v1706_v22 = vcombine.low %v8961_v18, %v9494_v5  ;;  %v1722_v3 = vcombine.low %v9488_v21, %v999_v10  ;;  %v9536_v44 = vrot.slane %v3150_v61, %v9007_v32  ;;  %v9539_v28 = vrot.slane %v7838_v56, %v9007_v32 }
 0x22e   :  { %v1822_v48 = vcombine.low %v1789_v15, %v1805_v47  ;;  %v1823_v46 = vcombine.high %v1789_v15, %v1805_v47  ;;  %8279 = vmatprep.subr.mxu1 %v11735_v59  ;;  %v1707_v7 = vcombine.high %v8961_v18, %v9494_v5  ;;  %v1723_v60 = vcombine.high %v9488_v21, %v999_v10  ;;  %v9572_v10 = vpop.f32.mrf.mxu0 }
 0x22f   :  { %8298 = vmatprep.subr.mxu0 %v11735_v59  ;;  %v11742_v4 = vcombine.high %v9189_v42, %v9198_v54  ;;  %v11743_v11 = vcombine.high %v9221_v43, %v9224_v26  ;;  %v9555_v61 = vrot.slane %v3066_v49, %v9007_v32  ;;  %v9558_v18 = vrot.slane %v7835_v12, %v9007_v32 }
 0x230   :  { %v9561_v21 = vrot.slane %v3082_v31, %v9007_v32  ;;  %v9564_v5 = vrot.slane %v7836_v13, %v9007_v32  ;;  %v9567_v42 = vrot.slane %v1806_v27, %v9015_v45  ;;  %v1821_v54 = vrot.slane %v1807_v30, %v9015_v45 }
 0x231   :  { %v2297_v58 = vrot.slane %v11742_v4, %v9015_v45  ;;  %v2313_v62 = vrot.slane %v11743_v11, %v9015_v45  ;;  %v1714_v43 = vrot.slane %v1706_v22, %v9007_v32  ;;  %v1730_v26 = vrot.slane %v1722_v3, %v9007_v32  ;;  %v9600_v4 = vpop.f32.mrf.mxu0 }
 0x232   :  { %v3166_v56 = vcombine.low %v9520_v50, %v9524_v38  ;;  %v3182_v47 = vcombine.low %v9536_v44, %v9539_v28  ;;  %v9579_v15 = vrot.slane %v1822_v48, %v9015_v45  ;;  %v1837_v35 = vrot.slane %v1823_v46, %v9015_v45  ;;  %v11745_v46 = vld [vmem:[#allocation5_spill] sm:$0xff] }
 0x233   :  { %v2316_v16 = vcombine.low %v2297_v58, %v2313_v62  ;;  %v2317_v24 = vcombine.high %v2297_v58, %v2313_v62  ;;  %v1721_v49 = vrot.slane %v1707_v7, %v9007_v32  ;;  %v1737_v12 = vrot.slane %v1723_v60, %v9007_v32  ;;  %v9598_v60 = vpop.permute.xlu1 %898 }
 0x234   :  { %v3098_v31 = vcombine.low %v9555_v61, %v9558_v18  ;;  %v3114_v13 = vcombine.low %v9561_v21, %v9564_v5  ;;  %v11744_v27 = vcombine.high %v9235_v53, %v9238_v57  ;;  %v2862_v22 = vcombine.low %v9567_v42, %v1821_v54 }
 0x235   :  { %8280 = vmatpush3.xpose.msk.msra.mxu1 %vm5538_vm2, %v2316_v16  ;;  %8299 = vmatpush3.xpose.msk.msra.mxu0 %vm5538_vm2, %v2317_v24  ;;  %v7829_v3 = vcombine.high %v9567_v42, %v1821_v54  ;;  %v1738_v48 = vcombine.low %v1714_v43, %v1730_v26  ;;  %v1638_v7 = vcombine.low %v11745_v46, %v949_v29 }
 0x236   :  { %v2229_v30 = vrot.slane %v11744_v27, %v9015_v45  ;;  %8281 = vmatprep.subr.mxu1 %v11735_v59  ;;  %v1739_v58 = vcombine.high %v1714_v43, %v1730_v26  ;;  %v1639_v11 = vcombine.high %v11745_v46, %v949_v29  ;;  %8300 = vmatprep.subr.mxu0 %v11735_v59  ;;  %v9611_v27 = vpop.permute.xlu0 %946  ;;  %v11747_v46 = vld [vmem:[#allocation8_spill] sm:$0xff] }
 0x237   :  { %v11746_v53 = vcombine.high %v9248_v63, %v9251_v25  ;;  %v1654_v62 = vcombine.low %v9528_v1, %v997_v40  ;;  %v2878_v42 = vcombine.low %v9579_v15, %v1837_v35  ;;  %v1754_v54 = vcombine.low %v1721_v49, %v1737_v12 }
 0x238   :  { %v1755_v16 = vcombine.high %v1721_v49, %v1737_v12  ;;  %v1655_v24 = vcombine.high %v9528_v1, %v997_v40  ;;  %v7830_v43 = vcombine.high %v9579_v15, %v1837_v35  ;;  %v11748_v34 = vcombine.high %v9269_v0, %v11747_v46  ;;  %v9622_v1 = vpop.f32.mrf.mxu0 }
 0x239   :  { %v2245_v57 = vrot.slane %v11746_v53, %v9015_v45  ;;  %v1746_v25 = vrot.slane %v1738_v48, %v9015_v45  ;;  %v1646_v53 = vrot.slane %v1638_v7, %v9007_v32  ;;  %v1662_v6 = vrot.slane %v1654_v62, %v9007_v32  ;;  %v995_v48 = vpop.permute.xlu1 %994 }
 0x23a   :  { %v2161_v63 = vrot.slane %v11748_v34, %v9015_v45  ;;  %v1669_v49 = vrot.slane %v1655_v24, %v9007_v32  ;;  %v1753_v40 = vrot.slane %v1739_v58, %v9015_v45  ;;  %v1653_v15 = vrot.slane %v1639_v11, %v9007_v32 }
 0x23b   :  { %v2248_v29 = vcombine.low %v2229_v30, %v2245_v57  ;;  %v2249_v26 = vcombine.high %v2229_v30, %v2245_v57  ;;  %v2177_v0 = vrot.slane %v2163_v2, %v9015_v45  ;;  %v1762_v34 = vrot.slane %v1754_v54, %v9015_v45  ;;  %v11749_v2 = vld [vmem:[#allocation6_spill] sm:$0xff]  ;;  %v9647_v54 = vpop.permute.xlu0 %578 }
 0x23c   :  { %v1769_v35 = vrot.slane %v1755_v16, %v9015_v45  ;;  %v1670_v12 = vcombine.low %v1646_v53, %v1662_v6  ;;  %v1671_v30 = vcombine.high %v1646_v53, %v1662_v6  ;;  %v1686_v7 = vcombine.low %v1653_v15, %v1669_v49  ;;  %v9649_v16 = vpop.f32.mrf.mxu0 }
 0x23d   :  { %8282 = vmatpush3.xpose.msk.msra.mxu1 %vm5538_vm2, %v2248_v29  ;;  %8301 = vmatpush3.xpose.msk.msra.mxu0 %vm5538_vm2, %v2249_v26  ;;  %v1687_v58 = vcombine.high %v1653_v15, %v1669_v49  ;;  %v2180_v11 = vcombine.low %v2161_v63, %v2177_v0  ;;  %v2181_v57 = vcombine.high %v2161_v63, %v2177_v0 }
 0x23e   :  { %8283 = vmatprep.subr.mxu1 %v11735_v59  ;;  %8302 = vmatprep.subr.mxu0 %v11735_v59  ;;  %v9637_v62 = vrot.slane %v2862_v22, %v9007_v32  ;;  %v9640_v9 = vrot.slane %v7829_v3, %v9007_v32  ;;  %v9643_v20 = vrot.slane %v2878_v42, %v9007_v32 }
 0x23f   :  { %v1570_v6 = vcombine.low %v11749_v2, %v9611_v27  ;;  %v1678_v24 = vrot.slane %v1670_v12, %v9015_v45  ;;  %v1685_v29 = vrot.slane %v1671_v30, %v9015_v45  ;;  %v1586_v22 = vcombine.low %v9598_v60, %v995_v48  ;;  %v591_v8 = vpop.permute.xlu0 %590 }
 0x240   :  { %v9657_v3 = vrot.slane %v7830_v43, %v9007_v32  ;;  %v2794_v42 = vcombine.low %v1746_v25, %v1753_v40  ;;  %v7827_v26 = vcombine.high %v1746_v25, %v1753_v40  ;;  %v2810_v46 = vcombine.low %v1762_v34, %v1769_v35 }
 0x241   :  { %8284 = vmatpush3.xpose.msk.msra.mxu1 %vm5538_vm2, %v2180_v11  ;;  %8303 = vmatpush3.xpose.msk.msra.mxu0 %vm5538_vm2, %v2181_v57  ;;  %v7828_v63 = vcombine.high %v1762_v34, %v1769_v35  ;;  %v1694_v53 = vrot.slane %v1686_v7, %v9015_v45  ;;  %v1701_v49 = vrot.slane %v1687_v58, %v9015_v45  ;;  %v9676_v35 = vpop.f32.mrf.mxu0 }
 0x242   :  { %8307 = vmatprep.subr.mxu1 %v11735_v59  ;;  %v1571_v15 = vcombine.high %v11749_v2, %v9611_v27  ;;  %8326 = vmatprep.subr.mxu0 %v11735_v59  ;;  %v2894_v0 = vcombine.low %v9637_v62, %v9640_v9  ;;  %v1587_v43 = vcombine.high %v9598_v60, %v995_v48 }
 0x243   :  { %v11750_v25 = vcombine.high %v9302_v37, %v9306_v51  ;;  %v793_v34 = vrot.slane %v779_v14, %v9015_v45  ;;  %v2726_v27 = vcombine.low %v1678_v24, %v1685_v29  ;;  %v7825_v12 = vcombine.high %v1678_v24, %v1685_v29  ;;  %v585_v29 = vpop.permute.xlu1 %584 }
 0x244   :  { %v1578_v30 = vrot.slane %v1570_v6, %v9007_v32  ;;  %v1594_v7 = vrot.slane %v1586_v22, %v9007_v32  ;;  %v9681_v60 = vrot.slane %v2794_v42, %v9007_v32  ;;  %v9684_v48 = vrot.slane %v7827_v26, %v9007_v32  ;;  %v9702_v22 = vpop.f32.mrf.mxu0 }
 0x245   :  { %v777_v40 = vrot.slane %v11750_v25, %v9015_v45  ;;  %v9687_v37 = vrot.slane %v2810_v46, %v9007_v32  ;;  %v3174_v51 = vrot.slane %v3166_v56, %v9015_v45  ;;  %v9694_v55 = vrot.slane %v7828_v63, %v9007_v32  ;;  %v11751_v25 = vld [vmem:[#allocation7_spill] sm:$0xff] }
 0x246   :  { %v2742_v14 = vcombine.low %v1694_v53, %v1701_v49  ;;  %v7826_v58 = vcombine.high %v1694_v53, %v1701_v49  ;;  %v1585_v11 = vrot.slane %v1571_v15, %v9007_v32  ;;  %v1601_v57 = vrot.slane %v1587_v43, %v9007_v32 }
 0x247   :  { %v796_v2 = vcombine.low %v777_v40, %v793_v34  ;;  %v797_v6 = vcombine.high %v777_v40, %v793_v34  ;;  %v3190_v24 = vrot.slane %v3182_v47, %v9015_v45  ;;  %v2910_v56 = vcombine.low %v9643_v20, %v9657_v3 }
 0x248   :  { %v9707_v42 = vrot.slane %v2726_v27, %v9007_v32  ;;  %v9710_v26 = vrot.slane %v7825_v12, %v9007_v32  ;;  %v1602_v46 = vcombine.low %v1578_v30, %v1594_v7  ;;  %v1603_v63 = vcombine.high %v1578_v30, %v1594_v7  ;;  %v8218_v30 = vpop.f32.mrf.mxu0  ;;  %v9733_v7 = vpop.permute.xlu0 %378 }
 0x249   :  { %8286 = vmatmul.mubr.msk.f32.vlgmr.msra.gmra.mxu1 %vm5538_vm2, %v796_v2  ;;  %8305 = vmatmul.mubr.msk.f32.vlgmr.msra.gmra.mxu0 %vm5538_vm2, %v797_v6  ;;  %v3198_v53 = vcombine.low %v3174_v51, %v3190_v24  ;;  %v3199_v47 = vcombine.high %v3174_v51, %v3190_v24  ;;  %v2826_v49 = vcombine.low %v9681_v60, %v9684_v48 }
 0x24a   :  { %v9719_v43 = vrot.slane %v2742_v14, %v9007_v32  ;;  %v662_v40 = vcombine.low %v11751_v25, %v585_v29  ;;  %8323 = vmatprep.mubr.msk.f32.mxu1 %vm8626_vm1, %v11735_v59  ;;  %v9725_v34 = vrot.slane %v7826_v58, %v9007_v32  ;;  %v1618_v27 = vcombine.low %v1585_v11, %v1601_v57 }
 0x24b   :  { %8308 = vmatpush3.xpose.msk.msra.mxu1 %vm5538_vm2, %v3198_v53  ;;  %8327 = vmatpush3.xpose.msk.msra.mxu0 %vm5538_vm2, %v3199_v47  ;;  %v3106_v12 = vrot.slane %v3098_v31, %v9015_v45  ;;  %v1610_v14 = vrot.slane %v1602_v46, %v9015_v45  ;;  %v1619_v58 = vcombine.high %v1585_v11, %v1601_v57 }
 0x24c   :  { %v663_v2 = vcombine.high %v11751_v25, %v585_v29  ;;  %8309 = vmatprep.subr.mxu1 %v11735_v59  ;;  %v1617_v6 = vrot.slane %v1603_v63, %v9015_v45  ;;  %8328 = vmatprep.subr.mxu0 %v11735_v59  ;;  %v3122_v31 = vrot.slane %v3114_v13, %v9015_v45 }
 0x24d   :  { %v678_v24 = vcombine.low %v9647_v54, %v591_v8  ;;  %v679_v53 = vcombine.high %v9647_v54, %v591_v8  ;;  %v670_v46 = vrot.slane %v662_v40, %v9007_v32  ;;  %v11752_v11 = vcombine.low %v9416_v19, %v9435_v36  ;;  %8342 = vmatprep.mubr.msk.f32.mxu0 %vm8626_vm1, %v11735_v59  ;;  %v525_v40 = vpop.f32.mrf.mxu0 }
 0x24e   :  { %v11753_v29 = vcombine.low %v9438_v33, %v9448_v41  ;;  %v9758_v47 = vadd.f32 %v8218_v30, %v9733_v7  ;;  %v3130_v13 = vcombine.low %v3106_v12, %v3122_v31  ;;  %v3131_v54 = vcombine.high %v3106_v12, %v3122_v31 }
 0x24f   :  { %v3038_v57 = vrot.slane %v11752_v11, %v9015_v45  ;;  %v686_v8 = vrot.slane %v678_v24, %v9007_v32  ;;  %v693_v25 = vrot.slane %v679_v53, %v9007_v32  ;;  %v1626_v11 = vrot.slane %v1618_v27, %v9015_v45 }
 0x250   :  { %v3054_v63 = vrot.slane %v11753_v29, %v9015_v45  ;;  %v1633_v51 = vrot.slane %v1619_v58, %v9015_v45  ;;  %v677_v15 = vrot.slane %v663_v2, %v9007_v32  ;;  %3232 = vrot.lane.b32.xlu0 %v9758_v47, %s8622_s29  ;;  %3280 = vrot.lane.b32.xlu1 %v9758_v47, %s8623_s2 }
 0x251   :  { %v2658_v30 = vcombine.low %v1610_v14, %v1617_v6  ;;  %8310 = vmatpush3.xpose.msk.msra.mxu1 %vm5538_vm2, %v3130_v13  ;;  %8329 = vmatpush3.xpose.msk.msra.mxu0 %vm5538_vm2, %v3131_v54  ;;  %v694_v12 = vcombine.low %v670_v46, %v686_v8  ;;  %v695_v31 = vcombine.high %v670_v46, %v686_v8 }
 0x252   :  { %v710_v24 = vcombine.low %v677_v15, %v693_v25  ;;  %v711_v53 = vcombine.high %v677_v15, %v693_v25  ;;  %8311 = vmatprep.subr.mxu1 %v11735_v59  ;;  %8330 = vmatprep.subr.mxu0 %v11735_v59  ;;  %v9776_v27 = vadd.f32 %v525_v40, %v9733_v7 }
 0x253   :  { %v3062_v58 = vcombine.low %v3038_v57, %v3054_v63  ;;  %v3063_v2 = vcombine.high %v3038_v57, %v3054_v63  ;;  %v11754_v29 = vcombine.low %v9454_v17, %v9457_v52  ;;  %v11755_v46 = vcombine.low %v9472_v39, %v9480_v23 }
 0x254   :  { %v7823_v15 = vcombine.high %v1610_v14, %v1617_v6  ;;  %v2674_v8 = vcombine.low %v1626_v11, %v1633_v51  ;;  %3328 = vrot.lane.b32.xlu0 %v9758_v47, %s8624_s30  ;;  %3278 = vrot.lane.b32.xlu1 %v9776_v27, %s8623_s2  ;;  %v9792_v57 = vadd.f32 %v9676_v35, %v9733_v7 }
 0x255   :  { %v2970_v13 = vrot.slane %v11754_v29, %v9015_v45  ;;  %v2986_v54 = vrot.slane %v11755_v46, %v9015_v45  ;;  %v7824_v63 = vcombine.high %v1626_v11, %v1633_v51  ;;  %v702_v25 = vrot.slane %v694_v12, %v9015_v45  ;;  %8312 = vmatpush3.xpose.msk.msra.mxu1 %vm5538_vm2, %v3062_v58 }
 0x256   :  { %v709_v40 = vrot.slane %v695_v31, %v9015_v45  ;;  %8331 = vmatpush3.xpose.msk.msra.mxu0 %vm5538_vm2, %v3063_v2  ;;  %v2774_v14 = vcombine.low %v9719_v43, %v9725_v34  ;;  %v718_v6 = vrot.slane %v710_v24, %v9015_v45  ;;  %v725_v29 = vrot.slane %v711_v53, %v9015_v45 }
 0x257   :  { %8313 = vmatprep.subr.mxu1 %v11735_v59  ;;  %8332 = vmatprep.subr.mxu0 %v11735_v59  ;;  %v2994_v35 = vcombine.low %v2970_v13, %v2986_v54  ;;  %v2995_v51 = vcombine.high %v2970_v13, %v2986_v54  ;;  %v2902_v11 = vrot.slane %v2894_v0, %v9015_v45 }
 0x258   :  { %v2918_v12 = vrot.slane %v2910_v56, %v9015_v45  ;;  %v9813_v31 = vrot.slane %v2658_v30, %v9007_v32  ;;  %v9816_v24 = vrot.slane %v7823_v15, %v9007_v32  ;;  %3230 = vrot.lane.b32.xlu0 %v9776_v27, %s8622_s29  ;;  %3276 = vrot.lane.b32.xlu1 %v9792_v57, %s8623_s2 }
 0x259   :  { %v9824_v0 = vadd.f32 %v9702_v22, %v9733_v7  ;;  %v9827_v53 = vrot.slane %v2674_v8, %v9007_v32  ;;  %v9830_v56 = vrot.slane %v7824_v63, %v9007_v32  ;;  %v798_v30 = vcombine.low %v702_v25, %v709_v40  ;;  %8314 = vmatpush3.xpose.msk.msra.mxu1 %vm5538_vm2, %v2994_v35 }
 0x25a   :  { %8333 = vmatpush3.xpose.msk.msra.mxu0 %vm5538_vm2, %v2995_v51  ;;  %v7805_v58 = vcombine.high %v702_v25, %v709_v40  ;;  %v814_v2 = vcombine.low %v718_v6, %v725_v29  ;;  %v7806_v13 = vcombine.high %v718_v6, %v725_v29  ;;  %8315 = vmatprep.subr.mxu1 %v11735_v59 }
 0x25b   :  { %8334 = vmatprep.subr.mxu0 %v11735_v59  ;;  %v2926_v22 = vcombine.low %v2902_v11, %v2918_v12  ;;  %v2927_v46 = vcombine.high %v2902_v11, %v2918_v12  ;;  %v2834_v54 = vrot.slane %v2826_v49, %v9015_v45  ;;  %v11756_v15 = vcombine.low %v9687_v37, %v9694_v55 }
 0x25c   :  { %3326 = vrot.lane.b32.xlu0 %v9776_v27, %s8624_s30  ;;  %3226 = vrot.lane.b32.xlu1 %v9824_v0, %s8622_s29  ;;  %v2690_v63 = vcombine.low %v9813_v31, %v9816_v24  ;;  %v2706_v25 = vcombine.low %v9827_v53, %v9830_v56  ;;  %v9853_v40 = vrot.slane %v798_v30, %v9007_v32 }
 0x25d   :  { %v2850_v8 = vrot.slane %v11756_v15, %v9015_v45  ;;  %8316 = vmatpush3.xpose.msk.msra.mxu1 %vm5538_vm2, %v2926_v22  ;;  %v9858_v49 = vrot.slane %v7805_v58, %v9007_v32  ;;  %v9861_v6 = vrot.slane %v814_v2, %v9007_v32  ;;  %v9864_v29 = vrot.slane %v7806_v13, %v9007_v32  ;;  %v9881_v2 = vpop.f32.mrf.mxu0 }
 0x25e   :  { %8335 = vmatpush3.xpose.msk.msra.mxu0 %vm5538_vm2, %v2927_v46  ;;  %8317 = vmatprep.subr.mxu1 %v11735_v59  ;;  %v11757_v11 = vcombine.low %v9707_v42, %v9710_v26  ;;  %v2782_v30 = vrot.slane %v2774_v14, %v9015_v45  ;;  %v9879_v58 = vadd.f32 %v9622_v1, %v9733_v7 }
 0x25f   :  { %8336 = vmatprep.subr.mxu0 %v11735_v59  ;;  %v2858_v35 = vcombine.low %v2834_v54, %v2850_v8  ;;  %v2859_v51 = vcombine.high %v2834_v54, %v2850_v8  ;;  %v3167_v13 = vcombine.high %v9520_v50, %v9524_v38  ;;  %v3183_v14 = vcombine.high %v9536_v44, %v9539_v28  ;;  %v9905_v28 = vpop.f32.mrf.mxu0 }
 0x260   :  { %v2766_v12 = vrot.slane %v11757_v11, %v9015_v45  ;;  %3228 = vrot.lane.b32.xlu0 %v9792_v57, %s8622_s29  ;;  %3322 = vrot.lane.b32.xlu1 %v9824_v0, %s8624_s30  ;;  %v830_v22 = vcombine.low %v9853_v40, %v9858_v49  ;;  %v846_v46 = vcombine.low %v9861_v6, %v9864_v29 }
 0x261   :  { %8318 = vmatpush3.xpose.msk.msra.mxu1 %vm5538_vm2, %v2858_v35  ;;  %v2698_v50 = vrot.slane %v2690_v63, %v9015_v45  ;;  %v2714_v38 = vrot.slane %v2706_v25, %v9015_v45  ;;  %v9903_v44 = vadd.f32 %v9649_v16, %v9733_v7  ;;  %11758 = vst [vmem:[#allocation5_spill] sm:$0xff] %v9905_v28 }
 0x262   :  { %8337 = vmatpush3.xpose.msk.msra.mxu0 %vm5538_vm2, %v2859_v51  ;;  %8319 = vmatprep.subr.mxu1 %v11735_v59  ;;  %v2790_v1 = vcombine.low %v2766_v12, %v2782_v30  ;;  %v2791_v54 = vcombine.high %v2766_v12, %v2782_v30  ;;  %v3099_v15 = vcombine.high %v9555_v61, %v9558_v18  ;;  %v9923_v18 = vpop.f32.mrf.mxu0 }
 0x263   :  { %8338 = vmatprep.subr.mxu0 %v11735_v59  ;;  %v3115_v8 = vcombine.high %v9561_v21, %v9564_v5  ;;  %v838_v63 = vrot.slane %v830_v22, %v9015_v45  ;;  %v854_v16 = vrot.slane %v846_v46, %v9015_v45  ;;  %v2722_v25 = vcombine.low %v2698_v50, %v2714_v38 }
 0x264   :  { %3324 = vrot.lane.b32.xlu0 %v9792_v57, %s8624_s30  ;;  %3272 = vrot.lane.b32.xlu1 %v9879_v58, %s8623_s2  ;;  %v2723_v35 = vcombine.high %v2698_v50, %v2714_v38  ;;  %v3181_v51 = vrot.slane %v3167_v13, %v9015_v45  ;;  %v3197_v61 = vrot.slane %v3183_v14, %v9015_v45 }
 0x265   :  { %8320 = vmatpush3.xpose.msk.msra.mxu1 %vm5538_vm2, %v2790_v1  ;;  %v3031_v21 = vcombine.high %v9416_v19, %v9435_v36  ;;  %v3047_v5 = vcombine.high %v9438_v33, %v9448_v41  ;;  %v862_v11 = vcombine.low %v838_v63, %v854_v16  ;;  %v863_v12 = vcombine.high %v838_v63, %v854_v16  ;;  %v9937_v19 = vpop.f32.mrf.mxu0 }
 0x266   :  { %8339 = vmatpush3.xpose.msk.msra.mxu0 %vm5538_vm2, %v2791_v54  ;;  %8321 = vmatprep.subr.mxu1 %v11735_v59  ;;  %v3200_v30 = vcombine.low %v3181_v51, %v3197_v61  ;;  %v3201_v13 = vcombine.high %v3181_v51, %v3197_v61  ;;  %v3113_v14 = vrot.slane %v3099_v15, %v9015_v45 }
 0x267   :  { %8340 = vmatprep.subr.mxu0 %v11735_v59  ;;  %v3129_v22 = vrot.slane %v3115_v8, %v9015_v45  ;;  %v2963_v36 = vcombine.high %v9454_v17, %v9457_v52  ;;  %v2979_v33 = vcombine.high %v9472_v39, %v9480_v23  ;;  %v3045_v41 = vrot.slane %v3031_v21, %v9015_v45  ;;  %v8227_v52 = vpop.f32.mrf.mxu0 }
 0x268   :  { %3274 = vrot.lane.b32.xlu0 %v9824_v0, %s8623_s2  ;;  %3222 = vrot.lane.b32.xlu1 %v9903_v44, %s8622_s29  ;;  %v3061_v46 = vrot.slane %v3047_v5, %v9015_v45  ;;  %v9955_v17 = vadd.f32 %v9572_v10, %v9733_v7  ;;  %v2895_v39 = vcombine.high %v9637_v62, %v9640_v9 }
 0x269   :  { %8322 = vmatpush3.xpose.msk.msra.mxu1 %vm5538_vm2, %v2722_v25  ;;  %v3132_v1 = vcombine.low %v3113_v14, %v3129_v22  ;;  %v3133_v54 = vcombine.high %v3113_v14, %v3129_v22  ;;  %v2911_v23 = vcombine.high %v9643_v20, %v9657_v3  ;;  %v2977_v62 = vrot.slane %v2963_v36, %v9015_v45  ;;  %v555_v20 = vpop.f32.mrf.mxu0 }
 0x26a   :  { %8341 = vmatpush3.xpose.msk.msra.mxu0 %vm5538_vm2, %v2723_v35  ;;  %8345 = vmatprep.subr.mxu1 %v11735_v59  ;;  %v3064_v10 = vcombine.low %v3045_v41, %v3061_v46  ;;  %v3065_v50 = vcombine.high %v3045_v41, %v3061_v46  ;;  %v2993_v9 = vrot.slane %v2979_v33, %v9015_v45 }
 0x26b   :  { %8364 = vmatprep.subr.mxu0 %v11735_v59  ;;  %v9977_v38 = vadd.f32 %v9600_v4, %v9733_v7  ;;  %v2827_v3 = vcombine.high %v9681_v60, %v9684_v48  ;;  %v2909_v15 = vrot.slane %v2895_v39, %v9015_v45  ;;  %v2925_v8 = vrot.slane %v2911_v23, %v9015_v45  ;;  %v8230_v60 = vpop.f32.mrf.mxu0 }
 0x26c   :  { %8324 = vmatmul.mubr.msk.f32.vlgmr.msra.gmra.mxu1 %vm5538_vm2, %v862_v11  ;;  %3224 = vrot.lane.b32.xlu0 %v9879_v58, %s8622_s29  ;;  %v2843_v4 = vcombine.high %v9687_v37, %v9694_v55  ;;  %v2996_v63 = vcombine.low %v2977_v62, %v2993_v9  ;;  %v2997_v16 = vcombine.high %v2977_v62, %v2993_v9 }
 0x26d   :  { %8343 = vmatmul.mubr.msk.f32.vlgmr.msra.gmra.mxu0 %vm5538_vm2, %v863_v12  ;;  %8346 = vmatpush3.xpose.msk.msra.mxu1 %vm5538_vm2, %v3200_v30  ;;  %v2759_v48 = vcombine.high %v9707_v42, %v9710_v26  ;;  %v2775_v25 = vcombine.high %v9719_v43, %v9725_v34  ;;  %v2928_v37 = vcombine.low %v2909_v15, %v2925_v8  ;;  %v565_v14 = vpop.f32.mrf.mxu0 }
 0x26e   :  { %8365 = vmatpush3.xpose.msk.msra.mxu0 %vm5538_vm2, %v3201_v13  ;;  %8347 = vmatprep.subr.mxu1 %v11735_v59  ;;  %v2929_v55 = vcombine.high %v2909_v15, %v2925_v8  ;;  %v2841_v42 = vrot.slane %v2827_v3, %v9015_v45  ;;  %v2857_v26 = vrot.slane %v2843_v4, %v9015_v45 }
 0x26f   :  { %8366 = vmatprep.subr.mxu0 %v11735_v59  ;;  %3318 = vrot.lane.b32.xlu1 %v9903_v44, %s8624_s30  ;;  %v10008_v35 = vadd.f32 %v8230_v60, %v9733_v7  ;;  %v2691_v43 = vcombine.high %v9813_v31, %v9816_v24  ;;  %v2707_v34 = vcombine.high %v9827_v53, %v9830_v56 }
 0x270   :  { %8361 = vmatprep.mubr.msk.f32.mxu1 %vm8626_vm1, %v11735_v59  ;;  %8380 = vmatprep.mubr.msk.f32.mxu0 %vm8626_vm1, %v11735_v59  ;;  %v2773_v51 = vrot.slane %v2759_v48, %v9015_v45  ;;  %v2860_v61 = vcombine.low %v2841_v42, %v2857_v26  ;;  %v2861_v21 = vcombine.high %v2841_v42, %v2857_v26 }
 0x271   :  { %8348 = vmatpush3.xpose.msk.msra.mxu1 %vm5538_vm2, %v3132_v1  ;;  %3320 = vrot.lane.b32.xlu0 %v9879_v58, %s8624_s30  ;;  %v2789_v5 = vrot.slane %v2775_v25, %v9015_v45  ;;  %v831_v31 = vcombine.high %v9853_v40, %v9858_v49  ;;  %v847_v24 = vcombine.high %v9861_v6, %v9864_v29 }
 0x272   :  { %8367 = vmatpush3.xpose.msk.msra.mxu0 %vm5538_vm2, %v3133_v54  ;;  %8349 = vmatprep.subr.mxu1 %v11735_v59  ;;  %v10031_v53 = vadd.f32 %v8227_v52, %v9733_v7  ;;  %v2705_v56 = vrot.slane %v2691_v43, %v9015_v45  ;;  %v2721_v40 = vrot.slane %v2707_v34, %v9015_v45 }
 0x273   :  { %8368 = vmatprep.subr.mxu0 %v11735_v59  ;;  %3268 = vrot.lane.b32.xlu1 %v9955_v17, %s8623_s2  ;;  %v2792_v11 = vcombine.low %v2773_v51, %v2789_v5  ;;  %v2793_v12 = vcombine.high %v2773_v51, %v2789_v5  ;;  %v845_v49 = vrot.slane %v831_v31, %v9015_v45 }
 0x274   :  { %v861_v6 = vrot.slane %v847_v24, %v9015_v45  ;;  %v10048_v29 = vadd.f32 %v555_v20, %v9733_v7  ;;  %v2724_v30 = vcombine.low %v2705_v56, %v2721_v40  ;;  %v2725_v13 = vcombine.high %v2705_v56, %v2721_v40 }
 0x275   :  { %8350 = vmatpush3.xpose.msk.msra.mxu1 %vm5538_vm2, %v3064_v10  ;;  %3270 = vrot.lane.b32.xlu0 %v9903_v44, %s8623_s2  ;;  %v10063_v33 = vadd.f32 %v565_v14, %v9733_v7 }
 0x276   :  { %8369 = vmatpush3.xpose.msk.msra.mxu0 %vm5538_vm2, %v3065_v50  ;;  %8351 = vmatprep.subr.mxu1 %v11735_v59  ;;  %v864_v22 = vcombine.low %v845_v49, %v861_v6  ;;  %v865_v36 = vcombine.high %v845_v49, %v861_v6 }
 0x277   :  { %8370 = vmatprep.subr.mxu0 %v11735_v59  ;;  %3218 = vrot.lane.b32.xlu1 %v9977_v38, %s8622_s29  ;;  %11759 = vst [vmem:[#allocation8_spill] sm:$0xff] %v10063_v33 }
 0x279   :  { %8352 = vmatpush3.xpose.msk.msra.mxu1 %vm5538_vm2, %v2996_v63  ;;  %3220 = vrot.lane.b32.xlu0 %v9955_v17, %s8622_s29 }
 0x27a   :  { %8371 = vmatpush3.xpose.msk.msra.mxu0 %vm5538_vm2, %v2997_v16  ;;  %8353 = vmatprep.subr.mxu1 %v11735_v59 }
 0x27b   :  { %8372 = vmatprep.subr.mxu0 %v11735_v59  ;;  %3314 = vrot.lane.b32.xlu1 %v9977_v38, %s8624_s30 }
 0x27d   :  { %8354 = vmatpush3.xpose.msk.msra.mxu1 %vm5538_vm2, %v2928_v37  ;;  %3316 = vrot.lane.b32.xlu0 %v9955_v17, %s8624_s30 }
 0x27e   :  { %8373 = vmatpush3.xpose.msk.msra.mxu0 %vm5538_vm2, %v2929_v55  ;;  %8355 = vmatprep.subr.mxu1 %v11735_v59 }
 0x27f   :  { %8374 = vmatprep.subr.mxu0 %v11735_v59  ;;  %3248 = vrot.lane.b32.xlu1 %v10008_v35, %s8622_s29 }
 0x281   :  { %8356 = vmatpush3.xpose.msk.msra.mxu1 %vm5538_vm2, %v2860_v61  ;;  %3266 = vrot.lane.b32.xlu0 %v9977_v38, %s8623_s2 }
 0x282   :  { %8375 = vmatpush3.xpose.msk.msra.mxu0 %vm5538_vm2, %v2861_v21  ;;  %8357 = vmatprep.subr.mxu1 %v11735_v59 }
 0x283   :  { %8376 = vmatprep.subr.mxu0 %v11735_v59  ;;  %3344 = vrot.lane.b32.xlu1 %v10008_v35, %s8624_s30 }
 0x285   :  { %8358 = vmatpush3.xpose.msk.msra.mxu1 %vm5538_vm2, %v2792_v11  ;;  %3296 = vrot.lane.b32.xlu0 %v10008_v35, %s8623_s2 }
 0x286   :  { %8377 = vmatpush3.xpose.msk.msra.mxu0 %vm5538_vm2, %v2793_v12  ;;  %8359 = vmatprep.subr.mxu1 %v11735_v59 }
 0x287   :  { %8378 = vmatprep.subr.mxu0 %v11735_v59  ;;  %3292 = vrot.lane.b32.xlu1 %v10031_v53, %s8623_s2 }
 0x289   :  { %8360 = vmatpush3.xpose.msk.msra.mxu1 %vm5538_vm2, %v2724_v30  ;;  %3244 = vrot.lane.b32.xlu0 %v10031_v53, %s8622_s29 }
 0x28a   :  { %8379 = vmatpush3.xpose.msk.msra.mxu0 %vm5538_vm2, %v2725_v13  ;;  %8383 = vmatprep.subr.mxu1 %v11735_v59 }
 0x28b   :  { %8402 = vmatprep.subr.mxu0 %v11735_v59  ;;  %3242 = vrot.lane.b32.xlu1 %v10048_v29, %s8622_s29 }
 0x28c   :  { %8362 = vmatmul.mubr.msk.f32.vlgmr.msra.gmra.mxu1 %vm5538_vm2, %v864_v22 }
 0x28d   :  { %8381 = vmatmul.mubr.msk.f32.vlgmr.msra.gmra.mxu0 %vm5538_vm2, %v865_v36  ;;  %8399 = vmatprep.mubr.msk.f32.mxu1 %vm8626_vm1, %v11735_v59 }
 0x28e   :  { %8418 = vmatprep.mubr.msk.f32.mxu0 %vm8626_vm1, %v11735_v59  ;;  %3340 = vrot.lane.b32.xlu0 %v10031_v53, %s8624_s30 }
 0x28f   :  { %3294 = vrot.lane.b32.xlu1 %v10063_v33, %s8623_s2 }
 0x292   :  { %3246 = vrot.lane.b32.xlu0 %v10063_v33, %s8622_s29 }
 0x293   :  { %3342 = vrot.lane.b32.xlu1 %v10063_v33, %s8624_s30 }
 0x2c2   :  { %v3233_v41 = vpop.permute.xlu0 %3232  ;;  %v3281_v46 = vpop.permute.xlu1 %3280 }
 0x2c3   :  { %v3838_v1 = vcombine.low %v9758_v47, %v3281_v46  ;;  %v3839_v54 = vcombine.high %v9758_v47, %v3281_v46 }
 0x2c5   :  { %v3846_v50 = vrot.slane %v3838_v1, %v9007_v32  ;;  %v3853_v62 = vrot.slane %v3839_v54, %v9007_v32 }
 0x2c6   :  { %v3329_v52 = vpop.permute.xlu0 %3328  ;;  %v3279_v39 = vpop.permute.xlu1 %3278 }
 0x2c7   :  { %v3854_v23 = vcombine.low %v3233_v41, %v3329_v52  ;;  %v3855_v10 = vcombine.high %v3233_v41, %v3329_v52  ;;  %v3770_v47 = vcombine.low %v9776_v27, %v3279_v39  ;;  %v3771_v60 = vcombine.high %v9776_v27, %v3279_v39 }
 0x2c9   :  { %v3862_v9 = vrot.slane %v3854_v23, %v9007_v32  ;;  %v3869_v20 = vrot.slane %v3855_v10, %v9007_v32  ;;  %v3778_v21 = vrot.slane %v3770_v47, %v9007_v32  ;;  %v3785_v5 = vrot.slane %v3771_v60, %v9007_v32 }
 0x2ca   :  { %v3231_v3 = vpop.permute.xlu0 %3230  ;;  %v3277_v15 = vpop.permute.xlu1 %3276 }
 0x2cb   :  { %v3870_v8 = vcombine.low %v3846_v50, %v3862_v9  ;;  %v3871_v4 = vcombine.high %v3846_v50, %v3862_v9  ;;  %v3886_v63 = vcombine.low %v3853_v62, %v3869_v20  ;;  %v3887_v16 = vcombine.high %v3853_v62, %v3869_v20 }
 0x2cc   :  { %v3702_v40 = vcombine.low %v9792_v57, %v3277_v15  ;;  %v3703_v49 = vcombine.high %v9792_v57, %v3277_v15 }
 0x2cd   :  { %v3878_v48 = vrot.slane %v3870_v8, %v9015_v45  ;;  %v3885_v25 = vrot.slane %v3871_v4, %v9015_v45  ;;  %v3894_v37 = vrot.slane %v3886_v63, %v9015_v45  ;;  %v3901_v55 = vrot.slane %v3887_v16, %v9015_v45 }
 0x2ce   :  { %v3327_v42 = vpop.permute.xlu0 %3326  ;;  %v3227_v26 = vpop.permute.xlu1 %3226  ;;  %v3710_v4 = vrot.slane %v3702_v40, %v9007_v32  ;;  %v3717_v63 = vrot.slane %v3703_v49, %v9007_v32 }
 0x2cf   :  { %v4926_v43 = vcombine.low %v3878_v48, %v3885_v25  ;;  %v7853_v34 = vcombine.high %v3878_v48, %v3885_v25  ;;  %v4942_v51 = vcombine.low %v3894_v37, %v3901_v55  ;;  %v7854_v61 = vcombine.high %v3894_v37, %v3901_v55 }
 0x2d0   :  { %v3786_v31 = vcombine.low %v3231_v3, %v3327_v42  ;;  %v3787_v27 = vcombine.high %v3231_v3, %v3327_v42 }
 0x2d1   :  { %v10094_v24 = vrot.slane %v4926_v43, %v9007_v32  ;;  %v10097_v56 = vrot.slane %v7853_v34, %v9007_v32  ;;  %v10100_v11 = vrot.slane %v4942_v51, %v9007_v32  ;;  %v10103_v12 = vrot.slane %v7854_v61, %v9007_v32  ;;  %v5632_v23 = vpop.f32.mrf.mxu1 }
 0x2d2   :  { %v3794_v6 = vrot.slane %v3786_v31, %v9007_v32  ;;  %v3801_v30 = vrot.slane %v3787_v27, %v9007_v32  ;;  %v3229_v13 = vpop.permute.xlu0 %3228  ;;  %v3323_v14 = vpop.permute.xlu1 %3322 }
 0x2d3   :  { %11760 = vst [vmem:[#allocation6_spill] sm:$0xff] %v10094_v24  ;;  %11761 = vst [vmem:[#allocation7_spill] sm:$0xff] %v10097_v56  ;;  %v3650_v22 = vcombine.low %v3227_v26, %v3323_v14  ;;  %v3651_v36 = vcombine.high %v3227_v26, %v3323_v14  ;;  %v4958_v41 = vcombine.low %v10094_v24, %v10097_v56  ;;  %v5729_v57 = vpop.f32.mrf.mxu0  ;;  %v8249_v60 = vpop.f32.mrf.mxu1 }
 0x2d4   :  { %11762 = vst [vmem:[#allocation9_spill] sm:$0xff] %v10100_v11  ;;  %11763 = vst [vmem:[#allocation10_spill] sm:$0xff] %v10103_v12  ;;  %v4974_v46 = vcombine.low %v10100_v11, %v10103_v12  ;;  %v3802_v1 = vcombine.low %v3778_v21, %v3794_v6  ;;  %v3803_v54 = vcombine.high %v3778_v21, %v3794_v6 }
 0x2d5   :  { %v3818_v52 = vcombine.low %v3785_v5, %v3801_v30  ;;  %v3819_v39 = vcombine.high %v3785_v5, %v3801_v30  ;;  %v4966_v10 = vrot.slane %v4958_v41, %v9015_v45  ;;  %v8268_v48 = vpop.f32.mrf.mxu0  ;;  %v3658_v55 = vrot.slane %v3650_v22, %v9007_v32 }
 0x2d6   :  { %v4982_v50 = vrot.slane %v4974_v46, %v9015_v45  ;;  %v3810_v62 = vrot.slane %v3802_v1, %v9015_v45  ;;  %v3817_v9 = vrot.slane %v3803_v54, %v9015_v45  ;;  %v3325_v15 = vpop.permute.xlu0 %3324  ;;  %v10119_v8 = vpop.permute.xlu1 %3272  ;;  %v10125_v42 = vrot.slane %v3651_v36, %v9007_v32 }
 0x2d7   :  { %v3826_v20 = vrot.slane %v3818_v52, %v9015_v45  ;;  %v3833_v3 = vrot.slane %v3819_v39, %v9015_v45  ;;  %v3718_v16 = vcombine.low %v3229_v13, %v3325_v15  ;;  %v3719_v47 = vcombine.high %v3229_v13, %v3325_v15 }
 0x2d8   :  { %v4858_v25 = vcombine.low %v3810_v62, %v3817_v9  ;;  %v7851_v37 = vcombine.high %v3810_v62, %v3817_v9  ;;  %v4990_v61 = vcombine.low %v4966_v10, %v4982_v50  ;;  %v4991_v21 = vcombine.high %v4966_v10, %v4982_v50 }
 0x2d9   :  { %v4874_v26 = vcombine.low %v3826_v20, %v3833_v3  ;;  %v7852_v43 = vcombine.high %v3826_v20, %v3833_v3  ;;  %v3726_v34 = vrot.slane %v3718_v16, %v9007_v32  ;;  %v3733_v51 = vrot.slane %v3719_v47, %v9007_v32 }
 0x2da   :  { %v3275_v5 = vpop.permute.xlu0 %3274  ;;  %v10130_v31 = vrot.slane %v4858_v25, %v9007_v32  ;;  %v10133_v27 = vrot.slane %v7851_v37, %v9007_v32  ;;  %v10135_v13 = vpop.permute.xlu1 %3222  ;;  %v3566_v14 = vcombine.low %v9879_v58, %v10119_v8  ;;  %8384 = vmatpush3.msra.mxu1 %v4990_v61  ;;  %8403 = vmatpush3.msra.mxu0 %v4991_v21  ;;  %v10147_v54 = vmul.f32 0.35355338, %v5632_v23 }
 0x2db   :  { %v3734_v40 = vcombine.low %v3710_v4, %v3726_v34  ;;  %v3735_v49 = vcombine.high %v3710_v4, %v3726_v34  ;;  %v3750_v6 = vcombine.low %v3717_v63, %v3733_v51  ;;  %v3751_v30 = vcombine.high %v3717_v63, %v3733_v51  ;;  %8385 = vmatprep.subr.mxu1 %v11735_v59 }
 0x2dc   :  { %v3634_v22 = vcombine.low %v9824_v0, %v3275_v5  ;;  %v3635_v36 = vcombine.high %v9824_v0, %v3275_v5  ;;  %v10145_v1 = vrot.slane %v4874_v26, %v9007_v32  ;;  %8404 = vmatprep.subr.mxu0 %v11735_v59  ;;  %v10153_v0 = vrot.slane %v7852_v43, %v9007_v32 }
 0x2dd   :  { %v3742_v41 = vrot.slane %v3734_v40, %v9015_v45  ;;  %v3749_v46 = vrot.slane %v3735_v49, %v9015_v45  ;;  %v4890_v10 = vcombine.low %v10130_v31, %v10133_v27  ;;  %v3758_v50 = vrot.slane %v3750_v6, %v9015_v45 }
 0x2de   :  { %v3642_v52 = vrot.slane %v3634_v22, %v9007_v32  ;;  %v3649_v39 = vrot.slane %v3635_v36, %v9007_v32  ;;  %v3765_v62 = vrot.slane %v3751_v30, %v9015_v45  ;;  %v3567_v23 = vcombine.high %v9879_v58, %v10119_v8  ;;  %v3225_v15 = vpop.permute.xlu0 %3224 }
 0x2df   :  { %v4898_v63 = vrot.slane %v4890_v10, %v9015_v45  ;;  %v4906_v16 = vcombine.low %v10145_v1, %v10153_v0  ;;  %v10165_v47 = vmul.f32 0.35355338, %v5729_v57  ;;  %v6324_v60 = vsel %vm6323_vm3, %v10147_v54, -inf }
 0x2e0   :  { %v3666_v9 = vcombine.low %v3642_v52, %v3658_v55  ;;  %v3667_v20 = vcombine.high %v3642_v52, %v3658_v55  ;;  %v3682_v3 = vcombine.low %v3649_v39, %v10125_v42  ;;  %v4790_v48 = vcombine.low %v3742_v41, %v3749_v46  ;;  %6325 = vmax.xlane.f32.xlu1 %v6324_v60 }
 0x2e1   :  { %v3319_v4 = vpop.permute.xlu1 %3318  ;;  %v3574_v25 = vrot.slane %v3566_v14, %v9007_v32  ;;  %v3683_v58 = vcombine.high %v3649_v39, %v10125_v42  ;;  %v7849_v8 = vcombine.high %v3742_v41, %v3749_v46  ;;  %v4806_v37 = vcombine.low %v3758_v50, %v3765_v62 }
 0x2e2   :  { %v4914_v55 = vrot.slane %v4906_v16, %v9015_v45  ;;  %v6327_v26 = vsel %vm6323_vm3, %v10165_v47, -inf  ;;  %v7850_v43 = vcombine.high %v3758_v50, %v3765_v62  ;;  %v3581_v57 = vrot.slane %v3567_v23, %v9007_v32 }
 0x2e3   :  { %v3674_v34 = vrot.slane %v3666_v9, %v9015_v45  ;;  %v3681_v51 = vrot.slane %v3667_v20, %v9015_v45  ;;  %6328 = vmax.xlane.f32.xlu0 %v6327_v26  ;;  %v10178_v61 = vrot.slane %v3682_v3, %v9015_v45  ;;  %v3514_v42 = vcombine.low %v10135_v13, %v3319_v4  ;;  %v3321_v40 = vpop.permute.xlu0 %3320 }
 0x2e4   :  { %v4922_v21 = vcombine.low %v4898_v63, %v4914_v55  ;;  %v4923_v5 = vcombine.high %v4898_v63, %v4914_v55  ;;  %v3697_v6 = vrot.slane %v3683_v58, %v9015_v45  ;;  %v3515_v30 = vcombine.high %v10135_v13, %v3319_v4 }
 0x2e5   :  { %v3269_v49 = vpop.permute.xlu1 %3268  ;;  %v3582_v14 = vcombine.low %v3225_v15, %v3321_v40  ;;  %v3583_v22 = vcombine.high %v3225_v15, %v3321_v40  ;;  %v10184_v36 = vrot.slane %v4790_v48, %v9007_v32  ;;  %v10187_v41 = vrot.slane %v7849_v8, %v9007_v32 }
 0x2e6   :  { %8386 = vmatpush3.msra.mxu1 %v4922_v21  ;;  %8405 = vmatpush3.msra.mxu0 %v4923_v5  ;;  %v10190_v46 = vrot.slane %v4806_v37, %v9007_v32  ;;  %v4722_v52 = vcombine.low %v3674_v34, %v3681_v51  ;;  %v7847_v39 = vcombine.high %v3674_v34, %v3681_v51 }
 0x2e7   :  { %v3590_v10 = vrot.slane %v3582_v14, %v9007_v32  ;;  %v3597_v50 = vrot.slane %v3583_v22, %v9007_v32  ;;  %8387 = vmatprep.subr.mxu1 %v11735_v59  ;;  %v3522_v13 = vrot.slane %v3514_v42, %v9007_v32  ;;  %v3430_v62 = vcombine.low %v9955_v17, %v3269_v49  ;;  %v3271_v23 = vpop.permute.xlu0 %3270 }
 0x2e8   :  { %8406 = vmatprep.subr.mxu0 %v11735_v59  ;;  %v10199_v20 = vrot.slane %v7850_v43, %v9007_v32  ;;  %v4822_v3 = vcombine.low %v10184_v36, %v10187_v41  ;;  %v3431_v16 = vcombine.high %v9955_v17, %v3269_v49  ;;  %v3498_v48 = vcombine.low %v9903_v44, %v3271_v23 }
 0x2e9   :  { %v3219_v9 = vpop.permute.xlu1 %3218  ;;  %v3598_v15 = vcombine.low %v3574_v25, %v3590_v10  ;;  %v3599_v4 = vcombine.high %v3574_v25, %v3590_v10  ;;  %v3614_v63 = vcombine.low %v3581_v57, %v3597_v50  ;;  %v3615_v60 = vcombine.high %v3581_v57, %v3597_v50 }
 0x2ea   :  { %v3499_v58 = vcombine.high %v9903_v44, %v3271_v23  ;;  %v4838_v8 = vcombine.low %v10190_v46, %v10199_v20  ;;  %v4738_v37 = vcombine.low %v10178_v61, %v3697_v6  ;;  %v7848_v55 = vcombine.high %v10178_v61, %v3697_v6 }
 0x2eb   :  { %v3529_v26 = vrot.slane %v3515_v30, %v9007_v32  ;;  %v4830_v43 = vrot.slane %v4822_v3, %v9015_v45  ;;  %v10213_v25 = vrot.slane %v3430_v62, %v9007_v32  ;;  %v3506_v17 = vrot.slane %v3498_v48, %v9007_v32  ;;  %v3221_v34 = vpop.permute.xlu0 %3220 }
 0x2ec   :  { %v3513_v57 = vrot.slane %v3499_v58, %v9007_v32  ;;  %v4846_v44 = vrot.slane %v4838_v8, %v9015_v45  ;;  %v3606_v51 = vrot.slane %v3598_v15, %v9015_v45  ;;  %v3613_v42 = vrot.slane %v3599_v4, %v9015_v45 }
 0x2ed   :  { %v10221_v61 = vrot.slane %v3431_v16, %v9007_v32  ;;  %v3315_v21 = vpop.permute.xlu1 %3314  ;;  %v10224_v5 = vrot.slane %v4722_v52, %v9007_v32  ;;  %v3622_v40 = vrot.slane %v3614_v63, %v9015_v45  ;;  %v3629_v49 = vrot.slane %v3615_v60, %v9015_v45 }
 0x2ee   :  { %v3530_v6 = vcombine.low %v3506_v17, %v3522_v13  ;;  %v3531_v30 = vcombine.high %v3506_v17, %v3522_v13  ;;  %v4854_v14 = vcombine.low %v4830_v43, %v4846_v44  ;;  %v4855_v22 = vcombine.high %v4830_v43, %v4846_v44 }
 0x2ef   :  { %v10229_v10 = vrot.slane %v7847_v39, %v9007_v32  ;;  %v10232_v50 = vrot.slane %v4738_v37, %v9007_v32  ;;  %v3546_v62 = vcombine.low %v3513_v57, %v3529_v26  ;;  %v3547_v23 = vcombine.high %v3513_v57, %v3529_v26  ;;  %v3317_v52 = vpop.permute.xlu0 %3316 }
 0x2f0   :  { %v3378_v3 = vcombine.low %v3219_v9, %v3315_v21  ;;  %v3379_v15 = vcombine.high %v3219_v9, %v3315_v21  ;;  %v4654_v4 = vcombine.low %v3606_v51, %v3613_v42  ;;  %v7845_v16 = vcombine.high %v3606_v51, %v3613_v42  ;;  %8388 = vmatpush3.msra.mxu1 %v4854_v14 }
 0x2f1   :  { %8407 = vmatpush3.msra.mxu0 %v4855_v22  ;;  %v10235_v63 = vrot.slane %v7848_v55, %v9007_v32  ;;  %v4670_v13 = vcombine.low %v3622_v40, %v3629_v49  ;;  %v7846_v60 = vcombine.high %v3622_v40, %v3629_v49  ;;  %v10238_v39 = vrot.slane %v3530_v6, %v9015_v45  ;;  %v3249_v55 = vpop.permute.xlu1 %3248 }
 0x2f2   :  { %v10241_v48 = vrot.slane %v3531_v30, %v9015_v45  ;;  %8389 = vmatprep.subr.mxu1 %v11735_v59  ;;  %8408 = vmatprep.subr.mxu0 %v11735_v59  ;;  %v4754_v9 = vcombine.low %v10224_v5, %v10229_v10  ;;  %v3446_v8 = vcombine.low %v3221_v34, %v3317_v52 }
 0x2f3   :  { %v4770_v58 = vcombine.low %v10232_v50, %v10235_v63  ;;  %v3447_v37 = vcombine.high %v3221_v34, %v3317_v52  ;;  %v10250_v26 = vrot.slane %v3546_v62, %v9015_v45  ;;  %v10253_v43 = vrot.slane %v3547_v23, %v9015_v45  ;;  %v3267_v44 = vpop.permute.xlu0 %3266 }
 0x2f4   :  { %v3386_v17 = vrot.slane %v3378_v3, %v9007_v32  ;;  %v3393_v57 = vrot.slane %v3379_v15, %v9007_v32  ;;  %v4762_v51 = vrot.slane %v4754_v9, %v9015_v45  ;;  %v3454_v21 = vrot.slane %v3446_v8, %v9007_v32 }
 0x2f5   :  { %v4778_v42 = vrot.slane %v4770_v58, %v9015_v45  ;;  %v3461_v34 = vrot.slane %v3447_v37, %v9007_v32  ;;  %v3362_v6 = vcombine.low %v9977_v38, %v3267_v44  ;;  %v3363_v30 = vcombine.high %v9977_v38, %v3267_v44  ;;  %v3345_v8 = vpop.permute.xlu1 %3344 }
 0x2f6   :  { %v3462_v62 = vcombine.low %v10213_v25, %v3454_v21  ;;  %v10269_v23 = vrot.slane %v4654_v4, %v9007_v32  ;;  %v3463_v3 = vcombine.high %v10213_v25, %v3454_v21  ;;  %v10277_v37 = vrot.slane %v7845_v16, %v9007_v32 }
 0x2f7   :  { %v4786_v14 = vcombine.low %v4762_v51, %v4778_v42  ;;  %v4787_v22 = vcombine.high %v4762_v51, %v4778_v42  ;;  %v3478_v15 = vcombine.low %v10221_v61, %v3461_v34  ;;  %v3370_v52 = vrot.slane %v3362_v6, %v9007_v32  ;;  %v3297_v58 = vpop.permute.xlu0 %3296 }
 0x2f8   :  { %v3377_v9 = vrot.slane %v3363_v30, %v9007_v32  ;;  %v3479_v38 = vcombine.high %v10221_v61, %v3461_v34  ;;  %v10280_v4 = vrot.slane %v4670_v13, %v9007_v32  ;;  %v4398_v51 = vcombine.low %v3249_v55, %v3345_v8 }
 0x2f9   :  { %8390 = vmatpush3.msra.mxu1 %v4786_v14  ;;  %8409 = vmatpush3.msra.mxu0 %v4787_v22  ;;  %v3394_v44 = vcombine.low %v3370_v52, %v3386_v17  ;;  %v3395_v25 = vcombine.high %v3370_v52, %v3386_v17  ;;  %v10284_v42 = vrot.slane %v7846_v60, %v9007_v32 }
 0x2fa   :  { %8391 = vmatprep.subr.mxu1 %v11735_v59  ;;  %v4602_v21 = vcombine.low %v10250_v26, %v10253_v43  ;;  %v3410_v6 = vcombine.low %v3377_v9, %v3393_v57  ;;  %v3411_v61 = vcombine.high %v3377_v9, %v3393_v57  ;;  %v4399_v34 = vcombine.high %v3249_v55, %v3345_v8 }
 0x2fb   :  { %8410 = vmatprep.subr.mxu0 %v11735_v59  ;;  %v7844_v16 = vcombine.high %v10250_v26, %v10253_v43  ;;  %v10292_v13 = vrot.slane %v3462_v62, %v9015_v45  ;;  %v10295_v17 = vrot.slane %v3463_v3, %v9015_v45  ;;  %v10298_v60 = vrot.slane %v3478_v15, %v9015_v45  ;;  %v3245_v3 = vpop.permute.xlu0 %3244 }
 0x2fc   :  { %v10301_v30 = vrot.slane %v3479_v38, %v9015_v45  ;;  %v3402_v57 = vrot.slane %v3394_v44, %v9015_v45  ;;  %v3409_v55 = vrot.slane %v3395_v25, %v9015_v45  ;;  %v4686_v14 = vcombine.low %v10269_v23, %v10277_v37 }
 0x2fd   :  { %v10308_v26 = vrot.slane %v3410_v6, %v9015_v45  ;;  %v4406_v43 = vrot.slane %v4398_v51, %v9007_v32  ;;  %v4702_v22 = vcombine.low %v10280_v4, %v10284_v42  ;;  %v4382_v62 = vcombine.low %v10008_v35, %v3297_v58  ;;  %v3293_v6 = vpop.permute.xlu1 %3292 }
 0x2fe   :  { %v3425_v15 = vrot.slane %v3411_v61, %v9015_v45  ;;  %v4413_v52 = vrot.slane %v4399_v34, %v9007_v32  ;;  %v4694_v9 = vrot.slane %v4686_v14, %v9015_v45  ;;  %v4383_v38 = vcombine.high %v10008_v35, %v3297_v58 }
 0x2ff   :  { %v4518_v8 = vcombine.low %v10292_v13, %v10295_v17  ;;  %v4710_v25 = vrot.slane %v4702_v22, %v9015_v45  ;;  %v4390_v51 = vrot.slane %v4382_v62, %v9007_v32  ;;  %v4534_v61 = vcombine.low %v10298_v60, %v10301_v30 }
 0x300   :  { %v4450_v49 = vcombine.low %v3402_v57, %v3409_v55  ;;  %v7839_v34 = vcombine.high %v3402_v57, %v3409_v55  ;;  %v4397_v14 = vrot.slane %v4383_v38, %v9007_v32  ;;  %v4466_v11 = vcombine.low %v10308_v26, %v3425_v15 }
 0x301   :  { %v4718_v40 = vcombine.low %v4694_v9, %v4710_v25  ;;  %v4719_v35 = vcombine.high %v4694_v9, %v4710_v25  ;;  %v4414_v58 = vcombine.low %v4390_v51, %v4406_v43  ;;  %v4415_v33 = vcombine.high %v4390_v51, %v4406_v43  ;;  %v3341_v43 = vpop.permute.xlu0 %3340 }
 0x302   :  { %v4430_v12 = vcombine.low %v4397_v14, %v4413_v52  ;;  %v4431_v44 = vcombine.high %v4397_v14, %v4413_v52  ;;  %v4246_v22 = vcombine.low %v10031_v53, %v3293_v6  ;;  %v11764_v57 = vcombine.low %v10238_v39, %v10241_v48 }
 0x303   :  { %8392 = vmatpush3.msra.mxu1 %v4718_v40  ;;  %8411 = vmatpush3.msra.mxu0 %v4719_v35  ;;  %v10330_v62 = vrot.slane %v4414_v58, %v9015_v45  ;;  %v10333_v24 = vrot.slane %v4415_v33, %v9015_v45  ;;  %v4247_v40 = vcombine.high %v10031_v53, %v3293_v6 }
 0x304   :  { %v10339_v55 = vrot.slane %v11764_v57, %v9007_v32  ;;  %v10342_v9 = vrot.slane %v4430_v12, %v9015_v45  ;;  %v10345_v52 = vrot.slane %v4431_v44, %v9015_v45  ;;  %8393 = vmatprep.subr.mxu1 %v11735_v59  ;;  %8412 = vmatprep.subr.mxu0 %v11735_v59 }
 0x305   :  { %v11765_v12 = vcombine.high %v10238_v39, %v10241_v48  ;;  %v10361_v44 = vrot.slane %v4602_v21, %v9007_v32  ;;  %v10368_v6 = vrot.slane %v7844_v16, %v9007_v32  ;;  %v4262_v14 = vcombine.low %v3245_v3, %v3341_v43 }
 0x306   :  { %v7842_v35 = vcombine.high %v10298_v60, %v10301_v30  ;;  %v7840_v39 = vcombine.high %v10308_v26, %v3425_v15  ;;  %v4263_v21 = vcombine.high %v3245_v3, %v3341_v43  ;;  %v4254_v51 = vrot.slane %v4246_v22, %v9007_v32 }
 0x307   :  { %v10358_v25 = vrot.slane %v11765_v12, %v9007_v32  ;;  %v10376_v12 = vrot.slane %v4450_v49, %v9007_v32  ;;  %v4634_v16 = vcombine.low %v10361_v44, %v10368_v6  ;;  %v4270_v53 = vrot.slane %v4262_v14, %v9007_v32 }
 0x308   :  { %v10383_v60 = vrot.slane %v7839_v34, %v9007_v32  ;;  %v4261_v30 = vrot.slane %v4247_v40, %v9007_v32  ;;  %v4277_v3 = vrot.slane %v4263_v21, %v9007_v32  ;;  %v10389_v49 = vrot.slane %v4466_v11, %v9007_v32 }
 0x309   :  { %v4618_v48 = vcombine.low %v10339_v55, %v10358_v25  ;;  %v5826_v58 = vpop.f32.mrf.mxu1  ;;  %v5923_v57 = vpop.f32.mrf.mxu0  ;;  %v4642_v22 = vrot.slane %v4634_v16, %v9015_v45  ;;  %v4278_v38 = vcombine.low %v4254_v51, %v4270_v53  ;;  %v4279_v33 = vcombine.high %v4254_v51, %v4270_v53 }
 0x30a   :  { %v10393_v14 = vrot.slane %v7840_v39, %v9007_v32  ;;  %v4294_v34 = vcombine.low %v4261_v30, %v4277_v3  ;;  %v4295_v56 = vcombine.high %v4261_v30, %v4277_v3  ;;  %v10396_v40 = vrot.slane %v4518_v8, %v9007_v32 }
 0x30b   :  { %v4626_v26 = vrot.slane %v4618_v48, %v9015_v45  ;;  %v8287_v15 = vpop.f32.mrf.mxu1  ;;  %v8306_v43 = vpop.f32.mrf.mxu0  ;;  %v4286_v21 = vrot.slane %v4278_v38, %v9015_v45  ;;  %v11766_v53 = vcombine.high %v10292_v13, %v10295_v17  ;;  %v10409_v39 = vrot.slane %v4534_v61, %v9007_v32 }
 0x30c   :  { %v4293_v15 = vrot.slane %v4279_v33, %v9015_v45  ;;  %v4302_v11 = vrot.slane %v4294_v34, %v9015_v45  ;;  %v4309_v16 = vrot.slane %v4295_v56, %v9015_v45  ;;  %v10412_v38 = vrot.slane %v7842_v35, %v9007_v32 }
 0x30d   :  { %v4650_v48 = vcombine.low %v4626_v26, %v4642_v22  ;;  %v4651_v28 = vcombine.high %v4626_v26, %v4642_v22  ;;  %v10406_v51 = vrot.slane %v11766_v53, %v9007_v32  ;;  %v10414_v33 = vmul.f32 0.35355338, %v5826_v58 }
 0x30e   :  { %v5334_v8 = vcombine.low %v4286_v21, %v4293_v15  ;;  %v7865_v30 = vcombine.high %v4286_v21, %v4293_v15  ;;  %v5350_v26 = vcombine.low %v4302_v11, %v4309_v16  ;;  %v7866_v56 = vcombine.high %v4302_v11, %v4309_v16 }
 0x30f   :  { %8394 = vmatpush3.msra.mxu1 %v4650_v48  ;;  %8413 = vmatpush3.msra.mxu0 %v4651_v28  ;;  %v4550_v13 = vcombine.low %v10396_v40, %v10406_v51  ;;  %v10420_v17 = vmul.f32 0.35355338, %v5923_v57  ;;  %v4566_v28 = vcombine.low %v10409_v39, %v10412_v38  ;;  %v4482_v58 = vcombine.low %v10376_v12, %v10383_v60 }
 0x310   :  { %8395 = vmatprep.subr.mxu1 %v11735_v59  ;;  %8414 = vmatprep.subr.mxu0 %v11735_v59  ;;  %v4498_v3 = vcombine.low %v10389_v49, %v10393_v14  ;;  %v6330_v57 = vsel %vm6323_vm3, %v10414_v33, -inf  ;;  %v11767_v16 = vcombine.low %v10330_v62, %v10333_v24 }
 0x311   :  { %v4558_v61 = vrot.slane %v4550_v13, %v9015_v45  ;;  %v4574_v35 = vrot.slane %v4566_v28, %v9015_v45  ;;  %v6333_v43 = vsel %vm6323_vm3, %v10420_v17, -inf  ;;  %v4490_v48 = vrot.slane %v4482_v58, %v9015_v45  ;;  %6331 = vmax.xlane.f32.xlu0 %v6330_v57 }
 0x312   :  { %6334 = vmax.xlane.f32.xlu1 %v6333_v43  ;;  %v4506_v21 = vrot.slane %v4498_v3, %v9015_v45  ;;  %v10442_v53 = vrot.slane %v11767_v16, %v9007_v32  ;;  %v4891_v13 = vcombine.high %v10130_v31, %v10133_v27  ;;  %v11768_v28 = vcombine.high %v10330_v62, %v10333_v24 }
 0x313   :  { %v4582_v22 = vcombine.low %v4558_v61, %v4574_v35  ;;  %v4583_v34 = vcombine.high %v4558_v61, %v4574_v35  ;;  %v11769_v35 = vcombine.low %v10342_v9, %v10345_v52  ;;  %v4907_v3 = vcombine.high %v10145_v1, %v10153_v0 }
 0x314   :  { %v4514_v15 = vcombine.low %v4490_v48, %v4506_v21  ;;  %v4515_v11 = vcombine.high %v4490_v48, %v4506_v21  ;;  %v10450_v61 = vrot.slane %v11768_v28, %v9007_v32  ;;  %v11770_v31 = vcombine.high %v10342_v9, %v10345_v52 }
 0x315   :  { %8396 = vmatpush3.msra.mxu1 %v4582_v22  ;;  %8415 = vmatpush3.msra.mxu0 %v4583_v34  ;;  %v10456_v58 = vrot.slane %v11769_v35, %v9007_v32  ;;  %v10468_v24 = vrot.slane %v5334_v8, %v9007_v32  ;;  %v10471_v62 = vrot.slane %v7865_v30, %v9007_v32 }
 0x316   :  { %8397 = vmatprep.subr.mxu1 %v11735_v59  ;;  %8416 = vmatprep.subr.mxu0 %v11735_v59  ;;  %v10465_v27 = vrot.slane %v11770_v31, %v9007_v32  ;;  %v10474_v43 = vrot.slane %v4891_v13, %v9015_v45  ;;  %v10478_v57 = vrot.slane %v4907_v3, %v9015_v45 }
 0x317   :  { %8398 = vmatpush3.msra.mxu1 %v4514_v15  ;;  %8417 = vmatpush3.msra.mxu0 %v4515_v11  ;;  %v4823_v1 = vcombine.high %v10184_v36, %v10187_v41  ;;  %v4839_v0 = vcombine.high %v10190_v46, %v10199_v20  ;;  %v4755_v9 = vcombine.high %v10224_v5, %v10229_v10 }
 0x318   :  { %8421 = vmatprep.subr.mxu1 %v11735_v59  ;;  %8440 = vmatprep.subr.mxu0 %v11735_v59  ;;  %v10487_v52 = vrot.slane %v5350_v26, %v9007_v32  ;;  %v10490_v8 = vrot.slane %v7866_v56, %v9007_v32  ;;  %v4771_v30 = vcombine.high %v10232_v50, %v10235_v63 }
 0x319   :  { %v4687_v22 = vcombine.high %v10269_v23, %v10277_v37  ;;  %v10499_v41 = vrot.slane %v4823_v1, %v9015_v45  ;;  %v10502_v46 = vrot.slane %v4839_v0, %v9015_v45  ;;  %v10505_v20 = vrot.slane %v4755_v9, %v9015_v45 }
 0x31a   :  { %v10508_v5 = vrot.slane %v4771_v30, %v9015_v45  ;;  %v4703_v63 = vcombine.high %v10280_v4, %v10284_v42  ;;  %v4619_v26 = vcombine.high %v10339_v55, %v10358_v25  ;;  %v4635_v56 = vcombine.high %v10361_v44, %v10368_v6 }
 0x31b   :  { %11771 = vst [vmem:[#allocation11_spill] sm:$0xff] %v10499_v41  ;;  %11772 = vst [vmem:[#allocation12_spill] sm:$0xff] %v10502_v46  ;;  %v10513_v50 = vrot.slane %v4687_v22, %v9015_v45  ;;  %v4551_v42 = vcombine.high %v10396_v40, %v10406_v51  ;;  %v4567_v25 = vcombine.high %v10409_v39, %v10412_v38  ;;  %v11791_v30 = vlaneseq }
 0x31c   :  { %11773 = vst [vmem:[#allocation13_spill] sm:$0xff] %v10505_v20  ;;  %11774 = vst [vmem:[#allocation14_spill] sm:$0xff] %v10508_v5  ;;  %v10528_v48 = vrot.slane %v4703_v63, %v9015_v45  ;;  %v10535_v21 = vrot.slane %v4619_v26, %v9015_v45  ;;  %v10538_v55 = vrot.slane %v4635_v56, %v9015_v45 }
 0x31d   :  { %11775 = vst [vmem:[#allocation15_spill] sm:$0xff] %v10513_v50  ;;  %v4483_v44 = vcombine.high %v10376_v12, %v10383_v60  ;;  %v10547_v15 = vrot.slane %v4551_v42, %v9015_v45  ;;  %v4499_v51 = vcombine.high %v10389_v49, %v10393_v14  ;;  %v10556_v39 = vrot.slane %v4567_v25, %v9015_v45 }
 0x31e   :  { %11776 = vst [vmem:[#allocation16_spill] sm:$0xff] %v10528_v48  ;;  %11777 = vst [vmem:[#allocation17_spill] sm:$0xff] %v10535_v21  ;;  %v5502_v49 = vcombine.low %v10442_v53, %v10450_v61  ;;  %v5518_v14 = vcombine.low %v10456_v58, %v10465_v27  ;;  %v5366_v28 = vcombine.low %v10468_v24, %v10471_v62  ;;  %v10669_v3 = vand.u32 127, %v11791_v30 }
 0x31f   :  { %11778 = vst [vmem:[#allocation18_spill] sm:$0xff] %v10538_v55  ;;  %11779 = vst [vmem:[#allocation19_spill] sm:$0xff] %v10547_v15  ;;  %v10559_v12 = vrot.slane %v4483_v44, %v9015_v45  ;;  %v10566_v38 = vrot.slane %v4499_v51, %v9015_v45  ;;  %v5382_v9 = vcombine.low %v10487_v52, %v10490_v8 }
 0x320   :  { %11780 = vst [vmem:[#allocation20_spill] sm:$0xff] %v10556_v39  ;;  %v10583_v31 = vrot.slane %v5502_v49, %v9015_v45  ;;  %v10586_v1 = vrot.slane %v5518_v14, %v9015_v45  ;;  %v10589_v0 = vrot.slane %v5366_v28, %v9015_v45  ;;  %v5503_v63 = vcombine.high %v10442_v53, %v10450_v61 }
 0x321   :  { %11781 = vst [vmem:[#allocation21_spill] sm:$0xff] %v10559_v12  ;;  %11782 = vst [vmem:[#allocation22_spill] sm:$0xff] %v10566_v38  ;;  %v5519_v26 = vcombine.high %v10456_v58, %v10465_v27  ;;  %v10602_v25 = vrot.slane %v5382_v9, %v9015_v45  ;;  %v5367_v28 = vcombine.high %v10468_v24, %v10471_v62  ;;  %vm6398_vm4 = vcmp.ge.s32.totalorder %v10669_v3, 15 }
 0x322   :  { %11783 = vst [vmem:[#allocation23_spill] sm:$0xff] %v10583_v31  ;;  %11784 = vst [vmem:[#allocation24_spill] sm:$0xff] %v10586_v1  ;;  %v10607_v44 = vrot.slane %v5503_v63, %v9015_v45  ;;  %v5383_v9 = vcombine.high %v10487_v52, %v10490_v8 }
 0x323   :  { %3338 = vrot.lane.b32.xlu1 %v10048_v29, %s8624_s30  ;;  %11785 = vst [vmem:[#allocation25_spill] sm:$0xff] %v10589_v0  ;;  %11786 = vst [vmem:[#allocation26_spill] sm:$0xff] %v10602_v25  ;;  %v10610_v51 = vrot.slane %v5519_v26, %v9015_v45  ;;  %v10625_v63 = vrot.slane %v5367_v28, %v9015_v45 }
 0x324   :  { %11787 = vst [vmem:[#allocation27_spill] sm:$0xff] %v10607_v44  ;;  %v10628_v26 = vrot.slane %v5383_v9, %v9015_v45 }
 0x325   :  { %11788 = vst [vmem:[#allocation28_spill] sm:$0xff] %v10610_v51  ;;  %11789 = vst [vmem:[#allocation29_spill] sm:$0xff] %v10625_v63 }
 0x326   :  { %11790 = vst [vmem:[#allocation30_spill] sm:$0xff] %v10628_v26 }
 0x327   :  { %3290 = vrot.lane.b32.xlu0 %v10048_v29, %s8623_s2 }
 0x32c   :  { %v6020_v56 = vpop.f32.mrf.mxu1 }
 0x32d   :  { %v6117_v42 = vpop.f32.mrf.mxu0  ;;  %v10636_v27 = vmul.f32 0.35355338, %v6020_v56 }
 0x32e   :  { %v8325_v49 = vpop.f32.mrf.mxu1  ;;  %v10634_v58 = vmul.f32 0.35355338, %v6117_v42 }
 0x32f   :  { %v8344_v14 = vpop.f32.mrf.mxu0  ;;  %v6336_v62 = vsel %vm6323_vm3, %v10636_v27, -inf }
 0x330   :  { %v6339_v24 = vsel %vm6323_vm3, %v10634_v58, -inf }
 0x346   :  { %6337 = vmax.xlane.f32.xlu0 %v6336_v62  ;;  %v10652_v62 = vadd.f32 %v9923_v18, %v9733_v7 }
 0x347   :  { %6340 = vmax.xlane.f32.xlu1 %v6339_v24  ;;  %v3243_v24 = vpop.permute.xlu1 %3242 }
 0x34b   :  { %v10654_v61 = vpop.permute.xlu1 %3294 }
 0x34c   :  { %v6214_v52 = vpop.f32.mrf.mxu1 }
 0x34d   :  { %v6311_v8 = vpop.f32.mrf.mxu0  ;;  %v10642_v28 = vmul.f32 0.35355338, %v6214_v52 }
 0x34e   :  { %v10644_v9 = vmul.f32 0.35355338, %v6311_v8  ;;  %v8363_v49 = vpop.f32.mrf.mxu1 }
 0x34f   :  { %v8382_v14 = vpop.f32.mrf.mxu0  ;;  %v6342_v42 = vsel %vm6323_vm3, %v10642_v28, -inf  ;;  %v10660_v49 = vpop.permute.xlu1 %3342 }
 0x350   :  { %v6345_v56 = vsel %vm6323_vm3, %v10644_v9, -inf  ;;  %6343 = vmax.xlane.f32.xlu0 %v6342_v42  ;;  %v10662_v14 = vpop.permute.xlu0 %3246 }
 0x351   :  { %6346 = vmax.xlane.f32.xlu1 %v6345_v56 }
 0x362   :  { %3288 = vrot.lane.b32.xlu1 %v10652_v62, %s8623_s2 }
 0x366   :  { %3240 = vrot.lane.b32.xlu0 %v10652_v62, %s8622_s29 }
 0x369   :  { %v6326_v52 = vpop.xlane.xlu1 %6325 }
 0x36a   :  { %v6348_v8 = vsub.f32 %v10147_v54, %v6326_v52 }
 0x36c   :  { %v6329_v56 = vpop.xlane.xlu0 %6328  ;;  %v6356_v18 = vmul.f32 1.442695, %v6348_v8 }
 0x36d   :  { %v6349_v42 = vsub.f32 %v10165_v47, %v6329_v56 }
 0x36e   :  { %8560 = vpow2.f32 %v6356_v18 }
 0x36f   :  { %v6358_v22 = vmul.f32 1.442695, %v6349_v42 }
 0x371   :  { %8562 = vpow2.f32 %v6358_v22 }
 0x37b   :  { %v10666_v53 = vpop.eup %8560 }
 0x37c   :  { %v6372_v54 = vsel %vm6323_vm3, %v10666_v53, 0.0  ;;  %v10686_v30 = vsel %vm6398_vm4, %v10666_v53, 0.0 }
 0x37d   :  { %v6433_v52 = vsel %vm6323_vm3, %v10686_v30, -inf  ;;  %v6409_v8 = vsel %vm6323_vm3, %v10686_v30, 0.0 }
 0x37e   :  { %v10671_v13 = vpop.eup %8562 }
 0x37f   :  { %v6375_v60 = vsel %vm6323_vm3, %v10671_v13, 0.0  ;;  %v10681_v47 = vsel %vm6398_vm4, %v10671_v13, 0.0 }
 0x380   :  { %v6436_v22 = vsel %vm6323_vm3, %v10681_v47, -inf }
 0x385   :  { %6373 = vadd.xlane.f32.xlu0 %v6372_v54 }
 0x386   :  { %6376 = vadd.xlane.f32.xlu1 %v6375_v60  ;;  %v6412_v60 = vsel %vm6323_vm3, %v10681_v47, 0.0 }
 0x389   :  { %6434 = vmax.xlane.f32.xlu0 %v6433_v52 }
 0x38a   :  { %6437 = vmax.xlane.f32.xlu1 %v6436_v22 }
 0x38d   :  { %6410 = vadd.xlane.f32.xlu0 %v6409_v8 }
 0x38e   :  { %6413 = vadd.xlane.f32.xlu1 %v6412_v60 }
 0x39a   :  { %v6332_v42 = vpop.xlane.xlu0 %6331 }
 0x39b   :  { %v6335_v56 = vpop.xlane.xlu1 %6334  ;;  %v6350_v54 = vsub.f32 %v10414_v33, %v6332_v42 }
 0x39c   :  { %v6351_v18 = vsub.f32 %v10420_v17, %v6335_v56 }
 0x39d   :  { %v6360_v40 = vmul.f32 1.442695, %v6350_v54 }
 0x39e   :  { %v6362_v35 = vmul.f32 1.442695, %v6351_v18  ;;  %v3291_v22 = vpop.permute.xlu0 %3290 }
 0x39f   :  { %v3339_v16 = vpop.permute.xlu1 %3338  ;;  %v4178_v11 = vcombine.low %v10048_v29, %v3291_v22  ;;  %v4179_v37 = vcombine.high %v10048_v29, %v3291_v22 }
 0x3a0   :  { %8564 = vpow2.f32 %v6362_v35  ;;  %v4194_v52 = vcombine.low %v3243_v24, %v3339_v16  ;;  %v4195_v4 = vcombine.high %v3243_v24, %v3339_v16 }
 0x3a1   :  { %8566 = vpow2.f32 %v6360_v40  ;;  %v4186_v17 = vrot.slane %v4178_v11, %v9007_v32  ;;  %v4193_v33 = vrot.slane %v4179_v37, %v9007_v32 }
 0x3a2   :  { %v4202_v60 = vrot.slane %v4194_v52, %v9007_v32  ;;  %v4209_v8 = vrot.slane %v4195_v4, %v9007_v32 }
 0x3a4   :  { %v4210_v56 = vcombine.low %v4186_v17, %v4202_v60  ;;  %v4211_v42 = vcombine.high %v4186_v17, %v4202_v60  ;;  %v4226_v18 = vcombine.low %v4193_v33, %v4209_v8  ;;  %v4227_v35 = vcombine.high %v4193_v33, %v4209_v8 }
 0x3a6   :  { %v4218_v54 = vrot.slane %v4210_v56, %v9015_v45  ;;  %v4225_v40 = vrot.slane %v4211_v42, %v9015_v45  ;;  %v4234_v16 = vrot.slane %v4226_v18, %v9015_v45  ;;  %v4241_v29 = vrot.slane %v4227_v35, %v9015_v45 }
 0x3a8   :  { %v5266_v24 = vcombine.low %v4218_v54, %v4225_v40  ;;  %v7863_v22 = vcombine.high %v4218_v54, %v4225_v40  ;;  %v5282_v52 = vcombine.low %v4234_v16, %v4241_v29  ;;  %v7864_v4 = vcombine.high %v4234_v16, %v4241_v29 }
 0x3aa   :  { %v5273_v11 = vrot.slane %v5266_v24, %v9007_v32  ;;  %v5281_v37 = vrot.slane %v7863_v22, %v9007_v32  ;;  %v5289_v60 = vrot.slane %v5282_v52, %v9007_v32  ;;  %v5297_v8 = vrot.slane %v7864_v4, %v9007_v32 }
 0x3ac   :  { %v5298_v33 = vcombine.low %v5273_v11, %v5281_v37  ;;  %v5314_v56 = vcombine.low %v5289_v60, %v5297_v8  ;;  %v5299_v42 = vcombine.high %v5273_v11, %v5281_v37  ;;  %v5315_v18 = vcombine.high %v5289_v60, %v5297_v8 }
 0x3ad   :  { %v10712_v17 = vpop.eup %8564 }
 0x3ae   :  { %11792 = vst [vmem:[#allocation31_spill] sm:$0xff] %v10712_v17  ;;  %v10714_v6 = vpop.eup %8566  ;;  %v6381_v35 = vsel %vm6323_vm3, %v10712_v17, 0.0  ;;  %v10728_v16 = vsel %vm6398_vm4, %v10712_v17, 0.0  ;;  %v10731_v29 = vrot.slane %v5298_v33, %v9015_v45  ;;  %v10734_v24 = vrot.slane %v5314_v56, %v9015_v45 }
 0x3af   :  { %11793 = vst [vmem:[#allocation32_spill] sm:$0xff] %v10714_v6  ;;  %v6378_v54 = vsel %vm6323_vm3, %v10714_v6, 0.0  ;;  %6382 = vadd.xlane.f32.xlu0 %v6381_v35  ;;  %v10723_v40 = vsel %vm6398_vm4, %v10714_v6, 0.0  ;;  %11795 = vst [vmem:[#allocation34_spill] sm:$0xff] %v10728_v16  ;;  %v10737_v22 = vrot.slane %v5299_v42, %v9015_v45  ;;  %v10740_v52 = vrot.slane %v5315_v18, %v9015_v45 }
 0x3b0   :  { %11794 = vst [vmem:[#allocation33_spill] sm:$0xff] %v10723_v40  ;;  %6379 = vadd.xlane.f32.xlu1 %v6378_v54  ;;  %11796 = vst [vmem:[#allocation35_spill] sm:$0xff] %v10731_v29  ;;  %v6439_v4 = vsel %vm6323_vm3, %v10723_v40, -inf  ;;  %v6442_v60 = vsel %vm6323_vm3, %v10728_v16, -inf  ;;  %v6415_v56 = vsel %vm6323_vm3, %v10723_v40, 0.0  ;;  %v6418_v42 = vsel %vm6323_vm3, %v10728_v16, 0.0 }
 0x3b1   :  { %11797 = vst [vmem:[#allocation36_spill] sm:$0xff] %v10734_v24  ;;  %11798 = vst [vmem:[#allocation37_spill] sm:$0xff] %v10737_v22 }
 0x3b2   :  { %11799 = vst [vmem:[#allocation38_spill] sm:$0xff] %v10740_v52 }
 0x3b3   :  { %6440 = vmax.xlane.f32.xlu0 %v6439_v4 }
 0x3b4   :  { %6443 = vmax.xlane.f32.xlu1 %v6442_v60 }
 0x3b7   :  { %6416 = vadd.xlane.f32.xlu0 %v6415_v56 }
 0x3b8   :  { %6419 = vadd.xlane.f32.xlu1 %v6418_v42 }
 0x3cf   :  { %v6338_v35 = vpop.xlane.xlu0 %6337 }
 0x3d0   :  { %v6341_v18 = vpop.xlane.xlu1 %6340  ;;  %v6352_v4 = vsub.f32 %v10636_v27, %v6338_v35 }
 0x3d1   :  { %v6353_v54 = vsub.f32 %v10634_v58, %v6341_v18 }
 0x3d2   :  { %v6364_v8 = vmul.f32 1.442695, %v6352_v4 }
 0x3d3   :  { %v6366_v37 = vmul.f32 1.442695, %v6353_v54 }
 0x3d5   :  { %8568 = vpow2.f32 %v6366_v37 }
 0x3d6   :  { %8570 = vpow2.f32 %v6364_v8 }
 0x3d9   :  { %v6344_v11 = vpop.xlane.xlu0 %6343 }
 0x3da   :  { %v6347_v33 = vpop.xlane.xlu1 %6346  ;;  %v6354_v60 = vsub.f32 %v10642_v28, %v6344_v11 }
 0x3db   :  { %v6355_v10 = vsub.f32 %v10644_v9, %v6347_v33 }
 0x3dc   :  { %v6368_v34 = vmul.f32 1.442695, %v6354_v60 }
 0x3dd   :  { %v6370_v23 = vmul.f32 1.442695, %v6355_v10  ;;  %v10806_v4 = vpop.permute.xlu0 %3240 }
 0x3de   :  { %8572 = vpow2.f32 %v6368_v34  ;;  %v10808_v60 = vpop.permute.xlu1 %3288 }
 0x3df   :  { %8574 = vpow2.f32 %v6370_v23 }
 0x3e2   :  { %v10762_v56 = vpop.eup %8568 }
 0x3e3   :  { %11800 = vst [vmem:[#allocation39_spill] sm:$0xff] %v10762_v56  ;;  %v10764_v42 = vpop.eup %8570  ;;  %v6387_v58 = vsel %vm6323_vm3, %v10762_v56, 0.0  ;;  %v10773_v28 = vsel %vm6398_vm4, %v10762_v56, 0.0 }
 0x3e4   :  { %11801 = vst [vmem:[#allocation40_spill] sm:$0xff] %v10764_v42  ;;  %v6384_v27 = vsel %vm6323_vm3, %v10764_v42, 0.0  ;;  %6388 = vadd.xlane.f32.xlu1 %v6387_v58  ;;  %11802 = vst [vmem:[#allocation41_spill] sm:$0xff] %v10773_v28  ;;  %v10778_v10 = vsel %vm6398_vm4, %v10764_v42, 0.0  ;;  %v6448_v34 = vsel %vm6323_vm3, %v10773_v28, -inf  ;;  %v6424_v18 = vsel %vm6323_vm3, %v10773_v28, 0.0 }
 0x3e5   :  { %6385 = vadd.xlane.f32.xlu0 %v6384_v27  ;;  %11803 = vst [vmem:[#allocation42_spill] sm:$0xff] %v10778_v10  ;;  %v6445_v11 = vsel %vm6323_vm3, %v10778_v10, -inf  ;;  %v6421_v8 = vsel %vm6323_vm3, %v10778_v10, 0.0 }
 0x3e8   :  { %6449 = vmax.xlane.f32.xlu1 %v6448_v34 }
 0x3e9   :  { %6446 = vmax.xlane.f32.xlu0 %v6445_v11 }
 0x3eb   :  { %v10780_v23 = vpop.eup %8572 }
 0x3ec   :  { %v10784_v9 = vpop.eup %8574  ;;  %v10798_v33 = vsel %vm6398_vm4, %v10780_v23, 0.0  ;;  %6422 = vadd.xlane.f32.xlu1 %v6421_v8 }
 0x3ed   :  { %v10791_v37 = vsel %vm6398_vm4, %v10784_v9, 0.0  ;;  %6425 = vadd.xlane.f32.xlu0 %v6424_v18  ;;  %v6451_v54 = vsel %vm6323_vm3, %v10798_v33, -inf }
 0x3ee   :  { %v6454_v35 = vsel %vm6323_vm3, %v10791_v37, -inf }
 0x3f0   :  { %6455 = vmax.xlane.f32.xlu1 %v6454_v35 }
 0x3f1   :  { %6452 = vmax.xlane.f32.xlu0 %v6451_v54  ;;  %v10834_v54 = vadd.f32 %v9937_v19, %v9733_v7 }
 0x40e   :  { %v10810_v3 = vpop.xlane.xlu0 %6373 }
 0x40f   :  { %v10812_v58 = vpop.xlane.xlu1 %6376 }
 0x412   :  { %v10814_v27 = vpop.xlane.xlu0 %6434 }
 0x413   :  { %v10816_v34 = vpop.xlane.xlu1 %6437  ;;  %vm6465_vm5 = vcmp.eq.f32.partialorder %v10686_v30, %v10814_v27 }
 0x414   :  { %vm6466_vm6 = vcmp.eq.f32.partialorder %v10681_v47, %v10816_v34  ;;  %v10823_v11 = vsel %vm6465_vm5, -1.0, %v10686_v30 }
 0x415   :  { %v10826_v8 = vsel %vm6466_vm6, -1.0, %v10681_v47  ;;  %v6481_v18 = vsel %vm6323_vm3, %v10823_v11, -inf }
 0x416   :  { %v6484_v35 = vsel %vm6323_vm3, %v10826_v8, -inf  ;;  %6482 = vmax.xlane.f32.xlu0 %v6481_v18  ;;  %v10840_v36 = vpop.xlane.xlu0 %6410 }
 0x417   :  { %6485 = vmax.xlane.f32.xlu1 %v6484_v35  ;;  %v10842_v52 = vpop.xlane.xlu1 %6413 }
 0x428   :  { %3238 = vrot.lane.b32.xlu1 %v10834_v54, %s8622_s29 }
 0x42c   :  { %3336 = vrot.lane.b32.xlu0 %v10652_v62, %s8624_s30 }
 0x438   :  { %v10844_v22 = vpop.xlane.xlu0 %6382 }
 0x439   :  { %11804 = vst [vmem:[#allocation43_spill] sm:$0xff] %v10844_v22  ;;  %v10846_v26 = vpop.xlane.xlu1 %6379 }
 0x43a   :  { %11805 = vst [vmem:[#allocation44_spill] sm:$0xff] %v10846_v26 }
 0x43c   :  { %v10848_v18 = vpop.xlane.xlu0 %6440 }
 0x43d   :  { %v10850_v35 = vpop.xlane.xlu1 %6443  ;;  %vm6467_vm7 = vcmp.eq.f32.partialorder %v10723_v40, %v10848_v18 }
 0x43e   :  { %vm6468_vm8 = vcmp.eq.f32.partialorder %v10728_v16, %v10850_v35  ;;  %v10857_v19 = vsel %vm6467_vm7, -1.0, %v10723_v40  ;;  %v4111_v40 = vcombine.high %v10652_v62, %v10808_v60 }
 0x43f   :  { %v10860_v63 = vsel %vm6468_vm8, -1.0, %v10728_v16  ;;  %v6487_v51 = vsel %vm6323_vm3, %v10857_v19, -inf }
 0x440   :  { %v6490_v44 = vsel %vm6323_vm3, %v10860_v63, -inf  ;;  %v10868_v56 = vpop.xlane.xlu0 %6416  ;;  %v4125_v38 = vrot.slane %v4111_v40, %v9007_v32 }
 0x441   :  { %v10866_v42 = vpop.xlane.xlu1 %6419  ;;  %11807 = vst [vmem:[#allocation46_spill] sm:$0xff] %v10868_v56 }
 0x442   :  { %11806 = vst [vmem:[#allocation45_spill] sm:$0xff] %v10866_v42 }
 0x44b   :  { %6488 = vmax.xlane.f32.xlu0 %v6487_v51 }
 0x44c   :  { %6491 = vmax.xlane.f32.xlu1 %v6490_v44 }
 0x46d   :  { %v10870_v24 = vpop.xlane.xlu1 %6388 }
 0x46e   :  { %11808 = vst [vmem:[#allocation47_spill] sm:$0xff] %v10870_v24  ;;  %v10872_v29 = vpop.xlane.xlu0 %6385 }
 0x46f   :  { %11809 = vst [vmem:[#allocation48_spill] sm:$0xff] %v10872_v29 }
 0x471   :  { %v10874_v25 = vpop.xlane.xlu1 %6449 }
 0x472   :  { %v10876_v0 = vpop.xlane.xlu0 %6446  ;;  %vm6470_vm9 = vcmp.eq.f32.partialorder %v10773_v28, %v10874_v25 }
 0x473   :  { %vm6469_vm10 = vcmp.eq.f32.partialorder %v10778_v10, %v10876_v0  ;;  %v10883_v44 = vsel %vm6470_vm9, -1.0, %v10773_v28 }
 0x474   :  { %v10886_v51 = vsel %vm6469_vm10, -1.0, %v10778_v10  ;;  %v6496_v24 = vsel %vm6323_vm3, %v10883_v44, -inf }
 0x475   :  { %v6493_v29 = vsel %vm6323_vm3, %v10886_v51, -inf  ;;  %6497 = vmax.xlane.f32.xlu1 %v6496_v24  ;;  %v10892_v1 = vpop.xlane.xlu1 %6422 }
 0x476   :  { %11810 = vst [vmem:[#allocation49_spill] sm:$0xff] %v10892_v1  ;;  %6494 = vmax.xlane.f32.xlu0 %v6493_v29  ;;  %v10894_v31 = vpop.xlane.xlu0 %6425  ;;  %v4110_v1 = vcombine.low %v10652_v62, %v10808_v60 }
 0x477   :  { %11811 = vst [vmem:[#allocation50_spill] sm:$0xff] %v10894_v31 }
 0x479   :  { %v10896_v16 = vpop.xlane.xlu1 %6455 }
 0x47a   :  { %v10898_v17 = vpop.xlane.xlu0 %6452  ;;  %vm6472_vm11 = vcmp.eq.f32.partialorder %v10791_v37, %v10896_v16 }
 0x47b   :  { %vm6471_vm12 = vcmp.eq.f32.partialorder %v10798_v33, %v10898_v17  ;;  %v10905_v10 = vsel %vm6472_vm11, -1.0, %v10791_v37 }
 0x47c   :  { %v10908_v24 = vsel %vm6471_vm12, -1.0, %v10798_v33  ;;  %v6502_v29 = vsel %vm6323_vm3, %v10905_v10, -inf }
 0x47d   :  { %v6499_v28 = vsel %vm6323_vm3, %v10908_v24, -inf  ;;  %6503 = vmax.xlane.f32.xlu1 %v6502_v29 }
 0x47e   :  { %6500 = vmax.xlane.f32.xlu0 %v6499_v28  ;;  %v4118_v28 = vrot.slane %v4110_v1, %v9007_v32 }
 0x48e   :  { %3334 = vrot.lane.b32.xlu1 %v10834_v54, %s8624_s30 }
 0x494   :  { %3286 = vrot.lane.b32.xlu0 %v10834_v54, %s8623_s2 }
 0x49f   :  { %v10918_v31 = vpop.xlane.xlu0 %6482 }
 0x4a0   :  { %v10930_v21 = vpop.xlane.xlu1 %6485  ;;  %vm6513_vm14 = vcmp.eq.f32.partialorder %v10823_v11, %v10918_v31 }
 0x4a1   :  { %vm6514_vm13 = vcmp.eq.f32.partialorder %v10826_v8, %v10930_v21 }
 0x4a3   :  { %v3337_v6 = vpop.permute.xlu0 %3336 }
 0x4a4   :  { %v4126_v22 = vcombine.low %v10806_v4, %v3337_v6  ;;  %v4127_v29 = vcombine.high %v10806_v4, %v3337_v6 }
 0x4a6   :  { %v4134_v12 = vrot.slane %v4126_v22, %v9007_v32  ;;  %v4141_v42 = vrot.slane %v4127_v29, %v9007_v32 }
 0x4a8   :  { %v4142_v26 = vcombine.low %v4118_v28, %v4134_v12  ;;  %v4143_v39 = vcombine.high %v4118_v28, %v4134_v12  ;;  %v4158_v15 = vcombine.low %v4125_v38, %v4141_v42  ;;  %v4159_v55 = vcombine.high %v4125_v38, %v4141_v42 }
 0x4a9   :  { %v10945_v28 = vsel %vm6514_vm13, -1.0, %v10826_v8 }
 0x4aa   :  { %v4150_v62 = vrot.slane %v4142_v26, %v9015_v45  ;;  %v4157_v60 = vrot.slane %v4143_v39, %v9015_v45  ;;  %v4166_v6 = vrot.slane %v4158_v15, %v9015_v45  ;;  %v4173_v1 = vrot.slane %v4159_v55, %v9015_v45 }
 0x4ac   :  { %v5198_v4 = vcombine.low %v4150_v62, %v4157_v60  ;;  %v7861_v40 = vcombine.high %v4150_v62, %v4157_v60  ;;  %v5214_v56 = vcombine.low %v4166_v6, %v4173_v1  ;;  %v7862_v22 = vcombine.high %v4166_v6, %v4173_v1 }
 0x4ad   :  { %v10960_v1 = vsel %vm6513_vm14, -1.0, %v10823_v11  ;;  %v3239_v11 = vpop.permute.xlu1 %3238 }
 0x4ae   :  { %v5205_v12 = vrot.slane %v5198_v4, %v9007_v32  ;;  %v5213_v38 = vrot.slane %v7861_v40, %v9007_v32  ;;  %v5221_v42 = vrot.slane %v5214_v56, %v9007_v32  ;;  %v5229_v26 = vrot.slane %v7862_v22, %v9007_v32 }
 0x4b0   :  { %v5230_v15 = vcombine.low %v5205_v12, %v5213_v38  ;;  %v5246_v55 = vcombine.low %v5221_v42, %v5229_v26  ;;  %v5231_v39 = vcombine.high %v5205_v12, %v5213_v38  ;;  %v5247_v29 = vcombine.high %v5221_v42, %v5229_v26 }
 0x4b1   :  { %v6532_v12 = vsel %vm6323_vm3, %v10945_v28, -inf  ;;  %v6529_v38 = vsel %vm6323_vm3, %v10960_v1, -inf }
 0x4b2   :  { %v10948_v62 = vrot.slane %v5230_v15, %v9015_v45  ;;  %v10951_v60 = vrot.slane %v5246_v55, %v9015_v45  ;;  %v10954_v56 = vrot.slane %v5231_v39, %v9015_v45  ;;  %v10957_v6 = vrot.slane %v5247_v29, %v9015_v45  ;;  %6533 = vmax.xlane.f32.xlu1 %v6532_v12 }
 0x4b3   :  { %6530 = vmax.xlane.f32.xlu0 %v6529_v38 }
 0x4b4   :  { %11812 = vst [vmem:[#allocation51_spill] sm:$0xff] %v10948_v62  ;;  %11813 = vst [vmem:[#allocation52_spill] sm:$0xff] %v10951_v60 }
 0x4b5   :  { %11814 = vst [vmem:[#allocation53_spill] sm:$0xff] %v10954_v56  ;;  %11815 = vst [vmem:[#allocation54_spill] sm:$0xff] %v10957_v6 }
 0x4d4   :  { %v10974_v42 = vpop.xlane.xlu0 %6488 }
 0x4d5   :  { %v10976_v26 = vpop.xlane.xlu1 %6491  ;;  %vm6515_vm15 = vcmp.eq.f32.partialorder %v10857_v19, %v10974_v42 }
 0x4d6   :  { %vm6516_vm4 = vcmp.eq.f32.partialorder %v10860_v63, %v10976_v26  ;;  %v10983_v15 = vsel %vm6515_vm15, -1.0, %v10857_v19 }
 0x4d7   :  { %v10986_v55 = vsel %vm6516_vm4, -1.0, %v10860_v63  ;;  %v6535_v39 = vsel %vm6323_vm3, %v10983_v15, -inf }
 0x4d8   :  { %v6538_v29 = vsel %vm6323_vm3, %v10986_v55, -inf  ;;  %6536 = vmax.xlane.f32.xlu0 %v6535_v39 }
 0x4d9   :  { %6539 = vmax.xlane.f32.xlu1 %v6538_v29 }
 0x4fe   :  { %v10992_v12 = vpop.xlane.xlu1 %6497 }
 0x4ff   :  { %v10994_v38 = vpop.xlane.xlu0 %6494  ;;  %vm6518_vm5 = vcmp.eq.f32.partialorder %v10883_v44, %v10992_v12 }
 0x500   :  { %vm6517_vm6 = vcmp.eq.f32.partialorder %v10886_v51, %v10994_v38  ;;  %v11001_v63 = vsel %vm6518_vm5, -1.0, %v10883_v44 }
 0x501   :  { %v11004_v19 = vsel %vm6517_vm6, -1.0, %v10886_v51  ;;  %v6544_v39 = vsel %vm6323_vm3, %v11001_v63, -inf }
 0x502   :  { %v6541_v29 = vsel %vm6323_vm3, %v11004_v19, -inf  ;;  %6545 = vmax.xlane.f32.xlu1 %v6544_v39 }
 0x503   :  { %6542 = vmax.xlane.f32.xlu0 %v6541_v29 }
 0x506   :  { %v11010_v22 = vpop.xlane.xlu1 %6503 }
 0x507   :  { %v11012_v40 = vpop.xlane.xlu0 %6500  ;;  %vm6520_vm7 = vcmp.eq.f32.partialorder %v10905_v10, %v11010_v22 }
 0x508   :  { %vm6519_vm8 = vcmp.eq.f32.partialorder %v10908_v24, %v11012_v40  ;;  %v11019_v44 = vsel %vm6520_vm7, -1.0, %v10905_v10 }
 0x509   :  { %v11022_v51 = vsel %vm6519_vm8, -1.0, %v10908_v24  ;;  %v6550_v39 = vsel %vm6323_vm3, %v11019_v44, -inf }
 0x50a   :  { %v6547_v29 = vsel %vm6323_vm3, %v11022_v51, -inf  ;;  %6551 = vmax.xlane.f32.xlu1 %v6550_v39  ;;  %v3335_v8 = vpop.permute.xlu1 %3334 }
 0x50b   :  { %6548 = vmax.xlane.f32.xlu0 %v6547_v29  ;;  %v3287_v4 = vpop.permute.xlu0 %3286  ;;  %v4058_v6 = vcombine.low %v3239_v11, %v3335_v8  ;;  %v4059_v56 = vcombine.high %v3239_v11, %v3335_v8 }
 0x50c   :  { %v4042_v60 = vcombine.low %v10834_v54, %v3287_v4  ;;  %v4043_v10 = vcombine.high %v10834_v54, %v3287_v4 }
 0x50d   :  { %v4066_v62 = vrot.slane %v4058_v6, %v9007_v32  ;;  %v4073_v24 = vrot.slane %v4059_v56, %v9007_v32 }
 0x50e   :  { %v4050_v48 = vrot.slane %v4042_v60, %v9007_v32  ;;  %v4057_v50 = vrot.slane %v4043_v10, %v9007_v32 }
 0x510   :  { %v4074_v5 = vcombine.low %v4050_v48, %v4066_v62  ;;  %v4075_v20 = vcombine.high %v4050_v48, %v4066_v62  ;;  %v4090_v39 = vcombine.low %v4057_v50, %v4073_v24  ;;  %v4091_v46 = vcombine.high %v4057_v50, %v4073_v24 }
 0x512   :  { %v4082_v29 = vrot.slane %v4074_v5, %v9015_v45  ;;  %v4089_v8 = vrot.slane %v4075_v20, %v9015_v45  ;;  %v4098_v11 = vrot.slane %v4090_v39, %v9015_v45  ;;  %v4105_v54 = vrot.slane %v4091_v46, %v9015_v45 }
 0x513   :  { %v11044_v39 = vadd.f32 %v9881_v2, %v9733_v7 }
 0x514   :  { %v5130_v4 = vcombine.low %v4082_v29, %v4089_v8  ;;  %v7859_v6 = vcombine.high %v4082_v29, %v4089_v8  ;;  %v5146_v41 = vcombine.low %v4098_v11, %v4105_v54  ;;  %v7860_v56 = vcombine.high %v4098_v11, %v4105_v54 }
 0x516   :  { %v5137_v60 = vrot.slane %v5130_v4, %v9007_v32  ;;  %v5145_v10 = vrot.slane %v7859_v6, %v9007_v32  ;;  %v5153_v48 = vrot.slane %v5146_v41, %v9007_v32  ;;  %v5161_v50 = vrot.slane %v7860_v56, %v9007_v32 }
 0x517   :  { %v6506_v6 = vadd.f32 %v10930_v21, %v10816_v34  ;;  %v6505_v56 = vadd.f32 %v10918_v31, %v10814_v27  ;;  %v6507_v31 = vadd.f32 %v10974_v42, %v10848_v18  ;;  %v6508_v27 = vadd.f32 %v10976_v26, %v10850_v35 }
 0x518   :  { %v5162_v62 = vcombine.low %v5137_v60, %v5145_v10  ;;  %v5178_v5 = vcombine.low %v5153_v48, %v5161_v50  ;;  %v5163_v24 = vcombine.high %v5137_v60, %v5145_v10  ;;  %v5179_v20 = vcombine.high %v5153_v48, %v5161_v50 }
 0x519   :  { %v6510_v42 = vadd.f32 %v10992_v12, %v10874_v25  ;;  %v6509_v26 = vadd.f32 %v10994_v38, %v10876_v0  ;;  %v6512_v0 = vadd.f32 %v11010_v22, %v10896_v16  ;;  %v6511_v12 = vadd.f32 %v11012_v40, %v10898_v17  ;;  %v11816_v22 = vld [vmem:[#allocation5_spill] sm:$0xff] }
 0x51a   :  { %v11047_v46 = vrot.slane %v5162_v62, %v9015_v45  ;;  %v11050_v29 = vrot.slane %v5178_v5, %v9015_v45  ;;  %v11053_v8 = vrot.slane %v5163_v24, %v9015_v45  ;;  %v11056_v41 = vrot.slane %v5179_v20, %v9015_v45 }
 0x51b   :  { %3284 = vrot.lane.b32.xlu1 %v11044_v39, %s8623_s2 }
 0x51c   :  { %v5194_v11 = vcombine.low %v11047_v46, %v11050_v29  ;;  %v5195_v2 = vcombine.high %v11047_v46, %v11050_v29  ;;  %v5196_v54 = vcombine.low %v11053_v8, %v11056_v41  ;;  %v5197_v4 = vcombine.high %v11053_v8, %v11056_v41  ;;  %v11873_v46 = vld [vmem:[#allocation48_spill] sm:$0xff] }
 0x521   :  { %3236 = vrot.lane.b32.xlu0 %v11044_v39, %s8622_s29 }
 0x53b   :  { %v6534_v60 = vpop.xlane.xlu1 %6533 }
 0x53c   :  { %v6531_v10 = vpop.xlane.xlu0 %6530  ;;  %v6554_v48 = vadd.f32 %v6534_v60, %v6506_v6  ;;  %vm6562_vm9 = vcmp.eq.f32.partialorder %v10945_v28, %v6534_v60 }
 0x53d   :  { %v6553_v50 = vadd.f32 %v6531_v10, %v6505_v56  ;;  %vm6561_vm10 = vcmp.eq.f32.partialorder %v10960_v1, %v6531_v10  ;;  %v11077_v62 = vsel %vm6562_vm9, -1.0, %v10945_v28 }
 0x53e   :  { %v6569_v5 = vsel %vm6561_vm10, -1.0, %v10960_v1  ;;  %v6580_v24 = vsel %vm6323_vm3, %v11077_v62, -inf }
 0x53f   :  { %v6577_v21 = vsel %vm6323_vm3, %v6569_v5, -inf  ;;  %6581 = vmax.xlane.f32.xlu1 %v6580_v24 }
 0x540   :  { %6578 = vmax.xlane.f32.xlu0 %v6577_v21 }
 0x556   :  { %3332 = vrot.lane.b32.xlu0 %v11044_v39, %s8624_s30 }
 0x561   :  { %v6537_v34 = vpop.xlane.xlu0 %6536 }
 0x562   :  { %v6540_v28 = vpop.xlane.xlu1 %6539  ;;  %v11089_v20 = vadd.f32 %v6537_v34, %v6507_v31  ;;  %vm6563_vm11 = vcmp.eq.f32.partialorder %v10983_v15, %v6537_v34 }
 0x563   :  { %v11092_v1 = vadd.f32 %v6540_v28, %v6508_v27  ;;  %vm6564_vm12 = vcmp.eq.f32.partialorder %v10986_v55, %v6540_v28  ;;  %v11096_v6 = vsel %vm6563_vm11, -1.0, %v10983_v15  ;;  %v11147_v28 = vadd.f32 %v11816_v22, %v9733_v7 }
 0x564   :  { %v6583_v56 = vsel %vm6323_vm3, %v11096_v6, -inf  ;;  %v11101_v18 = vsel %vm6564_vm12, -1.0, %v10986_v55 }
 0x565   :  { %6584 = vmax.xlane.f32.xlu1 %v6583_v56  ;;  %v6586_v35 = vsel %vm6323_vm3, %v11101_v18, -inf }
 0x569   :  { %6587 = vmax.xlane.f32.xlu1 %v6586_v35 }
 0x58b   :  { %v6546_v60 = vpop.xlane.xlu1 %6545 }
 0x58c   :  { %v6543_v15 = vpop.xlane.xlu0 %6542  ;;  %v11109_v10 = vadd.f32 %v6546_v60, %v6510_v42  ;;  %vm6566_vm14 = vcmp.eq.f32.partialorder %v11001_v63, %v6546_v60 }
 0x58d   :  { %v11111_v24 = vadd.f32 %v6543_v15, %v6509_v26  ;;  %vm6565_vm13 = vcmp.eq.f32.partialorder %v11004_v19, %v6543_v15  ;;  %v11121_v25 = vsel %vm6566_vm14, -1.0, %v11001_v63 }
 0x58e   :  { %v11116_v55 = vsel %vm6565_vm13, -1.0, %v11004_v19  ;;  %v6592_v38 = vsel %vm6323_vm3, %v11121_v25, -inf }
 0x58f   :  { %v6589_v21 = vsel %vm6323_vm3, %v11116_v55, -inf }
 0x590   :  { %6590 = vmax.xlane.f32.xlu1 %v6589_v21 }
 0x593   :  { %v6552_v31 = vpop.xlane.xlu1 %6551 }
 0x594   :  { %v6549_v27 = vpop.xlane.xlu0 %6548  ;;  %6593 = vmax.xlane.f32.xlu1 %v6592_v38  ;;  %v11129_v19 = vadd.f32 %v6552_v31, %v6512_v0  ;;  %vm6568_vm4 = vcmp.eq.f32.partialorder %v11019_v44, %v6552_v31 }
 0x595   :  { %v11131_v34 = vadd.f32 %v6549_v27, %v6511_v12  ;;  %vm6567_vm15 = vcmp.eq.f32.partialorder %v11022_v51, %v6549_v27  ;;  %v11141_v16 = vsel %vm6568_vm4, -1.0, %v11019_v44 }
 0x596   :  { %v11136_v63 = vsel %vm6567_vm15, -1.0, %v11022_v51  ;;  %v6598_v40 = vsel %vm6323_vm3, %v11141_v16, -inf }
 0x597   :  { %v6595_v17 = vsel %vm6323_vm3, %v11136_v63, -inf  ;;  %v3285_v51 = vpop.permute.xlu1 %3284 }
 0x598   :  { %6596 = vmax.xlane.f32.xlu1 %v6595_v17  ;;  %v3237_v56 = vpop.permute.xlu0 %3236  ;;  %v3974_v60 = vcombine.low %v11044_v39, %v3285_v51  ;;  %v3975_v7 = vcombine.high %v11044_v39, %v3285_v51 }
 0x59c   :  { %6599 = vmax.xlane.f32.xlu1 %v6598_v40 }
 0x5ad   :  { %3234 = vrot.lane.b32.xlu1 %v11147_v28, %s8622_s29 }
 0x5c8   :  { %v6582_v35 = vpop.xlane.xlu1 %6581 }
 0x5c9   :  { %v6579_v42 = vpop.xlane.xlu0 %6578  ;;  %v11151_v26 = vadd.f32 %v6582_v35, %v6554_v48  ;;  %vm6610_vm6 = vcmp.eq.f32.partialorder %v11077_v62, %v6582_v35  ;;  %v3982_v48 = vrot.slane %v3974_v60, %v9007_v32 }
 0x5ca   :  { %v11153_v44 = vadd.f32 %v6579_v42, %v6553_v50  ;;  %vm6609_vm5 = vcmp.eq.f32.partialorder %v6569_v5, %v6579_v42  ;;  %v6618_v12 = vsel %vm6610_vm6, -1.0, %v11077_v62  ;;  %v3989_v50 = vrot.slane %v3975_v7, %v9007_v32 }
 0x5cb   :  { %v6617_v15 = vsel %vm6609_vm5, -1.0, %v6569_v5  ;;  %v6628_v5 = vsel %vm6323_vm3, %v6618_v12, -inf }
 0x5cc   :  { %v6625_v21 = vsel %vm6323_vm3, %v6617_v15, -inf }
 0x5cd   :  { %6626 = vmax.xlane.f32.xlu0 %v6625_v21  ;;  %v3333_v0 = vpop.permute.xlu0 %3332 }
 0x5ce   :  { %v3990_v38 = vcombine.low %v3237_v56, %v3333_v0  ;;  %v3991_v31 = vcombine.high %v3237_v56, %v3333_v0 }
 0x5d0   :  { %v3998_v27 = vrot.slane %v3990_v38, %v9007_v32  ;;  %v4005_v17 = vrot.slane %v3991_v31, %v9007_v32 }
 0x5d1   :  { %6629 = vmax.xlane.f32.xlu0 %v6628_v5 }
 0x5d2   :  { %v4006_v39 = vcombine.low %v3982_v48, %v3998_v27  ;;  %v4007_v40 = vcombine.high %v3982_v48, %v3998_v27  ;;  %v4022_v22 = vcombine.low %v3989_v50, %v4005_v17  ;;  %v4023_v51 = vcombine.high %v3989_v50, %v4005_v17 }
 0x5d4   :  { %v4014_v35 = vrot.slane %v4006_v39, %v9015_v45  ;;  %v4021_v62 = vrot.slane %v4007_v40, %v9015_v45  ;;  %v4030_v56 = vrot.slane %v4022_v22, %v9015_v45  ;;  %v4037_v42 = vrot.slane %v4023_v51, %v9015_v45 }
 0x5d6   :  { %v5062_v60 = vcombine.low %v4014_v35, %v4021_v62  ;;  %v7857_v15 = vcombine.high %v4014_v35, %v4021_v62  ;;  %v5078_v7 = vcombine.low %v4030_v56, %v4037_v42  ;;  %v7858_v21 = vcombine.high %v4030_v56, %v4037_v42 }
 0x5d8   :  { %v5069_v0 = vrot.slane %v5062_v60, %v9007_v32  ;;  %v5077_v12 = vrot.slane %v7857_v15, %v9007_v32  ;;  %v5085_v38 = vrot.slane %v5078_v7, %v9007_v32  ;;  %v5093_v31 = vrot.slane %v7858_v21, %v9007_v32 }
 0x5da   :  { %v5094_v48 = vcombine.low %v5069_v0, %v5077_v12  ;;  %v5110_v50 = vcombine.low %v5085_v38, %v5093_v31  ;;  %v5095_v27 = vcombine.high %v5069_v0, %v5077_v12  ;;  %v5111_v17 = vcombine.high %v5085_v38, %v5093_v31 }
 0x5dc   :  { %v11174_v5 = vrot.slane %v5094_v48, %v9015_v45  ;;  %v11177_v39 = vrot.slane %v5110_v50, %v9015_v45  ;;  %v11180_v40 = vrot.slane %v5095_v27, %v9015_v45  ;;  %v11183_v22 = vrot.slane %v5111_v17, %v9015_v45 }
 0x5de   :  { %v5126_v51 = vcombine.low %v11174_v5, %v11177_v39  ;;  %v5127_v35 = vcombine.high %v11174_v5, %v11177_v39  ;;  %v5128_v62 = vcombine.low %v11180_v40, %v11183_v22  ;;  %v5129_v56 = vcombine.high %v11180_v40, %v11183_v22 }
 0x5ee   :  { %v6585_v42 = vpop.xlane.xlu1 %6584 }
 0x5ef   :  { %v11194_v60 = vadd.f32 %v6585_v42, %v11089_v20  ;;  %vm6611_vm7 = vcmp.eq.f32.partialorder %v11096_v6, %v6585_v42 }
 0x5f0   :  { %v6619_v15 = vsel %vm6611_vm7, -1.0, %v11096_v6 }
 0x5f1   :  { %v6631_v7 = vsel %vm6323_vm3, %v6619_v15, -inf }
 0x5f2   :  { %6632 = vmax.xlane.f32.xlu0 %v6631_v7  ;;  %v6588_v21 = vpop.xlane.xlu1 %6587 }
 0x5f3   :  { %v11200_v0 = vadd.f32 %v6588_v21, %v11092_v1  ;;  %vm6612_vm8 = vcmp.eq.f32.partialorder %v11101_v18, %v6588_v21  ;;  %v6657_v21 = vmul.f32 0.1, %v10840_v36 }
 0x5f4   :  { %v6620_v12 = vsel %vm6612_vm8, -1.0, %v11101_v18 }
 0x5f5   :  { %v6634_v38 = vsel %vm6323_vm3, %v6620_v12, -inf }
 0x5f6   :  { %6635 = vmax.xlane.f32.xlu0 %v6634_v38 }
 0x619   :  { %v6591_v20 = vpop.xlane.xlu1 %6590 }
 0x61a   :  { %v11206_v31 = vadd.f32 %v6591_v20, %v11111_v24  ;;  %vm6613_vm9 = vcmp.eq.f32.partialorder %v11116_v55, %v6591_v20 }
 0x61b   :  { %v6621_v6 = vsel %vm6613_vm9, -1.0, %v11116_v55 }
 0x61c   :  { %v6637_v48 = vsel %vm6323_vm3, %v6621_v6, -inf }
 0x61d   :  { %6638 = vmax.xlane.f32.xlu0 %v6637_v48  ;;  %v6594_v1 = vpop.xlane.xlu1 %6593  ;;  %v6658_v48 = vmul.f32 0.1, %v10842_v52 }
 0x61e   :  { %v11212_v50 = vadd.f32 %v6594_v1, %v11109_v10  ;;  %vm6614_vm10 = vcmp.eq.f32.partialorder %v11121_v25, %v6594_v1  ;;  %v6427_v10 = vsel %vm6323_vm3, %v10798_v33, 0.0 }
 0x61f   :  { %v6622_v18 = vsel %vm6614_vm10, -1.0, %v11121_v25 }
 0x620   :  { %v6640_v27 = vsel %vm6323_vm3, %v6622_v18, -inf }
 0x621   :  { %6641 = vmax.xlane.f32.xlu1 %v6640_v27  ;;  %v6597_v24 = vpop.xlane.xlu1 %6596 }
 0x622   :  { %v11218_v17 = vadd.f32 %v6597_v24, %v11131_v34  ;;  %vm6615_vm11 = vcmp.eq.f32.partialorder %v11136_v63, %v6597_v24 }
 0x623   :  { %v6623_v25 = vsel %vm6615_vm11, -1.0, %v11136_v63  ;;  %v6390_v63 = vsel %vm6323_vm3, %v10780_v23, 0.0 }
 0x624   :  { %v6643_v34 = vsel %vm6323_vm3, %v6623_v25, -inf }
 0x625   :  { %v6600_v42 = vpop.xlane.xlu1 %6599 }
 0x626   :  { %v11221_v55 = vadd.f32 %v6600_v42, %v11129_v19  ;;  %vm6616_vm12 = vcmp.eq.f32.partialorder %v11141_v16, %v6600_v42  ;;  %v6430_v19 = vsel %vm6323_vm3, %v10791_v37, 0.0  ;;  %v11819_v42 = vld [vmem:[#allocation10_spill] sm:$0xff] }
 0x627   :  { %v6624_v7 = vsel %vm6616_vm12, -1.0, %v11141_v16 }
 0x628   :  { %v6646_v38 = vsel %vm6323_vm3, %v6624_v7, -inf }
 0x632   :  { %3330 = vrot.lane.b32.xlu1 %v11147_v28, %s8624_s30 }
 0x633   :  { %3282 = vrot.lane.b32.xlu0 %v11147_v28, %s8623_s2 }
 0x652   :  { %6428 = vadd.xlane.f32.xlu0 %v6427_v10  ;;  %v11820_v10 = vld [vmem:[#allocation9_spill] sm:$0xff] }
 0x653   :  { %v4975_v25 = vcombine.high %v11820_v10, %v11819_v42  ;;  %v11830_v42 = vld [vmem:[#allocation15_spill] sm:$0xff]  ;;  %v11831_v10 = vld [vmem:[#allocation16_spill] sm:$0xff] }
 0x656   :  { %v6627_v15 = vpop.xlane.xlu0 %6626  ;;  %6431 = vadd.xlane.f32.xlu1 %v6430_v19  ;;  %6644 = vmax.xlane.f32.xlu0 %v6643_v34  ;;  %v4989_v19 = vrot.slane %v4975_v25, %v9015_v45  ;;  %v11832_v25 = vcombine.low %v11830_v42, %v11831_v10 }
 0x657   :  { %v6649_v12 = vadd.f32 %v6627_v15, %v11153_v44  ;;  %v6393_v44 = vsel %vm6323_vm3, %v10784_v9, 0.0 }
 0x659   :  { %vm6665_vm13 = vcmp.gt.f32.partialorder %v6649_v12, %v6657_v21  ;;  %v4331_v21 = vcombine.high %v10662_v14, %v10660_v49 }
 0x65a   :  { %v6697_v20 = vsel %vm6665_vm13, %v10840_v36, %v10810_v3  ;;  %v6630_v6 = vpop.xlane.xlu0 %6629  ;;  %6391 = vadd.xlane.f32.xlu1 %v6390_v63  ;;  %6647 = vmax.xlane.f32.xlu0 %v6646_v38  ;;  %v11817_v36 = vld [vmem:[#allocation7_spill] sm:$0xff]  ;;  %v11818_v3 = vld [vmem:[#allocation6_spill] sm:$0xff]  ;;  %v6689_v15 = vsel %vm6665_vm13, %v10686_v30, %v10666_v53  ;;  %v4330_v63 = vcombine.low %v10662_v14, %v10660_v49  ;;  %v11821_v30 = vld [vmem:[#allocation8_spill] sm:$0xff] }
 0x65b   :  { %v6705_v16 = vmax.f32 %v6697_v20, 1e-30  ;;  %v6650_v1 = vadd.f32 %v6630_v6, %v11151_v26  ;;  %v4959_v24 = vcombine.high %v11818_v3, %v11817_v36  ;;  %v4314_v12 = vcombine.low %v11821_v30, %v10654_v61  ;;  %v11823_v14 = vld [vmem:[#allocation11_spill] sm:$0xff] }
 0x65c   :  { %v11822_v20 = vcombine.low %v10474_v43, %v10478_v57  ;;  %v4338_v49 = vrot.slane %v4330_v63, %v9007_v32 }
 0x65d   :  { %8576 = vrcp.f32 %v6705_v16  ;;  %vm6666_vm14 = vcmp.gt.f32.partialorder %v6650_v1, %v6658_v48  ;;  %v4973_v26 = vrot.slane %v4959_v24, %v9015_v45  ;;  %v4345_v16 = vrot.slane %v4331_v21, %v9007_v32 }
 0x65e   :  { %v6698_v18 = vsel %vm6666_vm14, %v10842_v52, %v10812_v58  ;;  %6394 = vadd.xlane.f32.xlu0 %v6393_v44  ;;  %v6690_v38 = vsel %vm6666_vm14, %v10681_v47, %v10671_v13  ;;  %v4315_v13 = vcombine.high %v11821_v30, %v10654_v61  ;;  %v11824_v47 = vld [vmem:[#allocation12_spill] sm:$0xff]  ;;  %v4322_v1 = vrot.slane %v4314_v12, %v9007_v32  ;;  %v11826_v61 = vld [vmem:[#allocation13_spill] sm:$0xff]  ;;  %v11827_v44 = vld [vmem:[#allocation14_spill] sm:$0xff] }
 0x65f   :  { %v6706_v27 = vmax.f32 %v6698_v18, 1e-30  ;;  %v4992_v52 = vcombine.low %v4973_v26, %v4989_v19  ;;  %v4993_v6 = vcombine.high %v4973_v26, %v4989_v19  ;;  %v11825_v48 = vcombine.low %v11823_v14, %v11824_v47  ;;  %v11839_v30 = vld [vmem:[#allocation19_spill] sm:$0xff]  ;;  %v11840_v12 = vld [vmem:[#allocation20_spill] sm:$0xff] }
 0x660   :  { %v11828_v18 = vcombine.low %v11826_v61, %v11827_v44  ;;  %v4329_v36 = vrot.slane %v4315_v13, %v9007_v32  ;;  %v4346_v3 = vcombine.low %v4322_v1, %v4338_v49  ;;  %v4347_v24 = vcombine.high %v4322_v1, %v4338_v49  ;;  %v11843_v49 = vld [vmem:[#allocation44_spill] sm:$0xff]  ;;  %v11845_v1 = vld [vmem:[#allocation21_spill] sm:$0xff] }
 0x661   :  { %8578 = vrcp.f32 %v6706_v27  ;;  %v11829_v27 = vcombine.high %v10474_v43, %v10478_v57  ;;  %v11833_v26 = vcombine.high %v11823_v14, %v11824_v47  ;;  %v11834_v57 = vld [vmem:[#allocation46_spill] sm:$0xff]  ;;  %v11838_v63 = vcombine.high %v11826_v61, %v11827_v44 }
 0x662   :  { %v4362_v19 = vcombine.low %v4329_v36, %v4345_v16  ;;  %v4354_v21 = vrot.slane %v4346_v3, %v9015_v45  ;;  %v11846_v61 = vld [vmem:[#allocation22_spill] sm:$0xff] }
 0x663   :  { %v11847_v44 = vcombine.low %v11845_v1, %v11846_v61 }
 0x664   :  { %v4370_v13 = vrot.slane %v4362_v19, %v9015_v45  ;;  %v11851_v19 = vcombine.high %v11845_v1, %v11846_v61  ;;  %v11857_v1 = vld [vmem:[#allocation24_spill] sm:$0xff] }
 0x66a   :  { %v8577_v34 = vpop.eup %8576 }
 0x66b   :  { %v6721_v7 = vmul.f32 %v8577_v34, %v6689_v15  ;;  %v4363_v34 = vcombine.high %v4329_v36, %v4345_v16  ;;  %v6659_v15 = vmul.f32 0.1, %v11834_v57 }
 0x66d   :  { %8400 = vmatmul.mubr.msk.f32.vlgmr.msra.gmra.mxu1 %vm6323_vm3, %v6721_v7  ;;  %v11835_v7 = vld [vmem:[#allocation17_spill] sm:$0xff] }
 0x66e   :  { %v8579_v58 = vpop.eup %8578  ;;  %8422 = vmatpush3.msra.mxu1 %v4992_v52  ;;  %8437 = vmatprep.mubr.msk.f32.mxu1 %vm8626_vm1, %v11735_v59  ;;  %v11836_v52 = vld [vmem:[#allocation18_spill] sm:$0xff] }
 0x66f   :  { %v6722_v53 = vmul.f32 %v8579_v58, %v6690_v38  ;;  %8423 = vmatprep.subr.mxu1 %v11735_v59  ;;  %v11837_v58 = vcombine.low %v11835_v7, %v11836_v52 }
 0x670   :  { %8424 = vmatpush3.msra.mxu1 %v11822_v20  ;;  %v11841_v20 = vcombine.low %v11839_v30, %v11840_v12 }
 0x671   :  { %8425 = vmatprep.subr.mxu1 %v11735_v59  ;;  %8419 = vmatmul.mubr.msk.f32.vlgmr.msra.gmra.mxu0 %vm6323_vm3, %v6722_v53  ;;  %v4361_v53 = vrot.slane %v4347_v24, %v9015_v45  ;;  %v11849_v24 = vcombine.high %v11839_v30, %v11840_v12  ;;  %v11853_v30 = vld [vmem:[#allocation33_spill] sm:$0xff] }
 0x672   :  { %8426 = vmatpush3.msra.mxu1 %v11825_v48  ;;  %8441 = vmatpush3.msra.mxu0 %v4993_v6  ;;  %v11842_v6 = vcombine.high %v11830_v42, %v11831_v10  ;;  %v11844_v48 = vld [vmem:[#allocation45_spill] sm:$0xff] }
 0x673   :  { %8427 = vmatprep.subr.mxu1 %v11735_v59  ;;  %8442 = vmatprep.subr.mxu0 %v11735_v59  ;;  %v6660_v16 = vmul.f32 0.1, %v11844_v48  ;;  %v5402_v3 = vcombine.low %v4354_v21, %v4361_v53  ;;  %v7867_v42 = vcombine.high %v4354_v21, %v4361_v53  ;;  %v11852_v53 = vld [vmem:[#allocation32_spill] sm:$0xff] }
 0x674   :  { %8428 = vmatpush3.msra.mxu1 %v11828_v18  ;;  %8443 = vmatpush3.msra.mxu0 %v11829_v27  ;;  %v11848_v18 = vcombine.high %v11835_v7, %v11836_v52 }
 0x675   :  { %8429 = vmatprep.subr.mxu1 %v11735_v59  ;;  %8444 = vmatprep.subr.mxu0 %v11735_v59 }
 0x676   :  { %8430 = vmatpush3.msra.mxu1 %v11832_v25  ;;  %8445 = vmatpush3.msra.mxu0 %v11833_v26 }
 0x677   :  { %8431 = vmatprep.subr.mxu1 %v11735_v59  ;;  %8446 = vmatprep.subr.mxu0 %v11735_v59 }
 0x678   :  { %8432 = vmatpush3.msra.mxu1 %v11837_v58  ;;  %8447 = vmatpush3.msra.mxu0 %v11838_v63 }
 0x679   :  { %8433 = vmatprep.subr.mxu1 %v11735_v59  ;;  %8448 = vmatprep.subr.mxu0 %v11735_v59 }
 0x67a   :  { %8434 = vmatpush3.msra.mxu1 %v11841_v20  ;;  %8449 = vmatpush3.msra.mxu0 %v11842_v6 }
 0x67b   :  { %v6633_v43 = vpop.xlane.xlu0 %6632  ;;  %8435 = vmatprep.subr.mxu1 %v11735_v59  ;;  %8450 = vmatprep.subr.mxu0 %v11735_v59 }
 0x67c   :  { %v6651_v38 = vadd.f32 %v6633_v43, %v11194_v60  ;;  %v4377_v60 = vrot.slane %v4363_v34, %v9015_v45  ;;  %8436 = vmatpush3.msra.mxu1 %v11847_v44  ;;  %8451 = vmatpush3.msra.mxu0 %v11848_v18  ;;  %v11354_v43 = vrot.slane %v5402_v3, %v9007_v32  ;;  %v11860_v18 = vld [vmem:[#allocation26_spill] sm:$0xff]  ;;  %v11863_v3 = vld [vmem:[#allocation35_spill] sm:$0xff] }
 0x67d   :  { %8452 = vmatprep.subr.mxu0 %v11735_v59  ;;  %8459 = vmatprep.subr.mxu1 %v11735_v59 }
 0x67e   :  { %vm6667_vm15 = vcmp.gt.f32.partialorder %v6651_v38, %v6659_v15  ;;  %8453 = vmatpush3.msra.mxu0 %v11849_v24  ;;  %8456 = vmatprep.mubr.msk.f32.mxu0 %vm8626_vm1, %v11735_v59  ;;  %v5418_v10 = vcombine.low %v4370_v13, %v4377_v60  ;;  %v7868_v25 = vcombine.high %v4370_v13, %v4377_v60  ;;  %v11859_v38 = vld [vmem:[#allocation25_spill] sm:$0xff]  ;;  %v11864_v24 = vld [vmem:[#allocation36_spill] sm:$0xff] }
 0x67f   :  { %v6699_v14 = vsel %vm6667_vm15, %v11834_v57, %v11843_v49  ;;  %v6636_v47 = vpop.xlane.xlu0 %6635  ;;  %8454 = vmatprep.subr.mxu0 %v11735_v59  ;;  %v11357_v57 = vrot.slane %v7867_v42, %v9007_v32  ;;  %v6691_v12 = vsel %vm6667_vm15, %v11853_v30, %v11852_v53  ;;  %v11854_v49 = vld [vmem:[#allocation31_spill] sm:$0xff]  ;;  %v11865_v42 = vcombine.low %v11863_v3, %v11864_v24  ;;  %v11874_v30 = vld [vmem:[#allocation50_spill] sm:$0xff] }
 0x680   :  { %v6707_v27 = vmax.f32 %v6699_v14, 1e-30  ;;  %v6652_v36 = vadd.f32 %v6636_v47, %v11200_v0  ;;  %v11850_v0 = vld [vmem:[#allocation43_spill] sm:$0xff]  ;;  %8455 = vmatpush3.msra.mxu0 %v11851_v19  ;;  %v11360_v7 = vrot.slane %v5418_v10, %v9007_v32  ;;  %v11363_v52 = vrot.slane %v7868_v25, %v9007_v32  ;;  %v11855_v14 = vld [vmem:[#allocation34_spill] sm:$0xff]  ;;  %v11867_v25 = vld [vmem:[#allocation52_spill] sm:$0xff] }
 0x681   :  { %8478 = vmatprep.subr.mxu0 %v11735_v59  ;;  %v5434_v58 = vcombine.low %v11354_v43, %v11357_v57  ;;  %v11866_v10 = vld [vmem:[#allocation51_spill] sm:$0xff]  ;;  %v11870_v19 = vcombine.high %v11863_v3, %v11864_v24 }
 0x682   :  { %8580 = vrcp.f32 %v6707_v27  ;;  %vm6668_vm4 = vcmp.gt.f32.partialorder %v6652_v36, %v6660_v16  ;;  %v5450_v63 = vcombine.low %v11360_v7, %v11363_v52  ;;  %v11861_v16 = vcombine.low %v11859_v38, %v11860_v18 }
 0x683   :  { %v6700_v26 = vsel %vm6668_vm4, %v11844_v48, %v11850_v0  ;;  %v5442_v20 = vrot.slane %v5434_v58, %v9015_v45  ;;  %v6692_v47 = vsel %vm6668_vm4, %v11855_v14, %v11854_v49  ;;  %v11856_v48 = vld [vmem:[#allocation23_spill] sm:$0xff]  ;;  %v11868_v0 = vcombine.low %v11866_v10, %v11867_v25  ;;  %v11872_v58 = vld [vmem:[#allocation49_spill] sm:$0xff] }
 0x684   :  { %v6708_v34 = vmax.f32 %v6700_v26, 1e-30  ;;  %v5458_v6 = vrot.slane %v5450_v63, %v9015_v45  ;;  %v11858_v61 = vcombine.low %v11856_v48, %v11857_v1  ;;  %v11862_v27 = vcombine.high %v11856_v48, %v11857_v1 }
 0x685   :  { %v11869_v26 = vcombine.high %v11859_v38, %v11860_v18  ;;  %v6661_v63 = vmul.f32 0.1, %v11872_v58 }
 0x686   :  { %8582 = vrcp.f32 %v6708_v34  ;;  %v5466_v44 = vcombine.low %v5442_v20, %v5458_v6  ;;  %v5467_v36 = vcombine.high %v5442_v20, %v5458_v6  ;;  %v11871_v34 = vcombine.high %v11866_v10, %v11867_v25  ;;  %v11875_v6 = vld [vmem:[#allocation47_spill] sm:$0xff] }
 0x68f   :  { %v8581_v21 = vpop.eup %8580 }
 0x690   :  { %v6723_v13 = vmul.f32 %v8581_v21, %v6691_v12  ;;  %v6662_v12 = vmul.f32 0.1, %v11874_v30 }
 0x692   :  { %8438 = vmatmul.mubr.msk.f32.vlgmr.msra.gmra.mxu1 %vm6323_vm3, %v6723_v13 }
 0x693   :  { %v8583_v60 = vpop.eup %8582  ;;  %8460 = vmatpush3.msra.mxu1 %v11858_v61  ;;  %8475 = vmatprep.mubr.msk.f32.mxu1 %vm8626_vm1, %v11735_v59 }
 0x694   :  { %v6724_v15 = vmul.f32 %v8583_v60, %v6692_v47  ;;  %8461 = vmatprep.subr.mxu1 %v11735_v59 }
 0x695   :  { %8462 = vmatpush3.msra.mxu1 %v5466_v44 }
 0x696   :  { %8463 = vmatprep.subr.mxu1 %v11735_v59  ;;  %8457 = vmatmul.mubr.msk.f32.vlgmr.msra.gmra.mxu0 %vm6323_vm3, %v6724_v15 }
 0x697   :  { %8464 = vmatpush3.msra.mxu1 %v11861_v16  ;;  %8479 = vmatpush3.msra.mxu0 %v11862_v27 }
 0x698   :  { %8465 = vmatprep.subr.mxu1 %v11735_v59  ;;  %8480 = vmatprep.subr.mxu0 %v11735_v59 }
 0x699   :  { %8466 = vmatpush3.msra.mxu1 %v11865_v42  ;;  %8481 = vmatpush3.msra.mxu0 %v5467_v36 }
 0x69a   :  { %8467 = vmatprep.subr.mxu1 %v11735_v59  ;;  %8482 = vmatprep.subr.mxu0 %v11735_v59 }
 0x69b   :  { %8468 = vmatpush3.msra.mxu1 %v11868_v0  ;;  %8483 = vmatpush3.msra.mxu0 %v11869_v26 }
 0x69c   :  { %8469 = vmatprep.subr.mxu1 %v11735_v59  ;;  %8484 = vmatprep.subr.mxu0 %v11735_v59 }
 0x69d   :  { %8470 = vmatpush3.msra.mxu1 %v5194_v11  ;;  %8485 = vmatpush3.msra.mxu0 %v11870_v19  ;;  %v3235_v11 = vpop.permute.xlu1 %3234 }
 0x69e   :  { %8471 = vmatprep.subr.mxu1 %v11735_v59  ;;  %8486 = vmatprep.subr.mxu0 %v11735_v59 }
 0x69f   :  { %8472 = vmatpush3.msra.mxu1 %v5126_v51  ;;  %8487 = vmatpush3.msra.mxu0 %v11871_v34 }
 0x6a0   :  { %8488 = vmatprep.subr.mxu0 %v11735_v59  ;;  %8473 = vmatprep.subr.mxu1 %v11735_v59 }
 0x6a1   :  { %8489 = vmatpush3.msra.mxu0 %v5195_v2  ;;  %8494 = vmatprep.mubr.msk.f32.mxu0 %vm8626_vm1, %v11735_v59 }
 0x6a2   :  { %8490 = vmatprep.subr.mxu0 %v11735_v59 }
 0x6a3   :  { %8491 = vmatpush3.msra.mxu0 %v5127_v35 }
 0x6a4   :  { %8492 = vmatprep.subr.mxu0 %v11735_v59 }
 0x6a6   :  { %v6639_v51 = vpop.xlane.xlu0 %6638 }
 0x6a7   :  { %v6653_v21 = vadd.f32 %v6639_v51, %v11206_v31  ;;  %v5451_v51 = vcombine.high %v11360_v7, %v11363_v52 }
 0x6a9   :  { %vm6669_vm5 = vcmp.gt.f32.partialorder %v6653_v21, %v6661_v63  ;;  %v5465_v52 = vrot.slane %v5451_v51, %v9015_v45  ;;  %v11880_v63 = vld [vmem:[#allocation27_spill] sm:$0xff]  ;;  %v11881_v21 = vld [vmem:[#allocation28_spill] sm:$0xff] }
 0x6aa   :  { %v6701_v29 = vsel %vm6669_vm5, %v11872_v58, %v11873_v46  ;;  %v3283_v2 = vpop.permute.xlu0 %3282  ;;  %v6642_v53 = vpop.xlane.xlu1 %6641 }
 0x6ab   :  { %v6654_v5 = vadd.f32 %v6642_v53, %v11212_v50  ;;  %v6709_v39 = vmax.f32 %v6701_v29, 1e-30  ;;  %v3906_v35 = vcombine.low %v11147_v28, %v3283_v2  ;;  %v3907_v20 = vcombine.high %v11147_v28, %v3283_v2  ;;  %v11876_v53 = vld [vmem:[#allocation39_spill] sm:$0xff] }
 0x6ad   :  { %vm6670_vm6 = vcmp.gt.f32.partialorder %v6654_v5, %v6662_v12  ;;  %8584 = vrcp.f32 %v6709_v39  ;;  %v3914_v47 = vrot.slane %v3906_v35, %v9007_v32  ;;  %v3921_v48 = vrot.slane %v3907_v20, %v9007_v32  ;;  %v11878_v35 = vld [vmem:[#allocation40_spill] sm:$0xff]  ;;  %v11879_v20 = vld [vmem:[#allocation42_spill] sm:$0xff] }
 0x6ae   :  { %v6702_v31 = vsel %vm6670_vm6, %v11874_v30, %v11875_v6  ;;  %v3331_v13 = vpop.permute.xlu1 %3330  ;;  %v11877_v30 = vld [vmem:[#allocation41_spill] sm:$0xff]  ;;  %v6693_v6 = vsel %vm6669_vm5, %v11879_v20, %v11878_v35  ;;  %v11882_v12 = vcombine.low %v11880_v63, %v11881_v21  ;;  %v11883_v5 = vcombine.high %v11880_v63, %v11881_v21 }
 0x6af   :  { %v6710_v60 = vmax.f32 %v6702_v31, 1e-30  ;;  %v3922_v49 = vcombine.low %v3235_v11, %v3331_v13  ;;  %v3923_v14 = vcombine.high %v3235_v11, %v3331_v13  ;;  %v5435_v11 = vcombine.high %v11354_v43, %v11357_v57 }
 0x6b0   :  { %v6694_v39 = vsel %vm6670_vm6, %v11877_v30, %v11876_v53 }
 0x6b1   :  { %8586 = vrcp.f32 %v6710_v60  ;;  %v3930_v50 = vrot.slane %v3922_v49, %v9007_v32  ;;  %v3937_v1 = vrot.slane %v3923_v14, %v9007_v32  ;;  %v5449_v7 = vrot.slane %v5435_v11, %v9015_v45  ;;  %v11884_v14 = vld [vmem:[#allocation29_spill] sm:$0xff] }
 0x6b3   :  { %v3938_v28 = vcombine.low %v3914_v47, %v3930_v50  ;;  %v3939_v61 = vcombine.high %v3914_v47, %v3930_v50  ;;  %v3954_v44 = vcombine.low %v3921_v48, %v3937_v1  ;;  %v3955_v15 = vcombine.high %v3921_v48, %v3937_v1  ;;  %v11885_v47 = vld [vmem:[#allocation30_spill] sm:$0xff] }
 0x6b4   :  { %v5468_v60 = vcombine.low %v5449_v7, %v5465_v52  ;;  %v5469_v49 = vcombine.high %v5449_v7, %v5465_v52  ;;  %v11886_v48 = vcombine.low %v11884_v14, %v11885_v47  ;;  %v11887_v50 = vcombine.high %v11884_v14, %v11885_v47 }
 0x6b5   :  { %v3946_v38 = vrot.slane %v3938_v28, %v9015_v45  ;;  %v3953_v18 = vrot.slane %v3939_v61, %v9015_v45  ;;  %v3962_v16 = vrot.slane %v3954_v44, %v9015_v45  ;;  %v3969_v27 = vrot.slane %v3955_v15, %v9015_v45  ;;  %v11888_v61 = vld [vmem:[#allocation37_spill] sm:$0xff]  ;;  %v11889_v44 = vld [vmem:[#allocation38_spill] sm:$0xff] }
 0x6b6   :  { %v11890_v15 = vcombine.low %v11888_v61, %v11889_v44 }
 0x6b7   :  { %v4994_v36 = vcombine.low %v3946_v38, %v3953_v18  ;;  %v7855_v3 = vcombine.high %v3946_v38, %v3953_v18  ;;  %v5010_v24 = vcombine.low %v3962_v16, %v3969_v27  ;;  %v7856_v42 = vcombine.high %v3962_v16, %v3969_v27  ;;  %v11892_v18 = vld [vmem:[#allocation53_spill] sm:$0xff]  ;;  %v11893_v16 = vld [vmem:[#allocation54_spill] sm:$0xff] }
 0x6b8   :  { %v11891_v38 = vcombine.high %v11888_v61, %v11889_v44  ;;  %v11894_v27 = vcombine.low %v11892_v18, %v11893_v16 }
 0x6b9   :  { %v5001_v10 = vrot.slane %v4994_v36, %v9007_v32  ;;  %v5009_v25 = vrot.slane %v7855_v3, %v9007_v32  ;;  %v5017_v0 = vrot.slane %v5010_v24, %v9007_v32  ;;  %v5025_v26 = vrot.slane %v7856_v42, %v9007_v32 }
 0x6ba   :  { %v8585_v58 = vpop.eup %8584  ;;  %v11895_v36 = vcombine.high %v11892_v18, %v11893_v16 }
 0x6bb   :  { %v5026_v19 = vcombine.low %v5001_v10, %v5009_v25  ;;  %v5042_v34 = vcombine.low %v5017_v0, %v5025_v26  ;;  %v6725_v57 = vmul.f32 %v8585_v58, %v6693_v6  ;;  %v5027_v1 = vcombine.high %v5001_v10, %v5009_v25 }
 0x6bc   :  { %v5043_v28 = vcombine.high %v5017_v0, %v5025_v26 }
 0x6bd   :  { %v5034_v46 = vrot.slane %v5026_v19, %v9015_v45  ;;  %v5050_v29 = vrot.slane %v5042_v34, %v9015_v45  ;;  %v5041_v3 = vrot.slane %v5027_v1, %v9015_v45  ;;  %v7620_v1 = vld [vmem:[%s11642_s4 + $0x18] sm:$0xff] }
 0x6be   :  { %v8587_v2 = vpop.eup %8586  ;;  %v5057_v24 = vrot.slane %v5043_v28, %v9015_v45 }
 0x6bf   :  { %v6726_v31 = vmul.f32 %v8587_v2, %v6694_v39  ;;  %v5058_v13 = vcombine.low %v5034_v46, %v5050_v29  ;;  %v5059_v43 = vcombine.high %v5034_v46, %v5050_v29 }
 0x6c0   :  { %v5060_v42 = vcombine.low %v5041_v3, %v5057_v24  ;;  %v5061_v10 = vcombine.high %v5041_v3, %v5057_v24 }
 0x6c1   :  { %8474 = vmatpush3.msra.mxu1 %v5058_v13  ;;  %8493 = vmatpush3.msra.mxu0 %v5059_v43 }
 0x6c2   :  { %8476 = vmatmul.mubr.msk.f32.vlgmr.msra.gmra.mxu1 %vm6323_vm3, %v6725_v57  ;;  %8495 = vmatmul.mubr.msk.f32.vlgmr.msra.gmra.mxu0 %vm6323_vm3, %v6726_v31 }
 0x6c3   :  { %8497 = vmatprep.subr.mxu1 %v11735_v59  ;;  %8516 = vmatprep.subr.mxu0 %v11735_v59 }
 0x6c4   :  { %8498 = vmatpush3.msra.mxu1 %v11882_v12  ;;  %8517 = vmatpush3.msra.mxu0 %v11883_v5 }
 0x6c5   :  { %8499 = vmatprep.subr.mxu1 %v11735_v59  ;;  %8518 = vmatprep.subr.mxu0 %v11735_v59 }
 0x6c6   :  { %8500 = vmatpush3.msra.mxu1 %v5468_v60  ;;  %8519 = vmatpush3.msra.mxu0 %v5469_v49 }
 0x6c7   :  { %8501 = vmatprep.subr.mxu1 %v11735_v59  ;;  %8520 = vmatprep.subr.mxu0 %v11735_v59 }
 0x6c8   :  { %8502 = vmatpush3.msra.mxu1 %v11886_v48  ;;  %8521 = vmatpush3.msra.mxu0 %v11887_v50 }
 0x6c9   :  { %8503 = vmatprep.subr.mxu1 %v11735_v59  ;;  %8522 = vmatprep.subr.mxu0 %v11735_v59 }
 0x6ca   :  { %8504 = vmatpush3.msra.mxu1 %v11890_v15  ;;  %8523 = vmatpush3.msra.mxu0 %v11891_v38 }
 0x6cb   :  { %8505 = vmatprep.subr.mxu1 %v11735_v59  ;;  %8524 = vmatprep.subr.mxu0 %v11735_v59 }
 0x6cc   :  { %8506 = vmatpush3.msra.mxu1 %v11894_v27  ;;  %8525 = vmatpush3.msra.mxu0 %v11895_v36 }
 0x6cd   :  { %8507 = vmatprep.subr.mxu1 %v11735_v59  ;;  %8526 = vmatprep.subr.mxu0 %v11735_v59 }
 0x6ce   :  { %8508 = vmatpush3.msra.mxu1 %v5196_v54  ;;  %8527 = vmatpush3.msra.mxu0 %v5197_v4 }
 0x6cf   :  { %8509 = vmatprep.subr.mxu1 %v11735_v59  ;;  %8528 = vmatprep.subr.mxu0 %v11735_v59 }
 0x6d0   :  { %8510 = vmatpush3.msra.mxu1 %v5128_v62  ;;  %8529 = vmatpush3.msra.mxu0 %v5129_v56 }
 0x6d1   :  { %8511 = vmatprep.subr.mxu1 %v11735_v59  ;;  %8530 = vmatprep.subr.mxu0 %v11735_v59 }
 0x6d2   :  { %8512 = vmatpush3.msra.mxu1 %v5060_v42  ;;  %8531 = vmatpush3.msra.mxu0 %v5061_v10 }
 0x6d3   :  { %8513 = vmatprep.mubr.msk.f32.mxu1 %vm8626_vm1, %v11735_v59  ;;  %8532 = vmatprep.mubr.msk.f32.mxu0 %vm8626_vm1, %v11735_v59  ;;  %vm7611_vm1 = vcmask 130048  }
 0x6d4   :  { %8535 = vmatprep.subr.mxu1 %v7620_v1 }
 0x6db   :  { %v6429_v8 = vpop.xlane.xlu0 %6428 }
 0x6dc   :  { %v6663_v4 = vmul.f32 0.1, %v6429_v8 }
 0x6df   :  { %v6645_v41 = vpop.xlane.xlu0 %6644  ;;  %v6432_v54 = vpop.xlane.xlu1 %6431 }
 0x6e0   :  { %v6655_v40 = vadd.f32 %v6645_v41, %v11218_v17  ;;  %v6664_v56 = vmul.f32 0.1, %v6432_v54 }
 0x6e2   :  { %vm6671_vm7 = vcmp.gt.f32.partialorder %v6655_v40, %v6663_v4 }
 0x6e3   :  { %v6648_v22 = vpop.xlane.xlu0 %6647  ;;  %v6392_v62 = vpop.xlane.xlu1 %6391  ;;  %v6695_v51 = vsel %vm6671_vm7, %v10798_v33, %v10780_v23 }
 0x6e4   :  { %v6656_v25 = vadd.f32 %v6648_v22, %v11221_v55  ;;  %v6703_v0 = vsel %vm6671_vm7, %v6429_v8, %v6392_v62 }
 0x6e5   :  { %v6711_v26 = vmax.f32 %v6703_v0, 1e-30 }
 0x6e6   :  { %vm6672_vm8 = vcmp.gt.f32.partialorder %v6656_v25, %v6664_v56 }
 0x6e7   :  { %8588 = vrcp.f32 %v6711_v26  ;;  %v6395_v19 = vpop.xlane.xlu0 %6394  ;;  %v6696_v46 = vsel %vm6672_vm8, %v10791_v37, %v10784_v9 }
 0x6e8   :  { %v6704_v34 = vsel %vm6672_vm8, %v6432_v54, %v6395_v19 }
 0x6e9   :  { %v6712_v11 = vmax.f32 %v6704_v34, 1e-30 }
 0x6eb   :  { %8590 = vrcp.f32 %v6712_v11 }
 0x6f4   :  { %v8589_v59 = vpop.eup %8588 }
 0x6f5   :  { %v6727_v58 = vmul.f32 %v8589_v59, %v6695_v51 }
 0x6f7   :  { %8514 = vmatmul.mubr.msk.f32.vlgmr.msra.gmra.mxu1 %vm6323_vm3, %v6727_v58 }
 0x6f8   :  { %v8591_v17 = vpop.eup %8590  ;;  %8536 = vmatpush3.msra.mxu1 %v7620_v1 }
 0x6f9   :  { %v6728_v55 = vmul.f32 %v8591_v17, %v6696_v46 }
 0x6fb   :  { %8533 = vmatmul.mubr.msk.f32.vlgmr.msra.gmra.mxu0 %vm6323_vm3, %v6728_v55  ;;  %vm7614_vm3 = vcmask 195584  }
 0x72d   :  { %v6798_v29 = vpop.f32.mrf.mxu1 }
 0x72f   :  { %v8401_v2 = vpop.f32.mrf.mxu1 }
 0x731   :  { %v6871_v53 = vpop.f32.mrf.mxu0 }
 0x733   :  { %v8420_v30 = vpop.f32.mrf.mxu0 }
 0x752   :  { %v6944_v39 = vpop.f32.mrf.mxu1 }
 0x753   :  { %v7313_v20 = vcombine.low %v6798_v29, %v6944_v39  ;;  %v7314_v6 = vcombine.high %v6798_v29, %v6944_v39 }
 0x754   :  { %v8439_v35 = vpop.f32.mrf.mxu1 }
 0x755   :  { %v7321_v43 = vrot.slane %v7313_v20, %v9007_v32  ;;  %v7328_v57 = vrot.slane %v7314_v6, %v9007_v32  ;;  %v7619_v6 = vld [vmem:[%s11642_s4 + $0x10] sm:$0xff] }
 0x756   :  { %v7017_v31 = vpop.f32.mrf.mxu0  ;;  %8537 = vmatprep.subr.mxu1 %v7619_v6 }
 0x757   :  { %v7329_v23 = vcombine.low %v6871_v53, %v7017_v31  ;;  %v7330_v33 = vcombine.high %v6871_v53, %v7017_v31  ;;  %v7618_v31 = vld [vmem:[%s11642_s4 + $0x8] sm:$0xff]  ;;  %8538 = vmatpush3.msra.mxu1 %v7619_v6 }
 0x758   :  { %v8458_v13 = vpop.f32.mrf.mxu0  ;;  %8539 = vmatprep.subr.mxu1 %v7618_v31 }
 0x759   :  { %v7337_v9 = vrot.slane %v7329_v23, %v9007_v32  ;;  %v7344_v37 = vrot.slane %v7330_v33, %v9007_v32  ;;  %8540 = vmatpush3.msra.mxu1 %v7618_v31  ;;  %v7959_v31 = vld [vmem:[%s11644_s6 + $0x2] ss:$0 sm:$0xff] }
 0x75b   :  { %v7345_v7 = vcombine.low %v7321_v43, %v7337_v9  ;;  %v7346_v52 = vcombine.high %v7321_v43, %v7337_v9  ;;  %v7361_v63 = vcombine.low %v7328_v57, %v7344_v37  ;;  %v7362_v21 = vcombine.high %v7328_v57, %v7344_v37  ;;  %v7617_v57 = vld [vmem:[%s11642_s4] sm:$0xff]  ;;  %s8631_s4 = smov 24  }
 0x75c   :  { %8541 = vmatprep.subr.mxu1 %v7617_v57 }
 0x75d   :  { %v7353_v12 = vrot.slane %v7345_v7, %v9015_v45  ;;  %v7360_v5 = vrot.slane %v7346_v52, %v9015_v45  ;;  %v7369_v60 = vrot.slane %v7361_v63, %v9015_v45  ;;  %v7376_v49 = vrot.slane %v7362_v21, %v9015_v45  ;;  %8542 = vmatpush3.msra.mxu1 %v7617_v57 }
 0x75f   :  { %v7449_v14 = vcombine.low %v7353_v12, %v7360_v5  ;;  %v7951_v47 = vcombine.high %v7353_v12, %v7360_v5  ;;  %v7465_v48 = vcombine.low %v7369_v60, %v7376_v49  ;;  %v7952_v50 = vcombine.high %v7369_v60, %v7376_v49 }
 0x761   :  { %v7456_v28 = vrot.slane %v7449_v14, %v9007_v32  ;;  %v7464_v61 = vrot.slane %v7951_v47, %v9007_v32  ;;  %v7472_v44 = vrot.slane %v7465_v48, %v9007_v32  ;;  %v7480_v15 = vrot.slane %v7952_v50, %v9007_v32 }
 0x763   :  { %v7481_v38 = vcombine.low %v7456_v28, %v7464_v61  ;;  %v7497_v18 = vcombine.low %v7472_v44, %v7480_v15  ;;  %v7482_v16 = vcombine.high %v7456_v28, %v7464_v61  ;;  %v7498_v27 = vcombine.high %v7472_v44, %v7480_v15 }
 0x765   :  { %v11555_v36 = vrot.slane %v7481_v38, %v9015_v45  ;;  %v11558_v3 = vrot.slane %v7497_v18, %v9015_v45  ;;  %v11561_v24 = vrot.slane %v7482_v16, %v9015_v45  ;;  %v11564_v42 = vrot.slane %v7498_v27, %v9015_v45 }
 0x767   :  { %v7514_v10 = vcombine.high %v11555_v36, %v11558_v3  ;;  %v7516_v8 = vcombine.high %v11561_v24, %v11564_v42  ;;  %v7513_v41 = vcombine.low %v11555_v36, %v11558_v3  ;;  %v7515_v54 = vcombine.low %v11561_v24, %v11564_v42  ;;  %v7955_v42 = vld [vmem:[%s11644_s6] ss:$0 sm:$0xff]  ;;  %v8596_v36 = vld [vmem:[%s11638_s0 + $0x8] sm:$0xff] }
 0x769   :  { %7587 = vrot.lane.b32.xlu1 %v7514_v10, %s8629_s9 }
 0x76d   :  { %7595 = vrot.lane.b32.xlu1 %v7515_v54, %s8630_s10 }
 0x782   :  { %v7090_v4 = vpop.f32.mrf.mxu1  ;;  %v7163_v40 = vpop.f32.mrf.mxu0 }
 0x784   :  { %v8477_v22 = vpop.f32.mrf.mxu1  ;;  %v8496_v62 = vpop.f32.mrf.mxu0 }
 0x785   :  { %v8597_v22 = vld [vmem:[%s11638_s0] sm:$0xff] }
 0x7b7   :  { %v7236_v56 = vpop.f32.mrf.mxu1 }
 0x7b8   :  { %v7381_v0 = vcombine.low %v7090_v4, %v7236_v56  ;;  %v7382_v26 = vcombine.high %v7090_v4, %v7236_v56 }
 0x7b9   :  { %v8515_v25 = vpop.f32.mrf.mxu1 }
 0x7ba   :  { %v7389_v51 = vrot.slane %v7381_v0, %v9007_v32  ;;  %v7396_v58 = vrot.slane %v7382_v26, %v9007_v32 }
 0x7bb   :  { %v7309_v19 = vpop.f32.mrf.mxu0 }
 0x7bc   :  { %v7397_v34 = vcombine.low %v7163_v40, %v7309_v19  ;;  %v7398_v11 = vcombine.high %v7163_v40, %v7309_v19 }
 0x7bd   :  { %v8534_v59 = vpop.f32.mrf.mxu0 }
 0x7be   :  { %v7405_v17 = vrot.slane %v7397_v34, %v9007_v32  ;;  %v7412_v46 = vrot.slane %v7398_v11, %v9007_v32 }
 0x7c0   :  { %v7413_v55 = vcombine.low %v7389_v51, %v7405_v17  ;;  %v7414_v29 = vcombine.high %v7389_v51, %v7405_v17  ;;  %v7429_v2 = vcombine.low %v7396_v58, %v7412_v46  ;;  %v7430_v53 = vcombine.high %v7396_v58, %v7412_v46 }
 0x7c2   :  { %v7421_v30 = vrot.slane %v7413_v55, %v9015_v45  ;;  %v7428_v39 = vrot.slane %v7414_v29, %v9015_v45  ;;  %v7437_v35 = vrot.slane %v7429_v2, %v9015_v45  ;;  %v7444_v20 = vrot.slane %v7430_v53, %v9015_v45 }
 0x7c4   :  { %v7517_v23 = vcombine.low %v7421_v30, %v7428_v39  ;;  %v7953_v33 = vcombine.high %v7421_v30, %v7428_v39  ;;  %v7533_v13 = vcombine.low %v7437_v35, %v7444_v20  ;;  %v7954_v43 = vcombine.high %v7437_v35, %v7444_v20  ;;  %v7958_v20 = vld [vmem:[%s11644_s6 + $0x1] ss:$0 sm:$0xff] }
 0x7c6   :  { %v7524_v9 = vrot.slane %v7517_v23, %v9007_v32  ;;  %v7532_v37 = vrot.slane %v7953_v33, %v9007_v32  ;;  %v7540_v7 = vrot.slane %v7533_v13, %v9007_v32  ;;  %v7548_v52 = vrot.slane %v7954_v43, %v9007_v32 }
 0x7c8   :  { %v7550_v63 = vcombine.high %v7524_v9, %v7532_v37  ;;  %v7566_v21 = vcombine.high %v7540_v7, %v7548_v52  ;;  %v7549_v12 = vcombine.low %v7524_v9, %v7532_v37  ;;  %v7565_v5 = vcombine.low %v7540_v7, %v7548_v52 }
 0x7ca   :  { %v7564_v60 = vrot.slane %v7550_v63, %v9015_v45  ;;  %v7580_v49 = vrot.slane %v7566_v21, %v9015_v45  ;;  %v7557_v14 = vrot.slane %v7549_v12, %v9015_v45  ;;  %v7573_v47 = vrot.slane %v7565_v5, %v9015_v45 }
 0x7cc   :  { %v7583_v48 = vcombine.low %v7564_v60, %v7580_v49  ;;  %v7582_v50 = vcombine.high %v7557_v14, %v7573_v47  ;;  %v7581_v1 = vcombine.low %v7557_v14, %v7573_v47  ;;  %v7584_v32 = vcombine.high %v7564_v60, %v7580_v49 }
 0x7ce   :  { %7597 = vrot.lane.b32.xlu1 %v7583_v48, %s8630_s10  ;;  %7589 = vrot.lane.b32.xlu0 %v7582_v50, %s8629_s9 }
 0x7d2   :  { %7605 = vrot.lane.b32.xlu1 %v7584_v32, %s8631_s4  ;;  %7603 = vrot.lane.b32.xlu0 %v7516_v8, %s8631_s4 }
 0x7db   :  { %v7588_v28 = vpop.permute.xlu1 %7587 }
 0x7dc   :  { %v7609_v38 = vsel %vm5538_vm2, %v7513_v41, %v7588_v28 }
 0x7df   :  { %v7596_v61 = vpop.permute.xlu1 %7595 }
 0x7e0   :  { %v7612_v18 = vsel %vm7611_vm1, %v7609_v38, %v7596_v61 }
 0x840   :  { %v7590_v44 = vpop.permute.xlu0 %7589  ;;  %v7598_v15 = vpop.permute.xlu1 %7597 }
 0x841   :  { %v7610_v45 = vsel %vm5538_vm2, %v7581_v1, %v7590_v44 }
 0x842   :  { %v7613_v16 = vsel %vm7611_vm1, %v7610_v45, %v7598_v15 }
 0x844   :  { %v7604_v27 = vpop.permute.xlu0 %7603  ;;  %v7606_v10 = vpop.permute.xlu1 %7605 }
 0x845   :  { %v7615_v54 = vsel %vm7614_vm3, %v7612_v18, %v7604_v27  ;;  %v7616_v24 = vsel %vm7614_vm3, %v7613_v16, %v7606_v10 }
 0x846   :  { %8543 = vmatprep.mubr.msk.f32.mxu1 %vm72_vm0, %v7615_v54 }
 0x847   :  { %8544 = vmatmul.mubr.msk.f32.vlgmr.msra.gmra.mxu1 %vm72_vm0, %v7616_v24 }
 0x907   :  { %v8545_v8 = vpop.f32.mrf.mxu1 }
 0x908   :  { %v7704_v4 = vadd.f32 %v8545_v8, %v7955_v42 }
 0x909   :  { %v7698_v40 = vpop.f32.mrf.mxu1 }
 0x90a   :  { %v7708_v3 = vadd.f32 %v8596_v36, %v7704_v4  ;;  %v7699_v41 = vadd.f32 %v7955_v42, %v7698_v40 }
 0x90c   :  { %v7707_v62 = vadd.f32 %v8597_v22, %v7699_v41  ;;  %v7712_v56 = vsel %vm72_vm0, %v7708_v3, 0.0 }
 0x90d   :  { %7713 = vadd.xlane.f32.xlu1 %v7712_v56 }
 0x90e   :  { %v7709_v25 = vsel %vm72_vm0, %v7707_v62, 0.0 }
 0x90f   :  { %7710 = vadd.xlane.f32.xlu0 %v7709_v25 }
 0x996   :  { %v7714_v0 = vpop.xlane.xlu1 %7713 }
 0x997   :  { %v7717_v26 = vmul.f32 0.03125, %v7714_v0 }
 0x998   :  { %v7711_v19 = vpop.xlane.xlu0 %7710 }
 0x999   :  { %v7716_v34 = vmul.f32 0.03125, %v7711_v19  ;;  %v7719_v11 = vsub.f32 %v7708_v3, %v7717_v26 }
 0x99b   :  { %v7718_v59 = vsub.f32 %v7707_v62, %v7716_v34  ;;  %v7721_v17 = vmul.f32 %v7719_v11, %v7719_v11 }
 0x99d   :  { %v7720_v51 = vmul.f32 %v7718_v59, %v7718_v59  ;;  %v7725_v46 = vsel %vm72_vm0, %v7721_v17, 0.0 }
 0x99f   :  { %v7722_v58 = vsel %vm72_vm0, %v7720_v51, 0.0 }
 0x9a0   :  { %7723 = vadd.xlane.f32.xlu0 %v7722_v58 }
 0x9a4   :  { %7726 = vadd.xlane.f32.xlu0 %v7725_v46 }
 0xa29   :  { %v7724_v55 = vpop.xlane.xlu0 %7723 }
 0xa2a   :  { %v7728_v29 = vmul.f32 0.03125, %v7724_v55 }
 0xa2c   :  { %v7730_v2 = vadd.f32 1e-05, %v7728_v29 }
 0xa2d   :  { %v7727_v53 = vpop.xlane.xlu0 %7726 }
 0xa2e   :  { %8592 = vrsqrt.f32 %v7730_v2  ;;  %v7729_v30 = vmul.f32 0.03125, %v7727_v53 }
 0xa30   :  { %v7731_v39 = vadd.f32 1e-05, %v7729_v30 }
 0xa32   :  { %8594 = vrsqrt.f32 %v7731_v39 }
 0xa3b   :  { %v8593_v35 = vpop.eup %8592 }
 0xa3c   :  { %v7734_v6 = vmul.f32 %v8593_v35, %v7718_v59 }
 0xa3e   :  { %v7741_v23 = vmul.f32 %v7958_v20, %v7734_v6 }
 0xa3f   :  { %v8595_v33 = vpop.eup %8594 }
 0xa40   :  { %v7735_v13 = vmul.f32 %v8595_v33, %v7719_v11  ;;  %v7748_v43 = vadd.f32 %v7959_v31, %v7741_v23 }
 0xa42   :  { %v7742_v57 = vmul.f32 %v7958_v20, %v7735_v13  ;;  %7750 = vst.msk [vmem:[#allocation2] sm:$0xff] %vm72_vm0, %v7748_v43 }
 0xa44   :  { %v7749_v9 = vadd.f32 %v7959_v31, %v7742_v57 }
 0xa46   :  { %7751 = vst.msk [vmem:[#allocation2 + $0x8] sm:$0xff] %vm72_vm0, %v7749_v9 }
 0xa47   :  { %8609 = shalt.err (!%p8606_p4)
}
 0xa48   :  { %s8633_s6 = smov 128  }
 0xa49   :  { %7763 = dma.vmem_to_hbm [thread:$0]  %s7758_s25, 256, %s11645_s7, [#allocation3], %s8633_s6, %s8633_s6, %s8629_s9  }
 0xa4a   :  { %8618 = dma.done.wait [#allocation3], 256  }
 0xa4b   :  { %8619 = vsyncadd [#allocation3], 4294967040 }
 0xa4c   :  { %7767 = vsyncpa [#allocation3], 1 }

</bundles_post_ra>
